<compile_context>
chip_gen: v6e
topology: v6e:2x2x1
jax: 0.10.0
libtpu: 0.0.40
codegen_flags: <defaults>
</compile_context>

<pallas_src>
import functools

import jax
import jax.numpy as jnp
from jax.experimental import pallas as pl
from jax.experimental.pallas import tpu as pltpu


_ACT_DTYPE = jnp.bfloat16      # activation / weight stream dtype (f32 MXU accumulation)
_MAX_ROWS = 1024               # target matmul rows (M) per grid step


def _tpu_vmem_capacity():
    try:
        info = pltpu.get_tpu_info()
        cap = int(getattr(info, "vmem_capacity_bytes", 0) or 0)
        if cap > 0:
            return cap
    except Exception:
        pass
    return 64 * 1024 * 1024    # conservative default (v7x per-TensorCore VMEM)


_VMEM_LIMIT = int(_tpu_vmem_capacity() * 3 // 4)   # ~48 MiB v7x, ~96 MiB v5e/v6e


# ---------------------------------------------------------------------------
# Optional single-buffering of resident (constant-index-map) weight operands.
# Probed once; falls back silently to default double-buffering if unsupported.
# ---------------------------------------------------------------------------
_BUF1_PROBED = False
_BUF1 = None


def _buffered_one():
    global _BUF1_PROBED, _BUF1
    if _BUF1_PROBED:
        return _BUF1
    _BUF1_PROBED = True
    try:
        buffered = getattr(pl, "Buffered", None)
        if buffered is None:
            return None
        pm = buffered(1)

        def _probe(x_ref, o_ref):
            o_ref[...] = x_ref[...] + 1.0

        out = pl.pallas_call(
            _probe,
            out_shape=jax.ShapeDtypeStruct((8, 128), jnp.float32),
            grid=(2,),
            in_specs=[pl.BlockSpec((8, 128), lambda i: (0, 0), pipeline_mode=pm)],
            out_specs=pl.BlockSpec((8, 128), lambda i: (0, 0)),
        )(jnp.zeros((8, 128), jnp.float32))
        jax.block_until_ready(out)
        _BUF1 = pm
    except Exception:
        _BUF1 = None
    return _BUF1


# ---------------------------------------------------------------------------
# In-kernel tap extraction (shared by the conv and pool kernels)
# ---------------------------------------------------------------------------
def _tap_x(x_ref, dy, dx, ho, wo, cin, stride2):
    """Shifted input window for tap (dy, dx); stride-2 uses the phase layout."""
    if not stride2:
        return x_ref[:, dy:dy + ho, dx:dx + wo, :]
    hr, wr = dy % 2, dx % 2
    c0 = wr * cin
    v = x_ref[:, dy // 2:dy // 2 + ho, hr:hr + 1, dx // 2:dx // 2 + wo, c0:c0 + cin]
    return v.reshape(v.shape[0], ho, wo, cin)


def _tap_att(a_ref, dy, dx, ho, wo, stride2):
    """Per-branch attention values at the input positions of tap (dy, dx)."""
    if not stride2:
        v = a_ref[:, dy:dy + ho, dx:dx + wo]
        return v.reshape(v.shape[0], ho, wo, 1)
    hr, wr = dy % 2, dx % 2
    v = a_ref[:, dy // 2:dy // 2 + ho, hr:hr + 1, dx // 2:dx // 2 + wo, wr:wr + 1]
    return v.reshape(v.shape[0], ho, wo, 1)


# ---------------------------------------------------------------------------
# Kernel 1: fused conv (im2col-free) + folded-BN bias + ReLU, multi-head,
#           optional fused attention broadcast-multiply.
# ---------------------------------------------------------------------------
def _conv_kernel(*args, nheads, kh, kw, ho, wo, cin, stride2, has_att):
    idx = 0
    a_ref = None
    if has_att:
        a_ref, idx = args[0], 1
    x_ref = args[idx]
    w_refs = [args[idx + 1 + 2 * h] for h in range(nheads)]
    b_refs = [args[idx + 2 + 2 * h] for h in range(nheads)]
    o_refs = args[idx + 1 + 2 * nheads:idx + 1 + 3 * nheads]

    accs = [None] * nheads
    for dy in range(kh):
        for dx in range(kw):
            t = _tap_x(x_ref, dy, dx, ho, wo, cin, stride2)
            if has_att:
                t = t * _tap_att(a_ref, dy, dx, ho, wo, stride2)
            a2 = t.reshape(-1, cin)
            ti = dy * kw + dx
            for h in range(nheads):
                p = jnp.dot(a2, w_refs[h][ti], preferred_element_type=jnp.float32)
                accs[h] = p if accs[h] is None else accs[h] + p
    for h in range(nheads):
        out = jnp.maximum(accs[h] + b_refs[h][...], 0.0)
        o_refs[h][...] = out.reshape(o_refs[h].shape).astype(o_refs[h].dtype)


# ---------------------------------------------------------------------------
# Kernel 2: fused pooling (max / avg over the window, in-kernel reduction),
#           optional fused attention multiply (kk=1 degenerates to x * att).
# ---------------------------------------------------------------------------
def _pool_kernel(*args, kh, kw, ho, wo, cin, stride2, has_att, is_max, inv_kk):
    idx = 0
    a_ref = None
    if has_att:
        a_ref, idx = args[0], 1
    x_ref, o_ref = args[idx], args[idx + 1]

    acc = None
    for dy in range(kh):
        for dx in range(kw):
            t = _tap_x(x_ref, dy, dx, ho, wo, cin, stride2).astype(jnp.float32)
            if has_att:
                t = t * _tap_att(a_ref, dy, dx, ho, wo, stride2).astype(jnp.float32)
            if acc is None:
                acc = t
            elif is_max:
                acc = jnp.maximum(acc, t)
            else:
                acc = acc + t
    if (not is_max) and inv_kk != 1.0:
        acc = acc * inv_kk
    o_ref[...] = acc.astype(o_ref.dtype)


# ---------------------------------------------------------------------------
# Wrappers (input prep, block-size selection, BlockSpecs)
# ---------------------------------------------------------------------------
def _prep_spatial(x, att, kh, kw, sh, sw, ph, pw):
    """Zero-pad and (for stride 2) phase-decompose an NHWC input and att map.

    The stride-2 phase decomposition (N, 2Hh, 2Wh, C) -> (N, Hh, 2, Wh, 2C) is a
    pure row-major reshape (free in HBM); it turns every stride-2 tap into plain
    static slices inside the kernel.
    """
    assert sh == sw and sh in (1, 2)
    n, h, w, c = x.shape
    ho = (h + 2 * ph - kh) // sh + 1
    wo = (w + 2 * pw - kw) // sw + 1
    if ph or pw:
        x = jnp.pad(x, ((0, 0), (ph, ph), (pw, pw), (0, 0)))
        if att is not None:
            att = jnp.pad(att, ((0, 0), (ph, ph), (pw, pw)))
    hp, wp = h + 2 * ph, w + 2 * pw
    if sh == 1:
        return x, att, ho, wo, False
    hh = max((hp + 1) // 2, (kh - 1) // 2 + ho)
    wh = max((wp + 1) // 2, (kw - 1) // 2 + wo)
    x = jnp.pad(x, ((0, 0), (0, 2 * hh - hp), (0, 2 * wh - wp), (0, 0)))
    x = x.reshape(n, hh, 2, wh, 2 * c)
    if att is not None:
        att = jnp.pad(att, ((0, 0), (0, 2 * hh - hp), (0, 2 * wh - wp)))
        att = att.reshape(att.shape[0], hh, 2, wh, 2)
    return x, att, ho, wo, True


def _pick_bn(b_out, rows, has_att):
    """Largest per-step batch block with <= _MAX_ROWS matmul rows, >= 2 grid
    steps (keeps both v7x TensorCores busy) and dividing the 8 att branches."""
    best = 1
    for b in range(1, b_out + 1):
        if b_out % b or (has_att and 8 % b):
            continue
        if b * rows > _MAX_ROWS or b_out // b < min(2, b_out):
            continue
        best = b
    return best


def _xa_specs(xp, ap, bn, has_att):
    """BlockSpecs + operands for the (optional att, x) inputs."""
    in_specs, operands = [], []
    if has_att:
        a_block = (bn,) + ap.shape[1:]
        a_rest = (0,) * (len(a_block) - 1)
        in_specs.append(pl.BlockSpec(a_block, lambda i: (i,) + a_rest))
        operands.append(ap)
        ratio = 8 // bn
        x_block = (1,) + xp.shape[1:]
        x_rest = (0,) * (len(x_block) - 1)
        in_specs.append(pl.BlockSpec(x_block, lambda i: (i // ratio,) + x_rest))
    else:
        x_block = (bn,) + xp.shape[1:]
        x_rest = (0,) * (len(x_block) - 1)
        in_specs.append(pl.BlockSpec(x_block, lambda i: (i,) + x_rest))
    operands.append(xp)
    return in_specs, operands


@functools.lru_cache(maxsize=None)
def _conv_fn(key):
    x_shape, att_shape, geo, couts = key
    kh, kw, sh, sw, ph, pw = geo
    nheads = len(couts)
    has_att = att_shape is not None
    cin = x_shape[-1]
    pm = _buffered_one()   # probed eagerly (outside any jit trace)

    def f(*args):
        x = args[0]
        att = args[1] if has_att else None
        off = 2 if has_att else 1
        ws = args[off:off + nheads]
        bs = args[off + nheads:off + 2 * nheads]

        b_out = att.shape[0] if has_att else x.shape[0]
        xp, ap, ho, wo, stride2 = _prep_spatial(x, att, kh, kw, sh, sw, ph, pw)
        bn = _pick_bn(b_out, ho * wo, has_att)
        in_specs, operands = _xa_specs(xp, ap, bn, has_att)
        for w, b in zip(ws, bs):
            spec_kw = dict(pipeline_mode=pm) if pm is not None else {}
            in_specs.append(pl.BlockSpec(w.shape, lambda i: (0, 0, 0), **spec_kw))
            in_specs.append(pl.BlockSpec(b.shape, lambda i: (0, 0), **spec_kw))
            operands.extend([w, b])

        out_specs = tuple(
            pl.BlockSpec((bn, ho, wo, co), lambda i: (i, 0, 0, 0)) for co in couts)
        out_shape = tuple(
            jax.ShapeDtypeStruct((b_out, ho, wo, co), _ACT_DTYPE) for co in couts)

        kernel = functools.partial(
            _conv_kernel, nheads=nheads, kh=kh, kw=kw, ho=ho, wo=wo,
            cin=cin, stride2=stride2, has_att=has_att)

        return pl.pallas_call(
            kernel,
            out_shape=out_shape,
            grid=(b_out // bn,),
            in_specs=in_specs,
            out_specs=out_specs,
            compiler_params=pltpu.CompilerParams(
                dimension_semantics=("parallel",),
                vmem_limit_bytes=_VMEM_LIMIT,
            ),
        )(*operands)

    return jax.jit(f)


def fused_conv(x, heads, att=None):
    """BasicConv2d (conv + folded-BN bias + ReLU) for one or more heads sharing
    the same input and geometry.  When `att` (shape (8*Nx, H, W)) is given, the
    attention broadcast-multiply is fused: out[e] = conv(x[e // 8] * att[e])."""
    p0 = heads[0]
    geo = (p0["kh"], p0["kw"], p0["sh"], p0["sw"], p0["ph"], p0["pw"])
    for p in heads[1:]:
        assert (p["kh"], p["kw"], p["sh"], p["sw"], p["ph"], p["pw"]) == geo
    couts = tuple(p["cout"] for p in heads)
    key = (tuple(x.shape), tuple(att.shape) if att is not None else None, geo, couts)
    args = [x] + ([att] if att is not None else []) \
        + [p["w"] for p in heads] + [p["bias"] for p in heads]
    out = _conv_fn(key)(*args)
    return list(out)


@functools.lru_cache(maxsize=None)
def _pool_fn(key):
    x_shape, att_shape, kh, kw, stride, padding, kind = key
    has_att = att_shape is not None
    cin = x_shape[-1]

    def f(*args):
        x = args[0]
        att = args[1] if has_att else None
        b_out = att.shape[0] if has_att else x.shape[0]
        xp, ap, ho, wo, stride2 = _prep_spatial(x, att, kh, kw, stride, stride,
                                                padding, padding)
        bn = _pick_bn(b_out, ho * wo, has_att)
        in_specs, operands = _xa_specs(xp, ap, bn, has_att)
        kernel = functools.partial(
            _pool_kernel, kh=kh, kw=kw, ho=ho, wo=wo, cin=cin, stride2=stride2,
            has_att=has_att, is_max=(kind == "max"), inv_kk=1.0 / (kh * kw))
        return pl.pallas_call(
            kernel,
            out_shape=jax.ShapeDtypeStruct((b_out, ho, wo, cin), _ACT_DTYPE),
            grid=(b_out // bn,),
            in_specs=in_specs,
            out_specs=pl.BlockSpec((bn, ho, wo, cin), lambda i: (i, 0, 0, 0)),
            compiler_params=pltpu.CompilerParams(
                dimension_semantics=("parallel",),
                vmem_limit_bytes=_VMEM_LIMIT,
            ),
        )(*operands)

    return jax.jit(f)


def fused_pool(x, kernel_size, stride, padding, kind, att=None):
    """max_pool2d / avg_pool2d (count_include_pad=True) with the window
    reduction done in-kernel; optional fused per-branch attention multiply
    (kernel_size=1 with att == plain elementwise x * att)."""
    key = (tuple(x.shape), tuple(att.shape) if att is not None else None,
           kernel_size, kernel_size, stride, padding, kind)
    args = [x] + ([att] if att is not None else [])
    return _pool_fn(key)(*args)


# ---------------------------------------------------------------------------
# Deterministic parameter construction (BasicConv2d = conv(no bias) + BN)
# ---------------------------------------------------------------------------
class ParamGen:
    def __init__(self, key):
        self._key = key
        self._n = 0

    def basic(self, cin, cout, kernel_size, stride=1, padding=0):
        kh, kw = (kernel_size, kernel_size) if isinstance(kernel_size, int) else kernel_size
        sh, sw = (stride, stride) if isinstance(stride, int) else stride
        ph, pw = (padding, padding) if isinstance(padding, int) else padding
        k = jax.random.fold_in(self._key, self._n)
        self._n += 1
        fan_in = cin * kh * kw
        w = jax.random.normal(k, (cout, cin, kh, kw), jnp.float32) / jnp.sqrt(fan_in)
        gamma = 1.0 + 0.1 * jax.random.normal(jax.random.fold_in(k, 1), (cout,), jnp.float32)
        beta = 0.1 * jax.random.normal(jax.random.fold_in(k, 2), (cout,), jnp.float32)
        run_mean = jnp.zeros((cout,), jnp.float32)
        run_var = jnp.ones((cout,), jnp.float32)
        eps = 1e-3
        scale = gamma / jnp.sqrt(run_var + eps)
        bias = beta - run_mean * scale
        # (cout,cin,kh,kw) -> (kh*kw, cin, cout) matching the kernel tap order
        # (dy major, dx minor); BN scale folded into the output columns.
        w_taps = jnp.transpose(w, (2, 3, 1, 0)).reshape(kh * kw, cin, cout) * scale[None, None, :]
        return dict(w=w_taps.astype(_ACT_DTYPE),
                    bias=bias.reshape(1, cout).astype(jnp.float32),
                    kh=kh, kw=kw, sh=sh, sw=sw, ph=ph, pw=pw, cin=cin, cout=cout)


# ---------------------------------------------------------------------------
# Inception blocks (torchvision Inception-v3 definitions)
# ---------------------------------------------------------------------------
def make_inception_b(pg, cin):
    return dict(b3=pg.basic(cin, 384, 3, stride=2),
                d1=pg.basic(cin, 64, 1),
                d2=pg.basic(64, 96, 3, padding=1),
                d3=pg.basic(96, 96, 3, stride=2))


def inception_b(x, p, att=None):
    br3 = fused_conv(x, [p["b3"]], att=att)[0]
    d = fused_conv(x, [p["d1"]], att=att)[0]
    d = fused_conv(d, [p["d2"]])[0]
    d = fused_conv(d, [p["d3"]])[0]
    pool = fused_pool(x, 3, 2, 0, "max", att=att)
    return jnp.concatenate([br3, d, pool], axis=-1)


def make_inception_c(pg, cin, c7):
    return dict(b1=pg.basic(cin, 192, 1),
                b7_1=pg.basic(cin, c7, 1),
                b7_2=pg.basic(c7, c7, (1, 7), padding=(0, 3)),
                b7_3=pg.basic(c7, 192, (7, 1), padding=(3, 0)),
                d1=pg.basic(cin, c7, 1),
                d2=pg.basic(c7, c7, (7, 1), padding=(3, 0)),
                d3=pg.basic(c7, c7, (1, 7), padding=(0, 3)),
                d4=pg.basic(c7, c7, (7, 1), padding=(3, 0)),
                d5=pg.basic(c7, 192, (1, 7), padding=(0, 3)),
                pool=pg.basic(cin, 192, 1))


def inception_c(x, p):
    b1, b71, d = fused_conv(x, [p["b1"], p["b7_1"], p["d1"]])   # shared-input 1x1s
    b7 = fused_conv(b71, [p["b7_2"]])[0]
    b7 = fused_conv(b7, [p["b7_3"]])[0]
    for k in ("d2", "d3", "d4", "d5"):
        d = fused_conv(d, [p[k]])[0]
    pool = fused_conv(fused_pool(x, 3, 1, 1, "avg"), [p["pool"]])[0]
    return jnp.concatenate([b1, b7, d, pool], axis=-1)


def make_inception_d(pg, cin):
    return dict(b3_1=pg.basic(cin, 192, 1),
                b3_2=pg.basic(192, 320, 3, stride=2),
                b7_1=pg.basic(cin, 192, 1),
                b7_2=pg.basic(192, 192, (1, 7), padding=(0, 3)),
                b7_3=pg.basic(192, 192, (7, 1), padding=(3, 0)),
                b7_4=pg.basic(192, 192, 3, stride=2))


def inception_d(x, p, att=None):
    b31, b7 = fused_conv(x, [p["b3_1"], p["b7_1"]], att=att)    # shared-input 1x1s
    b3 = fused_conv(b31, [p["b3_2"]])[0]
    for k in ("b7_2", "b7_3", "b7_4"):
        b7 = fused_conv(b7, [p[k]])[0]
    pool = fused_pool(x, 3, 2, 0, "max", att=att)
    return jnp.concatenate([b3, b7, pool], axis=-1)


def make_inception_e(pg, cin):
    return dict(b1=pg.basic(cin, 320, 1),
                b3_1=pg.basic(cin, 384, 1),
                b3_2a=pg.basic(384, 384, (1, 3), padding=(0, 1)),
                b3_2b=pg.basic(384, 384, (3, 1), padding=(1, 0)),
                d1=pg.basic(cin, 448, 1),
                d2=pg.basic(448, 384, 3, padding=1),
                d3a=pg.basic(384, 384, (1, 3), padding=(0, 1)),
                d3b=pg.basic(384, 384, (3, 1), padding=(1, 0)),
                pool=pg.basic(cin, 192, 1))


def inception_e(x, p):
    b1, t, u = fused_conv(x, [p["b1"], p["b3_1"], p["d1"]])     # shared-input 1x1s
    b3 = jnp.concatenate([fused_conv(t, [p["b3_2a"]])[0],
                          fused_conv(t, [p["b3_2b"]])[0]], axis=-1)
    u = fused_conv(u, [p["d2"]])[0]
    d = jnp.concatenate([fused_conv(u, [p["d3a"]])[0],
                         fused_conv(u, [p["d3b"]])[0]], axis=-1)
    pool = fused_conv(fused_pool(x, 3, 1, 1, "avg"), [p["pool"]])[0]
    return jnp.concatenate([b1, b3, d, pool], axis=-1)


def _run_seq(x, seq, att=None):
    for idx, (kind, p) in enumerate(seq):
        a = att if idx == 0 else None
        if kind == "B":
            x = inception_b(x, p, att=a)
        elif kind == "C":
            x = inception_c(x, p)
        elif kind == "D":
            x = inception_d(x, p, att=a)
        else:
            x = inception_e(x, p)
    return x


# ---------------------------------------------------------------------------
# AF2
# ---------------------------------------------------------------------------
def make_af2_params(key):
    pg = ParamGen(key)
    return dict(
        att=pg.basic(768, 8, 1),
        incep2=[("B", make_inception_b(pg, 288)),
                ("C", make_inception_c(pg, 768, 128)),
                ("C", make_inception_c(pg, 768, 160)),
                ("C", make_inception_c(pg, 768, 160)),
                ("C", make_inception_c(pg, 768, 192))],
        incep3=[("D", make_inception_d(pg, 768)),
                ("E", make_inception_e(pg, 1280)),
                ("E", make_inception_e(pg, 2048))],
        incep3_2=[("D", make_inception_d(pg, 768)),
                  ("E", make_inception_e(pg, 1280)),
                  ("E", make_inception_e(pg, 2048))],
    )


def af2_forward(params, x_nchw, y_nchw, z_nchw):
    # x: (N,288,35,35), y: (N,768,17,17), z: (N,2048,8,8)  [NCHW in, NCHW out]
    x = jnp.transpose(x_nchw.astype(_ACT_DTYPE), (0, 2, 3, 1))
    y = jnp.transpose(y_nchw.astype(_ACT_DTYPE), (0, 2, 3, 1))
    z = jnp.transpose(z_nchw.astype(_ACT_DTYPE), (0, 2, 3, 1))
    N = x.shape[0]

    attentive = fused_conv(y, [params["att"]])[0]                 # (N,17,17,8)

    # F.upsample(scale_factor=2, mode='nearest') + ReflectionPad2d((0,1,0,1))
    up = jnp.repeat(jnp.repeat(attentive, 2, axis=1), 2, axis=2)  # (N,34,34,8)
    up = jnp.concatenate([up, up[:, :, -2:-1, :]], axis=2)        # reflect right
    attentive1 = jnp.concatenate([up, up[:, -2:-1, :, :]], axis=1)  # reflect bottom

    def branch_maps(a):   # (N,H,W,8) -> (8N,H,W), expanded index e = n*8 + i
        return jnp.transpose(a, (0, 3, 1, 2)).reshape(N * 8, a.shape[1], a.shape[2])

    att1 = branch_maps(attentive1)                                # (8N,35,35)
    att2 = branch_maps(attentive)                                 # (8N,17,17)
    attentive3 = fused_pool(attentive, 2, 2, 0, "avg")            # (N,8,8,8)
    att3 = branch_maps(attentive3)                                # (8N,8,8)

    # R1 branch: attention fused into InceptionB's entry convs / maxpool.
    r1 = _run_seq(x, params["incep2"], att=att1)
    r1 = _run_seq(r1, params["incep3"])                           # (8N,8,8,2048)

    # R2 branch: attention fused into InceptionD's entry convs / maxpool.
    r2 = _run_seq(y, params["incep3_2"], att=att2)                # (8N,8,8,2048)

    # R3 branch: plain z * att3 (part of the output) via the kk=1 pool kernel.
    r3 = fused_pool(z, 1, 1, 0, "avg", att=att3)                  # (8N,8,8,2048)

    def fold(r):  # (8N,H,W,C) NHWC -> (N, 8*C, H, W) NCHW, branch-major channels
        B, H, W, C = r.shape
        return jnp.transpose(r, (0, 3, 1, 2)).reshape(N, 8 * C, H, W)

    return jnp.concatenate([fold(r1), fold(r2), fold(r3)], axis=1).astype(jnp.float32)


if __name__ == "__main__":
    key = jax.random.PRNGKey(0)
    kx, ky, kz, kp = jax.random.split(key, 4)
    N = 2
    x = jax.random.normal(kx, (N, 288, 35, 35), jnp.float32)
    y = jax.random.normal(ky, (N, 768, 17, 17), jnp.float32)
    z = jax.random.normal(kz, (N, 2048, 8, 8), jnp.float32)
    params = make_af2_params(kp)

    ret = af2_forward(params, x, y, z)
    ret = jax.block_until_ready(ret)

    assert ret.shape == (N, 3 * 8 * 2048, 8, 8), ret.shape
    assert bool(jnp.isfinite(ret).all())
    print("KERNEL_OK")
</pallas_src>

<mosaic_0001>
module attributes {stable_mosaic.version = 11 : i64} {
  func.func @_probe(%arg0: i32, %arg1: memref<8x128xf32, #tpu.memory_space<vmem>>, %arg2: memref<8x128xf32, #tpu.memory_space<vmem>>) attributes {dimension_semantics = [#tpu.dimension_semantics<arbitrary>], iteration_bounds = array<i64: 2>, scalar_prefetch = 0 : i64, scratch_operands = 0 : i64, tpu.core_type = #tpu.core_type<tc>, window_params = [{pipeline_mode = #tpu.pipeline_mode<synchronous>, transform_indices = @transform_0, window_bounds = array<i64: 8, 128>}, {pipeline_mode = #tpu.pipeline_mode<synchronous>, transform_indices = @transform_1, window_bounds = array<i64: 8, 128>}]} {
    %c0 = arith.constant 0 : index
    %c0_0 = arith.constant 0 : index
    %0 = vector.load %arg1[%c0, %c0_0] : memref<8x128xf32, #tpu.memory_space<vmem>>, vector<8x128xf32>
    %cst = arith.constant 1.000000e+00 : f32
    %1 = vector.broadcast %cst : f32 to vector<8x128xf32>
    %2 = arith.addf %0, %1 : vector<8x128xf32>
    %c0_1 = arith.constant 0 : index
    %c0_2 = arith.constant 0 : index
    %3 = vector.load %arg2[%c0_1, %c0_2] : memref<8x128xf32, #tpu.memory_space<vmem>>, vector<8x128xf32>
    tpu.vector_store %arg2[%c0_1, %c0_2], %2 {strides = array<i32>} : memref<8x128xf32, #tpu.memory_space<vmem>>, vector<8x128xf32>,
    return
  }
  func.func @transform_0(%arg0: i32) -> (i32, i32) {
    %c0_i32 = arith.constant 0 : i32
    %c0_i32_0 = arith.constant 0 : i32
    %c0_i32_1 = arith.constant 0 : i32
    return %c0_i32, %c0_i32_0 : i32, i32
  }
  func.func @transform_1(%arg0: i32) -> (i32, i32) {
    %c0_i32 = arith.constant 0 : i32
    %c0_i32_0 = arith.constant 0 : i32
    %c0_i32_1 = arith.constant 0 : i32
    return %c0_i32, %c0_i32_0 : i32, i32
  }
}

module attributes {stable_mosaic.version = 11 : i64} {
  func.func @_conv_kernel(%arg0: i32, %arg1: memref<1x17x17x768xbf16, #tpu.memory_space<vmem>>, %arg2: memref<1x768x8xbf16, #tpu.memory_space<vmem>>, %arg3: memref<1x8xf32, #tpu.memory_space<vmem>>, %arg4: memref<1x17x17x8xbf16, #tpu.memory_space<vmem>>) attributes {dimension_semantics = [#tpu.dimension_semantics<parallel>], iteration_bounds = array<i64: 2>, scalar_prefetch = 0 : i64, scratch_operands = 0 : i64, tpu.core_type = #tpu.core_type<tc>, window_params = [{transform_indices = @transform_0, window_bounds = array<i64: 1, 17, 17, 768>}, {pipeline_mode = #tpu.pipeline_mode<synchronous>, transform_indices = @transform_1, window_bounds = array<i64: 1, 768, 8>}, {pipeline_mode = #tpu.pipeline_mode<synchronous>, transform_indices = @transform_2, window_bounds = array<i64: 1, 8>}, {transform_indices = @transform_3, window_bounds = array<i64: 1, 17, 17, 8>}]} {
    %c0 = arith.constant 0 : index
    %c0_0 = arith.constant 0 : index
    %c0_1 = arith.constant 0 : index
    %c0_2 = arith.constant 0 : index
    %0 = vector.load %arg1[%c0, %c0_0, %c0_1, %c0_2] : memref<1x17x17x768xbf16, #tpu.memory_space<vmem>>, vector<1x17x17x768xbf16>
    %1 = vector.shape_cast %0 : vector<1x17x17x768xbf16> to vector<289x768xbf16>
    %c0_3 = arith.constant 0 : index
    %c0_4 = arith.constant 0 : index
    %c0_5 = arith.constant 0 : index
    %2 = vector.load %arg2[%c0_3, %c0_4, %c0_5] : memref<1x768x8xbf16, #tpu.memory_space<vmem>>, vector<1x768x8xbf16>
    %3 = vector.shape_cast %2 : vector<1x768x8xbf16> to vector<768x8xbf16>
    %cst = arith.constant dense<0.000000e+00> : vector<289x8xf32>
    %4 = tpu.matmul %1, %3, %cst {dimension_numbers = #tpu.dot_dimension_numbers<[1], [0], [0], [1], [0, 0, 1, 1], [], []>} : vector<289x768xbf16>, vector<768x8xbf16>, vector<289x8xf32> -> vector<289x8xf32>
    %c0_6 = arith.constant 0 : index
    %c0_7 = arith.constant 0 : index
    %5 = vector.load %arg3[%c0_6, %c0_7] : memref<1x8xf32, #tpu.memory_space<vmem>>, vector<1x8xf32>
    %6 = vector.broadcast %5 : vector<1x8xf32> to vector<289x8xf32>
    %7 = arith.addf %4, %6 : vector<289x8xf32>
    %cst_8 = arith.constant 0.000000e+00 : f32
    %8 = vector.broadcast %cst_8 : f32 to vector<289x8xf32>
    %9 = arith.maximumf %7, %8 : vector<289x8xf32>
    %10 = vector.shape_cast %9 : vector<289x8xf32> to vector<1x17x17x8xf32>
    %11 = arith.truncf %10 : vector<1x17x17x8xf32> to vector<1x17x17x8xbf16>
    %c0_9 = arith.constant 0 : index
    %c0_10 = arith.constant 0 : index
    %c0_11 = arith.constant 0 : index
    %c0_12 = arith.constant 0 : index
    %12 = vector.load %arg4[%c0_9, %c0_10, %c0_11, %c0_12] : memref<1x17x17x8xbf16, #tpu.memory_space<vmem>>, vector<1x17x17x8xbf16>
    tpu.vector_store %arg4[%c0_9, %c0_10, %c0_11, %c0_12], %11 {strides = array<i32>} : memref<1x17x17x8xbf16, #tpu.memory_space<vmem>>, vector<1x17x17x8xbf16>,
    return
  }
  func.func @transform_0(%arg0: i32) -> (i32, i32, i32, i32) {
    %c0_i32 = arith.constant 0 : i32
    %c0_i32_0 = arith.constant 0 : i32
    %c0_i32_1 = arith.constant 0 : i32
    %c0_i32_2 = arith.constant 0 : i32
    return %arg0, %c0_i32, %c0_i32_0, %c0_i32_1 : i32, i32, i32, i32
  }
  func.func @transform_1(%arg0: i32) -> (i32, i32, i32) {
    %c0_i32 = arith.constant 0 : i32
    %c0_i32_0 = arith.constant 0 : i32
    %c0_i32_1 = arith.constant 0 : i32
    %c0_i32_2 = arith.constant 0 : i32
    return %c0_i32, %c0_i32_0, %c0_i32_1 : i32, i32, i32
  }
  func.func @transform_2(%arg0: i32) -> (i32, i32) {
    %c0_i32 = arith.constant 0 : i32
    %c0_i32_0 = arith.constant 0 : i32
    %c0_i32_1 = arith.constant 0 : i32
    return %c0_i32, %c0_i32_0 : i32, i32
  }
  func.func @transform_3(%arg0: i32) -> (i32, i32, i32, i32) {
    %c0_i32 = arith.constant 0 : i32
    %c0_i32_0 = arith.constant 0 : i32
    %c0_i32_1 = arith.constant 0 : i32
    %c0_i32_2 = arith.constant 0 : i32
    return %arg0, %c0_i32, %c0_i32_0, %c0_i32_1 : i32, i32, i32, i32
  }
}

</mosaic_0001>

<bundles_post_ra>
// kernel: tpu_custom_call.1
= control target key start
LH: loop header
LB: loop body
LE: loop exit
PB: predicated region body
PF: predicated region fallthrough
CT: control target
= control target key end

     0   :  { %6 = vsyncpa [#allocation3], 0  ;;  %s305_s0 = inlined_call_operand.hbm [shape: f32[8,128], index: 0, kind: input, shape index: {}]   ;;  %s306_s1 = inlined_call_operand.hbm [shape: f32[8,128], index: 1, kind: output, shape index: {}]  }
   0x1   :  { %7 = vsyncpa [#allocation4], 0  ;;  %s258_s6 = smov 0  }
   0x2 LB: > { %s145_s7 = sadd.s32 4294967295, %s244_s6   ;;  %p146_p0 = scmp.ge.s32.totalorder %s244_s6, 1  ;;  %s244_s6 = sphi %s258_s6, %s13_s6  }
   0x3   : > { %p60_p1 = scmp.lt.s32.totalorder %s244_s6, 3  ;;  %p270_p3 = scmp.eq.s32.totalorder %s145_s7, 0 }
   0x4   : > { %s246_s10 = smov [#allocation2]  }
   0x5   : > { %p266_p2 = pnand %p146_p0, %p60_p1  ;;  %s73_s11 = sshll.u32 %s246_s10, 4  ;;  %s74_s11 = int_to_ptr.vmem [resolvable:$true] %s73_s11 }
   0x6   : > { %s191_s12 = scalar_lea.vmem %s74_s11, 128  ;;  %p199_p10 = scmp.lt.s32.totalorder %s74_s11, %s74_s11 }
   0x7   : > { %p162_p4 = pneg %p266_p2  ;;  %p192_p7 = scmp.ne.s32.totalorder %s74_s11, %s191_s12 }
   0x8   : > { %p200_p11 = scmp.lt.s32.totalorder %s191_s12, %s191_s12 }
   0x9   : > { %p163_p5 = pnand %p270_p3, %p162_p4 }
   0xa   : > { %p201_p12 = por %p200_p11, %p199_p10 }
   0xb   : > { %p182_p6 = pneg %p163_p5 }
   0xd   : > { %p194_p8 = pnand %p192_p7, %p182_p6 }
   0xf   : > { %p195_p9 = pneg %p194_p8 }
  0x11   : > { %p202_p13 = pnand %p201_p12, %p195_p9 }
  0x13   : > { %205 = shalt.err (!%p202_p13)
}
  0x14   : > { %165 = dma.hbm_to_vmem [thread:$0]  (!%p163_p5), %s305_s0, 128, %s74_s11, [#allocation3]  }
  0x15   : > { %86 = sbr.rel (%p266_p2) target bundleno = 42 (0x2a), region = 24 }
  0x1a   : > { %235 = dma.done.wait (%p270_p3), [#allocation3], 128  }
  0x1b   : > { %237 = vsyncadd (%p270_p3), [#allocation3], 4294967168  ;;  %s247_s15 = smov [#allocation5]   ;;  %v96_v0 = vld [vmem:[#allocation2] sm:$0xff]  ;;  %p287_p0 = scmp.eq.s32.totalorder %s145_s7, 1 }
  0x1c   : > { %s106_s16 = sshll.u32 %s247_s15, 4  ;;  %v97_v1 = vadd.f32 1.0, %v96_v0  ;;  %s107_s16 = int_to_ptr.vmem [resolvable:$true] %s106_s16 }
  0x1d   : > { %s206_s18 = scalar_lea.vmem %s107_s16, 128  ;;  %p213_p5 = scmp.lt.s32.totalorder %s107_s16, %s107_s16 }
  0x1e   : > { %98 = vst [vmem:[#allocation5] sm:$0xff] %v97_v1  ;;  %p207_p1 = scmp.ne.s32.totalorder %s107_s16, %s206_s18  ;;  %p214_p6 = scmp.lt.s32.totalorder %s206_s18, %s206_s18 }
  0x20   : > { %p208_p2 = pnand %p207_p1, %p287_p0  ;;  %p215_p7 = por %p214_p6, %p213_p5 }
  0x22   : > { %p209_p4 = pneg %p208_p2 }
  0x24   : > { %p216_p3 = pnand %p215_p7, %p209_p4 }
  0x26   : > { %219 = shalt.err (!%p216_p3)
}
  0x27   : > { %159 = dma.vmem_to_hbm [thread:$0]  (%p287_p0), %s107_s16, 128, %s306_s1, [#allocation4]  }
  0x28   : > { %239 = dma.done.wait (%p287_p0), [#allocation4], 128  }
  0x29   : > { %241 = vsyncadd (%p287_p0), [#allocation4], 4294967168 }
  0x2a PF: > { %s13_s6 = sadd.s32 1, %s244_s6  }
  0x2b   : > { %p10_p8 = scmp.ge.s32.totalorder %s13_s6, 4  }
  0x2d   :  { %12 = sbr.rel (!%p10_p8) target bundleno = 2 (0x2), region = 53 }
  0x32   :  { %119 = vsyncpa [#allocation3], 1 }
  0x33   :  { %121 = vsyncpa [#allocation3 + $0x1], 1 }
  0x34   :  { %122 = vsyncpa [#allocation4], 1 }
  0x35   :  { %124 = vsyncpa [#allocation4 + $0x1], 1 }

// kernel: f.1
= control target key start
LH: loop header
LB: loop body
LE: loop exit
PB: predicated region body
PF: predicated region fallthrough
CT: control target
= control target key end

     0   :  { %s11751_s12 = smov 0   ;;  %s14755_s0 = inlined_call_operand.vmem [shape: bf16[2,17,17,768], index: 0, kind: input, shape index: {}]   ;;  %s14756_s1 = inlined_call_operand.vmem [shape: bf16[1,768,8], index: 1, kind: input, shape index: {}]   ;;  %s14757_s2 = inlined_call_operand.vmem [shape: f32[1,8], index: 2, kind: input, shape index: {}]   ;;  %s14758_s3 = inlined_call_operand.vmem [shape: bf16[2,17,17,8], index: 3, kind: output, shape index: {}]  }
   0x1 LB: > { %s11133_s13 = sadd.s32 4294967295, %s11727_s12   ;;  %p11137_p0 = scmp.ge.s32.totalorder %s11727_s12, 1  ;;  %s11727_s12 = sphi %s11751_s12, %s13_s12  }
   0x2   : > { %p137_p1 = scmp.lt.s32.totalorder %s11727_s12, 3 }
   0x4   : > { %p138_p2 = pnand %p11137_p0, %p137_p1 }
   0x6   : > { %141 = sbr.rel (%p138_p2) target bundleno = 742 (0x2e6), region = 32 }
   0xb   : > { %v11670_v0 = vld [vmem:[%s14756_s1 + $0x38] sm:$0xff]   ;;  %v14760_v1 = vmov 0   ;;  %v11671_v2 = vld [vmem:[%s14756_s1 + $0x30] sm:$0xff]   ;;  %p161_p3 = scmp.lt.s32.totalorder %s11133_s13, 1  ;;  %v11672_v3 = vld [vmem:[%s14756_s1 + $0x28] sm:$0xff]   ;;  %v505_v5 = vlaneseq  ;;  %vm10989_vm0 = vcmask 60416  }
   0xc   : > { %6409 = vmatprep.subr.bf16.mxu0 %v14760_v1  ;;  %11626 = vmatprep.subr.bf16.mxu1 %v14760_v1  ;;  %v11673_v4 = vld [vmem:[%s14756_s1 + $0x20] sm:$0xff]   ;;  %v11674_v6 = vld [vmem:[%s14756_s1 + $0x18] sm:$0xff]   ;;  %v11675_v12 = vld [vmem:[%s14756_s1 + $0x10] sm:$0xff]   ;;  %v11730_v14 = vmov 1966171168   ;;  %vm10992_vm1 = vcmask 57344  }
   0xd   : > { %6410 = vmatpush1.bf16.msra.mxu0 %v11670_v0  ;;  %11642 = vmatpush1.bf16.msra.mxu1 %v11670_v0  ;;  %s15199_s13 = smov (!%p161_p3, %s11133_s13), 1  ;;  %v506_v7 = vshrl.u32 %v505_v5, 7  ;;  %v503_v15 = vunpack.c.l.s4 %v11730_v14  ;;  %v11676_v21 = vld [vmem:[%s14756_s1 + $0x8] sm:$0xff]   ;;  %v11677_v40 = vld [vmem:[%s14756_s1] sm:$0xff]   ;;  %v11678_v58 = vld [vmem:[%s14756_s1 + $0x78] sm:$0xff]  }
   0xe   : > { %6411 = vmatprep.subr.bf16.mxu0 %v14760_v1  ;;  %11627 = vmatprep.subr.bf16.mxu1 %v14760_v1  ;;  %s11658_s22 = smul.u32 1224, %s15199_s13  ;;  %vm10993_vm2 = vsmask.f32 256 }
   0xf   : > { %v504_v23 = vunpack.c.0.s8 %v503_v15  ;;  %s11659_s18 = smul.u32 204, %s15199_s13  ;;  %vm13897_vm3 = vmand %vm10992_vm1, %vm10993_vm2 }
  0x10   : > { %s11790_s27 = scalar_lea.vmem %s14755_s0, %s11658_s22 }
  0x11   : > { %6412 = vmatpush1.bf16.msra.mxu0 %v11671_v2  ;;  %11643 = vmatpush1.bf16.msra.mxu1 %v11671_v2  ;;  %v11140_v8 = vld.sshfl [vmem:[%s11790_s27] sm:$0xff pattern:$0x75316420]  ;;  %v11141_v9 = vld.sshfl [vmem:[%s11790_s27 + $0x8] sm:$0xff pattern:$0x75316420]  ;;  %v11813_v31 = vsub.s32 %v504_v23, %v506_v7  ;;  %s13878_s20 = scalar_lea.vmem %s14758_s3, %s11659_s18 }
  0x12   : > { %6413 = vmatprep.subr.bf16.mxu0 %v14760_v1  ;;  %11628 = vmatprep.subr.bf16.mxu1 %v14760_v1  ;;  %v11143_v10 = vld.sshfl [vmem:[%s11790_s27 + $0x18] sm:$0xff pattern:$0x75316420]  ;;  %v11144_v11 = vld.sshfl [vmem:[%s11790_s27 + $0x20] sm:$0xff pattern:$0x75316420]  ;;  %v499_v18 = vcombine.low %v11140_v8, %v11141_v9  ;;  %v500_v22 = vcombine.high %v11140_v8, %v11141_v9 }
  0x13   : > { %v11221_v13 = vld.sshfl [vmem:[%s11790_s27 + $0x288] sm:$0xff pattern:$0x75316420]  ;;  %v11222_v16 = vld.sshfl [vmem:[%s11790_s27 + $0x290] sm:$0xff pattern:$0x75316420]  ;;  %v555_v24 = vcombine.low %v11143_v10, %v11144_v11  ;;  %v556_v25 = vcombine.high %v11143_v10, %v11144_v11 }
  0x14   : > { %v11223_v17 = vld.sshfl [vmem:[%s11790_s27 + $0x298] sm:$0xff pattern:$0x75316420]  ;;  %v11224_v19 = vld.sshfl [vmem:[%s11790_s27 + $0x2a0] sm:$0xff pattern:$0x75316420]  ;;  %v1841_v28 = vcombine.high %v11221_v13, %v11222_v16  ;;  %v508_v36 = vrot.slane %v499_v18, %v11813_v31  ;;  %v515_v37 = vrot.slane %v500_v22, %v11813_v31 }
  0x15   : > { %6414 = vmatpush1.bf16.msra.mxu0 %v11672_v3  ;;  %11644 = vmatpush1.bf16.msra.mxu1 %v11672_v3  ;;  %v11225_v20 = vld.sshfl [vmem:[%s11790_s27 + $0x2a8] sm:$0xff pattern:$0x75316420]  ;;  %v11226_v26 = vld.sshfl [vmem:[%s11790_s27 + $0x2b0] sm:$0xff pattern:$0x75316420]  ;;  %v1842_v29 = vcombine.high %v11223_v17, %v11223_v17  ;;  %v564_v38 = vrot.slane %v555_v24, %v11813_v31  ;;  %v571_v39 = vrot.slane %v556_v25, %v11813_v31 }
  0x16   : > { %6415 = vmatprep.subr.bf16.mxu0 %v14760_v1  ;;  %11629 = vmatprep.subr.bf16.mxu1 %v14760_v1  ;;  %v11227_v27 = vld.sshfl [vmem:[%s11790_s27 + $0x2b8] sm:$0x5 pattern:$0x75316420]  ;;  %v1896_v30 = vcombine.low %v11224_v19, %v11225_v20  ;;  %v1897_v33 = vcombine.high %v11224_v19, %v11225_v20  ;;  %v1898_v34 = vcombine.high %v11226_v26, %v11226_v26 }
  0x17   : > { %v11228_v32 = vld.sshfl [vmem:[%s11790_s27 + $0x2c0] sm:$0x5 pattern:$0x75316420]  ;;  %v11824_v41 = vrot.slane %v1841_v28, %v11813_v31  ;;  %v11827_v42 = vrot.slane %v1842_v29, %v11813_v31  ;;  %v11366_v44 = vcombine.low %v508_v36, %v515_v37  ;;  %v11368_v45 = vcombine.high %v508_v36, %v515_v37 }
  0x18   : > { %v1952_v35 = vcombine.low %v11227_v27, %v11228_v32  ;;  %v1905_v43 = vrot.slane %v1896_v30, %v11813_v31  ;;  %v11370_v46 = vcombine.low %v564_v38, %v571_v39  ;;  %v11372_v47 = vcombine.high %v564_v38, %v571_v39  ;;  %v11229_v48 = vld.sshfl [vmem:[%s11790_s27 + $0x2c8] sm:$0x5 pattern:$0x75316420] }
  0x19   : > { %6416 = vmatpush1.bf16.msra.mxu0 %v11673_v4  ;;  %11645 = vmatpush1.bf16.msra.mxu1 %v11673_v4  ;;  %v11835_v49 = vcombine.high %v11824_v41, %v11827_v42  ;;  %v1912_v50 = vrot.slane %v1897_v33, %v11813_v31  ;;  %v1919_v51 = vrot.slane %v11226_v26, %v11813_v31  ;;  %v11230_v55 = vld.sshfl [vmem:[%s11790_s27 + $0x2d0] sm:$0xff pattern:$0x75316420]  ;;  %v11231_v56 = vld.sshfl [vmem:[%s11790_s27 + $0x2d8] sm:$0xff pattern:$0x75316420] }
  0x1a   : > { %6417 = vmatprep.subr.bf16.mxu0 %v14760_v1  ;;  %11630 = vmatprep.subr.bf16.mxu1 %v14760_v1  ;;  %v11840_v52 = vrot.slane %v11366_v44, %v11813_v31  ;;  %v11843_v53 = vrot.slane %v11368_v45, %v11813_v31  ;;  %v11846_v54 = vrot.slane %v11370_v46, %v11813_v31  ;;  %v11856_v60 = vld.sshfl [vmem:[%s11790_s27 + $0x2e0] sm:$0xff pattern:$0x75316420]  ;;  %v11149_v27 = vld.sshfl [vmem:[%s11790_s27 + $0x48] sm:$0xff pattern:$0x75316420] }
  0x1b   : > { %v1926_v57 = vrot.slane %v1898_v34, %v11813_v31  ;;  %v3604_v59 = vrot.slane %v11372_v47, %v11813_v31  ;;  %v1927_v61 = vcombine.low %v1905_v43, %v1919_v51  ;;  %v1928_v62 = vcombine.high %v1905_v43, %v1919_v51  ;;  %v11147_v26 = vld.sshfl [vmem:[%s11790_s27 + $0x38] sm:$0x5 pattern:$0x75316420]  ;;  %v11680_v34 = vld [vmem:[%s14756_s1 + $0x68] sm:$0xff]  }
  0x1c   : > { %v3613_v63 = vcombine.high %v11840_v52, %v11843_v53  ;;  %v3171_v3 = vunpack.i.h.s16 %v11835_v49  ;;  %v1959_v5 = vrot.slane %v1952_v35, %v11813_v31  ;;  %v1989_v7 = vcombine.low %v11230_v55, %v11231_v56  ;;  %v11148_v33 = vld.sshfl [vmem:[%s11790_s27 + $0x40] sm:$0x5 pattern:$0x75316420] }
  0x1d   : > { %6418 = vmatpush1.bf16.msra.mxu0 %v11674_v6  ;;  %11646 = vmatpush1.bf16.msra.mxu1 %v11674_v6  ;;  %v1929_v0 = vcombine.low %v1912_v50, %v1926_v57  ;;  %v1930_v2 = vcombine.high %v1912_v50, %v1926_v57  ;;  %v3617_v4 = vcombine.high %v11846_v54, %v3604_v59  ;;  %v3173_v16 = vunpack.i.h.s16 %v1927_v61  ;;  %v11150_v38 = vld.sshfl [vmem:[%s11790_s27 + $0x50] sm:$0xff pattern:$0x75316420]  ;;  %v11151_v51 = vld.sshfl [vmem:[%s11790_s27 + $0x58] sm:$0xff pattern:$0x75316420] }
  0x1e   : > { %6419 = vmatprep.subr.bf16.mxu0 %v14760_v1  ;;  %11631 = vmatprep.subr.bf16.mxu1 %v14760_v1  ;;  %v1966_v6 = vrot.slane %v11229_v48, %v11813_v31  ;;  %v11867_v8 = vrot.slane %v3613_v63, %v11813_v31  ;;  %v1990_v9 = vcombine.high %v11230_v55, %v11231_v56  ;;  %v3177_v19 = vunpack.i.h.s16 %v1928_v62  ;;  %v11152_v63 = vld.sshfl [vmem:[%s11790_s27 + $0x60] sm:$0xff pattern:$0x75316420]  ;;  %v11159_v56 = vld.sshfl [vmem:[%s11790_s27 + $0x98] sm:$0xff pattern:$0x75316420] }
  0x1f   : > { %v1991_v10 = vcombine.high %v11856_v60, %v11856_v60  ;;  %v11873_v11 = vrot.slane %v11856_v60, %v11813_v31  ;;  %v11879_v13 = vrot.slane %v3617_v4, %v11813_v31  ;;  %v11882_v15 = vrot.slane %v1989_v7, %v11813_v31 }
  0x20   : > { %v1967_v14 = vcombine.low %v1959_v5, %v1966_v6  ;;  %v11887_v17 = vrot.slane %v1990_v9, %v11813_v31  ;;  %v3175_v18 = vunpack.i.h.s16 %v1929_v0  ;;  %v3179_v20 = vunpack.i.h.s16 %v1930_v2 }
  0x21   : > { %6420 = vmatpush1.bf16.msra.mxu0 %v11675_v12  ;;  %11647 = vmatpush1.bf16.msra.mxu1 %v11675_v12  ;;  %14903 = vst [vmem:[#allocation2_spill] sm:$0xff] %v11873_v11  ;;  %v11679_v12 = vld [vmem:[%s14756_s1 + $0x70] sm:$0xff]   ;;  %14904 = vst [vmem:[#allocation3_spill] sm:$0xff] %v11882_v15  ;;  %v3679_v22 = vcombine.low %v11867_v8, %v11879_v13  ;;  %v2021_v23 = vcombine.high %v11882_v15, %v11873_v11 }
  0x22   : > { %6421 = vmatprep.subr.bf16.mxu0 %v14760_v1  ;;  %11632 = vmatprep.subr.bf16.mxu1 %v14760_v1  ;;  %14905 = vst [vmem:[#allocation4_spill] sm:$0xff] %v11887_v17  ;;  %v11894_v24 = vpack.i.b16 %v1927_v61, %v3171_v3  ;;  %v11896_v25 = vpack.i.b16 %v1929_v0, %v3173_v16  ;;  %v11153_v0 = vld.sshfl [vmem:[%s11790_s27 + $0x68] sm:$0xff pattern:$0x75316420] }
  0x23   : > { %v11900_v28 = vpack.i.b16 %v1928_v62, %v3175_v18  ;;  %v11902_v29 = vpack.i.b16 %v1930_v2, %v3177_v19  ;;  %v11904_v30 = vpack.i.b16 %v1967_v14, %v3179_v20  ;;  %v3612_v32 = vcombine.low %v11840_v52, %v11843_v53  ;;  %6441 = vmatprep.mubr.bf16.mxu0 %v3679_v22  ;;  %v11154_v16 = vld.sshfl [vmem:[%s11790_s27 + $0x70] sm:$0xff pattern:$0x75316420] }
  0x24   : > { %14906 = vst [vmem:[#allocation5_spill] sm:$0xff] %v11894_v24  ;;  %14907 = vst [vmem:[#allocation6_spill] sm:$0xff] %v11896_v25  ;;  %v4888_v35 = vcombine.low %v11894_v24, %v11896_v25  ;;  %v11407_v36 = vcombine.low %v11887_v17, %v2021_v23  ;;  %v3616_v37 = vcombine.low %v11846_v54, %v3604_v59  ;;  %v11681_v54 = vld [vmem:[%s14756_s1 + $0x60] sm:$0xff]  }
  0x25   : > { %6422 = vmatpush1.bf16.msra.mxu0 %v11676_v21  ;;  %11648 = vmatpush1.bf16.msra.mxu1 %v11676_v21  ;;  %v11146_v21 = vld.sshfl [vmem:[%s11790_s27 + $0x30] sm:$0x5 pattern:$0x75316420]  ;;  %14908 = vst [vmem:[#allocation7_spill] sm:$0xff] %v11900_v28  ;;  %14909 = vst [vmem:[#allocation8_spill] sm:$0xff] %v11902_v29  ;;  %v4890_v39 = vcombine.low %v11900_v28, %v11902_v29  ;;  %v11924_v43 = vrot.slane %v3612_v32, %v11813_v31 }
  0x26   : > { %6423 = vmatprep.subr.bf16.mxu0 %v14760_v1  ;;  %11633 = vmatprep.subr.bf16.mxu1 %v14760_v1  ;;  %14910 = vst [vmem:[#allocation9_spill] sm:$0xff] %v11904_v30  ;;  %v4902_v44 = vrot.slane %v4888_v35, %v11813_v31  ;;  %v4944_v45 = vrot.slane %v11407_v36, %v11813_v31  ;;  %v11249_v29 = vld.sshfl [vmem:[%s11790_s27 + $0x368] sm:$0xff pattern:$0x75316420] }
  0x27   : > { %v11929_v46 = vrot.slane %v3616_v37, %v11813_v31  ;;  %v611_v47 = vcombine.low %v11146_v21, %v11147_v26  ;;  %v4916_v48 = vrot.slane %v4890_v39, %v11813_v31  ;;  %v625_v52 = vrot.slane %v11148_v33, %v11813_v31  ;;  %v11683_v37 = vld [vmem:[%s14756_s1 + $0x50] sm:$0xff]  }
  0x28   : > { %v648_v53 = vcombine.low %v11149_v27, %v11150_v38  ;;  %v649_v3 = vcombine.high %v11149_v27, %v11150_v38  ;;  %v650_v4 = vcombine.high %v11151_v51, %v11151_v51  ;;  %v671_v19 = vrot.slane %v11151_v51, %v11813_v31  ;;  %v11166_v25 = vld.sshfl [vmem:[%s11790_s27 + $0xd0] sm:$0x5 pattern:$0x75316420] }
  0x29   : > { %6424 = vmatpush1.bf16.msra.mxu0 %v11677_v40  ;;  %11649 = vmatpush1.bf16.msra.mxu1 %v11677_v40  ;;  %v11406_v40 = vcombine.low %v11904_v30, %v11882_v15  ;;  %v3676_v55 = vcombine.low %v11924_v43, %v11929_v46  ;;  %v618_v57 = vrot.slane %v611_v47, %v11813_v31 }
  0x2a   : > { %6425 = vmatprep.subr.bf16.mxu0 %v14760_v1  ;;  %11634 = vmatprep.subr.bf16.mxu1 %v14760_v1  ;;  %v4952_v61 = vcombine.low %v4902_v44, %v4916_v48  ;;  %v657_v9 = vrot.slane %v648_v53, %v11813_v31  ;;  %v664_v18 = vrot.slane %v649_v3, %v11813_v31 }
  0x2b   : > { %v4930_v50 = vrot.slane %v11406_v40, %v11813_v31  ;;  %v626_v2 = vcombine.low %v618_v57, %v625_v52  ;;  %v678_v21 = vrot.slane %v650_v4, %v11813_v31  ;;  %v704_v22 = vcombine.low %v11152_v63, %v11153_v0 }
  0x2c   : > { %v11954_v7 = vrot.slane %v4952_v61, %v11813_v31  ;;  %v679_v26 = vcombine.low %v657_v9, %v671_v19  ;;  %v680_v27 = vcombine.high %v657_v9, %v671_v19  ;;  %v705_v32 = vcombine.high %v11152_v63, %v11153_v0  ;;  %v11684_v0 = vld [vmem:[%s14756_s1 + $0x48] sm:$0xff]  }
  0x2d   : > { %6426 = vmatpush2.bf16.msra.mxu0 %v11678_v58  ;;  %11650 = vmatpush2.bf16.msra.mxu1 %v11678_v58  ;;  %v4953_v58 = vcombine.high %v4902_v44, %v4916_v48  ;;  %v4957_v59 = vcombine.high %v4930_v50, %v4944_v45  ;;  %v4956_v62 = vcombine.low %v4930_v50, %v4944_v45  ;;  %v11233_v45 = vld.sshfl [vmem:[%s11790_s27 + $0x2e8] sm:$0xff pattern:$0x75316420] }
  0x2e   : > { %6427 = vmatprep.subr.bf16.mxu0 %v14760_v1  ;;  %11635 = vmatprep.subr.bf16.mxu1 %v14760_v1  ;;  %14913 = vst [vmem:[#allocation12_spill] sm:$0xff] %v11954_v7  ;;  %v681_v33 = vcombine.low %v664_v18, %v678_v21  ;;  %v706_v35 = vcombine.high %v11154_v16, %v11154_v16  ;;  %v3029_v40 = vunpack.i.h.s16 %v679_v26  ;;  %v3033_v44 = vunpack.i.h.s16 %v680_v27 }
  0x2f   : > { %v11948_v5 = vrot.slane %v4953_v58, %v11813_v31  ;;  %v11951_v6 = vrot.slane %v4957_v59, %v11813_v31  ;;  %v11961_v14 = vrot.slane %v4956_v62, %v11813_v31  ;;  %v713_v36 = vrot.slane %v704_v22, %v11813_v31  ;;  %v11234_v58 = vld.sshfl [vmem:[%s11790_s27 + $0x2f0] sm:$0xff pattern:$0x75316420] }
  0x30   : > { %v720_v38 = vrot.slane %v705_v32, %v11813_v31  ;;  %v727_v39 = vrot.slane %v11154_v16, %v11813_v31  ;;  %v734_v47 = vrot.slane %v706_v35, %v11813_v31  ;;  %v3031_v48 = vunpack.i.h.s16 %v681_v33  ;;  %v11236_v16 = vld.sshfl [vmem:[%s11790_s27 + $0x300] sm:$0x5 pattern:$0x75316420] }
  0x31   : > { %6428 = vmatpush2.bf16.msra.mxu0 %v11679_v12  ;;  %11651 = vmatpush2.bf16.msra.mxu1 %v11679_v12  ;;  %14911 = vst [vmem:[#allocation10_spill] sm:$0xff] %v11948_v5  ;;  %14912 = vst [vmem:[#allocation11_spill] sm:$0xff] %v11951_v6  ;;  %v11682_v12 = vld [vmem:[%s14756_s1 + $0x58] sm:$0xff]   ;;  %v5019_v20 = vcombine.low %v11948_v5, %v11951_v6  ;;  %v5016_v23 = vcombine.low %v11954_v7, %v11961_v14  ;;  %v11685_v32 = vld [vmem:[%s14756_s1 + $0x40] sm:$0xff]  }
  0x32   : > { %6429 = vmatprep.subr.bf16.mxu0 %v14760_v1  ;;  %11636 = vmatprep.subr.bf16.mxu1 %v14760_v1  ;;  %14914 = vst [vmem:[#allocation13_spill] sm:$0xff] %v11961_v14  ;;  %v11983_v51 = vpack.i.b16 %v679_v26, %v626_v2  ;;  %v735_v52 = vcombine.low %v713_v36, %v727_v39  ;;  %v11237_v26 = vld.sshfl [vmem:[%s11790_s27 + $0x308] sm:$0x5 pattern:$0x75316420] }
  0x33   : > { %6521 = vmatprep.mubr.bf16.mxu1 %v5019_v20  ;;  %v736_v53 = vcombine.high %v713_v36, %v727_v39  ;;  %v737_v59 = vcombine.low %v720_v38, %v734_v47  ;;  %v11990_v61 = vcombine.high %v720_v38, %v734_v47  ;;  %v11992_v62 = vpack.i.b16 %v680_v27, %v3031_v48  ;;  %v11238_v35 = vld.sshfl [vmem:[%s11790_s27 + $0x310] sm:$0x5 pattern:$0x75316420] }
  0x34   : > { %v11998_v63 = vrot.slane %v1991_v10, %v11813_v31  ;;  %v3037_v2 = vunpack.i.h.s16 %v735_v52  ;;  %v2045_v19 = vcombine.low %v11233_v45, %v11234_v58  ;;  %v2046_v27 = vcombine.high %v11233_v45, %v11234_v58  ;;  %v11239_v39 = vld.sshfl [vmem:[%s11790_s27 + $0x318] sm:$0xff pattern:$0x75316420] }
  0x35   : > { %6430 = vmatpush2.bf16.msra.mxu0 %v11680_v34  ;;  %11652 = vmatpush2.bf16.msra.mxu1 %v11680_v34  ;;  %v682_v34 = vcombine.high %v664_v18, %v678_v21  ;;  %v3041_v3 = vunpack.i.h.s16 %v736_v53  ;;  %v3039_v60 = vunpack.i.h.s16 %v737_v59 }
  0x36   : > { %6431 = vmatprep.subr.bf16.mxu0 %v14760_v1  ;;  %11637 = vmatprep.subr.bf16.mxu1 %v14760_v1  ;;  %14915 = vst [vmem:[#allocation14_spill] sm:$0xff] %v11998_v63  ;;  %v2023_v18 = vcombine.high %v11887_v17, %v11998_v63  ;;  %v12015_v20 = vpack.i.b16 %v737_v59, %v3037_v2  ;;  %v11698_v17 = vld [vmem:[%s14756_s1 + $0x108] sm:$0xff]  }
  0x37   : > { %v3035_v50 = vunpack.i.h.s16 %v682_v34  ;;  %v11987_v57 = vpack.i.b16 %v682_v34, %v3033_v44  ;;  %v12018_v21 = vpack.i.b16 %v11990_v61, %v3041_v3  ;;  %v12041_v44 = vrot.slane %v2046_v27, %v11813_v31 }
  0x38   : > { %v2101_v59 = vcombine.low %v11236_v16, %v11237_v26  ;;  %v11688_v26 = vld [vmem:[%s14756_s1 + $0xb8] sm:$0xff]  }
  0x39   : > { %6432 = vmatpush2.bf16.msra.mxu0 %v11681_v54  ;;  %11653 = vmatpush2.bf16.msra.mxu1 %v11681_v54  ;;  %v11985_v54 = vpack.i.b16 %v681_v33, %v3029_v40  ;;  %v12003_v4 = vpack.i.b16 %v735_v52, %v3035_v50  ;;  %v3684_v10 = vcombine.low %v11992_v62, %v11987_v57  ;;  %v11240_v40 = vld.sshfl [vmem:[%s11790_s27 + $0x320] sm:$0xff pattern:$0x75316420]  ;;  %v11241_v50 = vld.sshfl [vmem:[%s11790_s27 + $0x328] sm:$0xff pattern:$0x75316420] }
  0x3a   : > { %6433 = vmatprep.subr.bf16.mxu0 %v14760_v1  ;;  %11638 = vmatprep.subr.bf16.mxu1 %v14760_v1  ;;  %v12027_v33 = vpack.i.b16 %v736_v53, %v3039_v60  ;;  %14917 = vst [vmem:[#allocation16_spill] sm:$0xff] %v12041_v44  ;;  %v11686_v60 = vld [vmem:[%s14756_s1 + $0x138] sm:$0xff]   ;;  %v2139_v16 = vcombine.high %v11239_v39, %v11240_v40 }
  0x3b   : > { %v3682_v9 = vcombine.low %v11983_v51, %v11985_v54  ;;  %v12030_v34 = vrot.slane %v3684_v10, %v11813_v31  ;;  %v3686_v38 = vcombine.low %v12003_v4, %v12015_v20  ;;  %v2108_v10 = vrot.slane %v2101_v59, %v11813_v31 }
  0x3c   : > { %v3688_v47 = vcombine.low %v12027_v33, %v12018_v21 }
  0x3d   : > { %6434 = vmatpush2.bf16.msra.mxu0 %v11682_v12  ;;  %11654 = vmatpush2.bf16.msra.mxu1 %v11682_v12  ;;  %v11235_v12 = vld.sshfl [vmem:[%s11790_s27 + $0x2f8] sm:$0xff pattern:$0x75316420]  ;;  %v12021_v22 = vrot.slane %v3682_v9, %v11813_v31  ;;  %v3724_v53 = vrot.slane %v3686_v38, %v11813_v31  ;;  %v12078_v38 = vrot.slane %v2139_v16, %v11813_v31  ;;  %v3043_v16 = vunpack.i.h.s16 %v11990_v61 }
  0x3e   : > { %6435 = vmatprep.subr.bf16.mxu0 %v14760_v1  ;;  %11639 = vmatprep.subr.bf16.mxu1 %v14760_v1  ;;  %v2047_v36 = vcombine.high %v11235_v12, %v11235_v12  ;;  %v12044_v45 = vrot.slane %v11235_v12, %v11813_v31  ;;  %v3738_v2 = vrot.slane %v3688_v47, %v11813_v31  ;;  %v11155_v47 = vld.sshfl [vmem:[%s11790_s27 + $0x78] sm:$0x5 pattern:$0x75316420] }
  0x3f   : > { %v3747_v48 = vcombine.high %v12021_v22, %v12030_v34  ;;  %v2138_v12 = vcombine.low %v11239_v39, %v11240_v40 }
  0x40   : > { %14918 = vst [vmem:[#allocation17_spill] sm:$0xff] %v12044_v45  ;;  %v12054_v52 = vrot.slane %v2047_v36, %v11813_v31  ;;  %v3751_v27 = vcombine.high %v3724_v53, %v3738_v2 }
  0x41   : > { %6436 = vmatpush2.bf16.msra.mxu0 %v11683_v37  ;;  %11655 = vmatpush2.bf16.msra.mxu1 %v11683_v37  ;;  %v12034_v37 = vrot.slane %v2045_v19, %v11813_v31  ;;  %v12062_v3 = vrot.slane %v3747_v48, %v11813_v31  ;;  %v2140_v19 = vcombine.high %v11241_v50, %v11241_v50 }
  0x42   : > { %6437 = vmatprep.subr.bf16.mxu0 %v14760_v1  ;;  %11640 = vmatprep.subr.bf16.mxu1 %v14760_v1  ;;  %14919 = vst [vmem:[#allocation18_spill] sm:$0xff] %v12054_v52  ;;  %v2079_v9 = vcombine.high %v12041_v44, %v12054_v52  ;;  %v12092_v48 = vrot.slane %v3751_v27, %v11813_v31 }
  0x43   : > { %14916 = vst [vmem:[#allocation15_spill] sm:$0xff] %v12034_v37  ;;  %v2077_v58 = vcombine.high %v12034_v37, %v12044_v45  ;;  %v12081_v39 = vrot.slane %v2140_v19, %v11813_v31  ;;  %v11409_v40 = vcombine.low %v2023_v18, %v12034_v37  ;;  %v11687_v18 = vld [vmem:[%s14756_s1 + $0x130] sm:$0xff]  }
  0x44   : > { %v11246_v45 = vld.sshfl [vmem:[%s11790_s27 + $0x350] sm:$0x5 pattern:$0x75316420] }
  0x45   : > { %6438 = vmatpush2.bf16.msra.mxu0 %v11684_v0  ;;  %11656 = vmatpush2.bf16.msra.mxu1 %v11684_v0  ;;  %v2115_v0 = vrot.slane %v11238_v35, %v11813_v31  ;;  %v2161_v35 = vrot.slane %v11241_v50, %v11813_v31 }
  0x46   : > { %6439 = vmatprep.subr.bf16.mxu0 %v14760_v1  ;;  %11641 = vmatprep.subr.bf16.mxu1 %v14760_v1 }
  0x47   : > { %v2116_v36 = vcombine.low %v2108_v10, %v2115_v0  ;;  %v11156_v0 = vld.sshfl [vmem:[%s11790_s27 + $0x80] sm:$0x5 pattern:$0x75316420] }
  0x48   : > { %v11157_v10 = vld.sshfl [vmem:[%s11790_s27 + $0x88] sm:$0x5 pattern:$0x75316420]  ;;  %v760_v7 = vcombine.low %v11155_v47, %v11156_v0 }
  0x49   : > { %6440 = vmatpush2.bf16.msra.mxu0 %v11685_v32  ;;  %11657 = vmatpush2.bf16.msra.mxu1 %v11685_v32  ;;  %v2147_v32 = vrot.slane %v2138_v12, %v11813_v31  ;;  %v2171_v12 = vcombine.low %v12078_v38, %v12081_v39  ;;  %v11160_v47 = vld.sshfl [vmem:[%s11790_s27 + $0xa0] sm:$0xff pattern:$0x75316420]  ;;  %v11161_v0 = vld.sshfl [vmem:[%s11790_s27 + $0xa8] sm:$0xff pattern:$0x75316420] }
  0x4a   : > { %6777 = vmatprep.subr.bf16.mxu0 %v14760_v1  ;;  %6593 = vmatprep.subr.bf16.mxu1 %v14760_v1 }
  0x4b   : > { %v2169_v50 = vcombine.low %v2147_v32, %v2161_v35  ;;  %v12094_v59 = vcombine.high %v2147_v32, %v2161_v35  ;;  %v3746_v32 = vcombine.low %v12021_v22, %v12030_v34  ;;  %v3750_v35 = vcombine.low %v3724_v53, %v3738_v2 }
  0x4c   : > { %6442 = vmatmul.mubr.bf16.vlgmr.msra.gmra.mxu0 %v3676_v55  ;;  %6522 = vmatmul.mubr.bf16.vlgmr.msra.gmra.mxu1 %v5016_v23  ;;  %v11411_v55 = vcombine.low %v12041_v44, %v2077_v58  ;;  %v5036_v23 = vrot.slane %v11409_v40, %v11813_v31  ;;  %v11690_v58 = vld [vmem:[%s14756_s1 + $0xb0] sm:$0xff]  }
  0x4d   : > { %6778 = vmatpush1.bf16.msra.mxu0 %v11686_v60  ;;  %6594 = vmatpush1.bf16.msra.mxu1 %v11688_v26  ;;  %v3813_v60 = vcombine.low %v12062_v3, %v12092_v48  ;;  %v3199_v19 = vunpack.i.h.s16 %v2169_v50  ;;  %v12109_v27 = vpack.i.b16 %v2169_v50, %v2116_v36  ;;  %v3201_v26 = vunpack.i.h.s16 %v2171_v12  ;;  %v11158_v40 = vld.sshfl [vmem:[%s11790_s27 + $0x90] sm:$0xff pattern:$0x75316420] }
  0x4e   : > { %6779 = vmatprep.subr.bf16.mxu0 %v14760_v1  ;;  %6595 = vmatprep.subr.bf16.mxu1 %v14760_v1  ;;  %v5050_v61 = vrot.slane %v11411_v55, %v11813_v31  ;;  %v12124_v34 = vrot.slane %v3746_v32, %v11813_v31  ;;  %v774_v50 = vrot.slane %v11157_v10, %v11813_v31  ;;  %v11689_v10 = vld [vmem:[%s14756_s1 + $0x128] sm:$0xff]   ;;  %v11242_v44 = vld.sshfl [vmem:[%s11790_s27 + $0x330] sm:$0xff pattern:$0x75316420]  ;;  %v14932_v24 = vunpack.i.h.s16 %v12094_v59 }
  0x4f   : > { %14920 = vst [vmem:[#allocation19_spill] sm:$0xff] %v12109_v27  ;;  %6449 = vmatprep.mubr.bf16.mxu0 %v3813_v60  ;;  %v12120_v36 = vpack.i.b16 %v2171_v12, %v3199_v19  ;;  %v5026_v22 = vcombine.low %v2079_v9, %v12109_v27  ;;  %v12128_v1 = vpack.i.b16 %v12094_v59, %v3201_v26  ;;  %v14923_v9 = vmov 0  }
  0x50   : > { %v5087_v55 = vcombine.high %v5036_v23, %v5050_v61  ;;  %v12131_v53 = vrot.slane %v3750_v35, %v11813_v31  ;;  %v5086_v2 = vcombine.low %v5036_v23, %v5050_v61  ;;  %v767_v60 = vrot.slane %v760_v7, %v11813_v31 }
  0x51   : > { %14921 = vst [vmem:[#allocation20_spill] sm:$0xff] %v12120_v36  ;;  %6780 = vmatpush1.bf16.msra.mxu0 %v11687_v18  ;;  %14922 = vst [vmem:[#allocation21_spill] sm:$0xff] %v12128_v1  ;;  %v5064_v12 = vrot.slane %v5026_v22, %v11813_v31  ;;  %6596 = vmatpush1.bf16.msra.mxu1 %v11690_v58  ;;  %v11162_v18 = vld.sshfl [vmem:[%s11790_s27 + $0xb0] sm:$0xff pattern:$0x75316420]  ;;  %v797_v19 = vcombine.low %v11158_v40, %v11159_v56 }
  0x52   : > { %6781 = vmatprep.subr.bf16.mxu0 %v14923_v9  ;;  %v5028_v23 = vcombine.low %v12120_v36, %v12128_v1  ;;  %v12146_v26 = vrot.slane %v5087_v55, %v11813_v31  ;;  %v3810_v61 = vcombine.low %v12124_v34, %v12131_v53  ;;  %v12151_v35 = vrot.slane %v5086_v2, %v11813_v31  ;;  %v12154_v58 = vld.sshfl [vmem:[%s11790_s27 + $0xb8] sm:$0xff pattern:$0x75316420]  ;;  %v11691_v55 = vld [vmem:[%s14756_s1 + $0xa8] sm:$0xff]  }
  0x53   : > { %6597 = vmatprep.subr.bf16.mxu1 %v14923_v9  ;;  %v775_v7 = vcombine.low %v767_v60, %v774_v50  ;;  %v798_v22 = vcombine.high %v11158_v40, %v11159_v56  ;;  %v799_v32 = vcombine.high %v11160_v47, %v11160_v47  ;;  %v12158_v14 = vrot.slane %v797_v19, %v11813_v31 }
  0x54   : > { %14924 = vst [vmem:[#allocation22_spill] sm:$0xff] %v12146_v26  ;;  %14925 = vst [vmem:[#allocation23_spill] sm:$0xff] %v12151_v35  ;;  %v5078_v36 = vrot.slane %v5028_v23, %v11813_v31  ;;  %6450 = vmatmul.mubr.bf16.gmra.mxu0 %v3810_v61  ;;  %v12165_v2 = vrot.slane %v11160_v47, %v11813_v31  ;;  %v853_v1 = vcombine.low %v11161_v0, %v11162_v18  ;;  %v11692_v47 = vld [vmem:[%s14756_s1 + $0x120] sm:$0xff]  }
  0x55   : > { %v854_v27 = vcombine.high %v11161_v0, %v11162_v18  ;;  %6782 = vmatpush1.bf16.msra.mxu0 %v11689_v10  ;;  %v12169_v56 = vrot.slane %v798_v22, %v11813_v31  ;;  %v12172_v40 = vrot.slane %v799_v32, %v11813_v31  ;;  %v12176_v50 = vrot.slane %v12154_v58, %v11813_v31  ;;  %v11243_v32 = vld.sshfl [vmem:[%s11790_s27 + $0x338] sm:$0xff pattern:$0x75316420] }
  0x56   : > { %v12178_v60 = vpack.i.b16 %v775_v7, %v3043_v16  ;;  %v5091_v0 = vcombine.high %v5064_v12, %v5078_v36  ;;  %v5090_v18 = vcombine.low %v5064_v12, %v5078_v36  ;;  %v829_v10 = vcombine.high %v12158_v14, %v12165_v2  ;;  %6783 = vmatprep.subr.bf16.mxu0 %v14923_v9  ;;  %v11244_v12 = vld.sshfl [vmem:[%s11790_s27 + $0x340] sm:$0xff pattern:$0x75316420] }
  0x57   : > { %14926 = vst [vmem:[#allocation24_spill] sm:$0xff] %v12176_v50  ;;  %v12186_v19 = vrot.slane %v853_v1, %v11813_v31  ;;  %v831_v16 = vcombine.high %v12169_v56, %v12172_v40  ;;  %v12193_v23 = vrot.slane %v854_v27, %v11813_v31  ;;  %v11245_v61 = vld.sshfl [vmem:[%s11790_s27 + $0x348] sm:$0x5 pattern:$0x75316420]  ;;  %v12201_v1 = vcombine.high %v12078_v38, %v12081_v39  ;;  %v11693_v7 = vld [vmem:[%s14756_s1 + $0xa0] sm:$0xff]  }
  0x58   : > { %14927 = vst [vmem:[#allocation25_spill] sm:$0xff] %v12178_v60  ;;  %v11374_v36 = vcombine.low %v12178_v60, %v12158_v14  ;;  %6598 = vmatpush1.bf16.msra.mxu1 %v11691_v55  ;;  %v12207_v22 = vrot.slane %v5091_v0, %v11813_v31  ;;  %v12210_v27 = vrot.slane %v5090_v18, %v11813_v31  ;;  %v11248_v38 = vld.sshfl [vmem:[%s11790_s27 + $0x360] sm:$0xff pattern:$0x75316420] }
  0x59   : > { %14928 = vst [vmem:[#allocation26_spill] sm:$0xff] %v12186_v19  ;;  %14929 = vst [vmem:[#allocation27_spill] sm:$0xff] %v12193_v23  ;;  %v885_v52 = vcombine.high %v12186_v19, %v12176_v50  ;;  %v11375_v37 = vcombine.low %v12169_v56, %v829_v10  ;;  %6599 = vmatprep.subr.bf16.mxu1 %v14923_v9  ;;  %v11377_v39 = vcombine.low %v831_v16, %v12186_v19  ;;  %v11247_v0 = vld.sshfl [vmem:[%s11790_s27 + $0x358] sm:$0x5 pattern:$0x75316420] }
  0x5a   : > { %14930 = vst [vmem:[#allocation28_spill] sm:$0xff] %v12207_v22  ;;  %14931 = vst [vmem:[#allocation29_spill] sm:$0xff] %v12210_v27  ;;  %v12220_v55 = vrot.slane %v11374_v36, %v11813_v31  ;;  %v2194_v5 = vcombine.low %v11242_v44, %v11243_v32  ;;  %v2195_v6 = vcombine.high %v11242_v44, %v11243_v32  ;;  %6784 = vmatpush1.bf16.msra.mxu0 %v11692_v47  ;;  %v11694_v16 = vld [vmem:[%s14756_s1 + $0x118] sm:$0xff]   ;;  %v11180_v19 = vld.sshfl [vmem:[%s11790_s27 + $0x140] sm:$0xff pattern:$0x75316420] }
  0x5b   : > { %v5153_v18 = vcombine.low %v12146_v26, %v12207_v22  ;;  %v5150_v30 = vcombine.low %v12151_v35, %v12210_v27  ;;  %v11379_v10 = vcombine.low %v12193_v23, %v885_v52  ;;  %v12229_v28 = vrot.slane %v11375_v37, %v11813_v31  ;;  %6785 = vmatprep.subr.bf16.mxu0 %v14923_v9  ;;  %v11165_v22 = vld.sshfl [vmem:[%s11790_s27 + $0xc8] sm:$0x5 pattern:$0x75316420] }
  0x5c   : > { %v12237_v44 = vrot.slane %v11377_v39, %v11813_v31  ;;  %v2196_v47 = vcombine.high %v11244_v12, %v11244_v12  ;;  %v2203_v32 = vrot.slane %v2194_v5, %v11813_v31  ;;  %v2210_v36 = vrot.slane %v2195_v6, %v11813_v31  ;;  %6600 = vmatpush1.bf16.msra.mxu1 %v11693_v7  ;;  %v11695_v39 = vld [vmem:[%s14756_s1 + $0x98] sm:$0xff]  }
  0x5d   : > { %6529 = vmatprep.mubr.bf16.mxu1 %v5153_v18  ;;  %v12242_v37 = vrot.slane %v11379_v10, %v11813_v31  ;;  %v3881_v52 = vcombine.high %v12220_v55, %v12229_v28  ;;  %v2217_v35 = vrot.slane %v11244_v12, %v11813_v31  ;;  %v2250_v27 = vcombine.low %v11245_v61, %v11246_v45 }
  0x5e   : > { %6530 = vmatmul.mubr.bf16.gmra.mxu1 %v5150_v30  ;;  %v2224_v5 = vrot.slane %v2196_v47, %v11813_v31  ;;  %v2264_v6 = vrot.slane %v11247_v0, %v11813_v31  ;;  %v2287_v7 = vcombine.low %v11248_v38, %v11249_v29  ;;  %v2288_v18 = vcombine.high %v11248_v38, %v11249_v29  ;;  %v11696_v30 = vld [vmem:[%s14756_s1 + $0x110] sm:$0xff]  }
  0x5f   : > { %v3885_v10 = vcombine.high %v12237_v44, %v12242_v37  ;;  %v12255_v26 = vrot.slane %v3881_v52, %v11813_v31  ;;  %v2225_v12 = vcombine.low %v2203_v32, %v2217_v35  ;;  %v2226_v45 = vcombine.high %v2203_v32, %v2217_v35  ;;  %6786 = vmatpush1.bf16.msra.mxu0 %v11694_v16  ;;  %v11164_v52 = vld.sshfl [vmem:[%s11790_s27 + $0xc0] sm:$0x5 pattern:$0x75316420] }
  0x60   : > { %v2227_v61 = vcombine.low %v2210_v36, %v2224_v5  ;;  %v2228_v47 = vcombine.high %v2210_v36, %v2224_v5  ;;  %v2257_v0 = vrot.slane %v2250_v27, %v11813_v31  ;;  %v12262_v29 = vrot.slane %v2287_v7, %v11813_v31  ;;  %6601 = vmatprep.subr.bf16.mxu1 %v14923_v9 }
  0x61   : > { %v12266_v38 = vrot.slane %v3885_v10, %v11813_v31  ;;  %v12269_v35 = vrot.slane %v2288_v18, %v11813_v31  ;;  %v3205_v16 = vunpack.i.h.s16 %v12201_v1  ;;  %v3207_v32 = vunpack.i.h.s16 %v2225_v12  ;;  %6602 = vmatpush1.bf16.msra.mxu1 %v11695_v39  ;;  %6787 = vmatprep.subr.bf16.mxu0 %v14923_v9  ;;  %v11697_v18 = vld [vmem:[%s14756_s1 + $0x90] sm:$0xff]  }
  0x62   : > { %v2265_v27 = vcombine.low %v2257_v0, %v2264_v6  ;;  %v3209_v36 = vunpack.i.h.s16 %v2227_v61  ;;  %v3211_v5 = vunpack.i.h.s16 %v2226_v45  ;;  %v3213_v7 = vunpack.i.h.s16 %v2228_v47  ;;  %6603 = vmatprep.subr.bf16.mxu1 %v14923_v9 }
  0x63   : > { %v3947_v10 = vcombine.low %v12255_v26, %v12266_v38  ;;  %v12284_v39 = vpack.i.b16 %v12201_v1, %v14932_v24  ;;  %v12286_v6 = vpack.i.b16 %v2225_v12, %v3205_v16  ;;  %v12288_v0 = vpack.i.b16 %v2227_v61, %v3207_v32  ;;  %6788 = vmatpush1.bf16.msra.mxu0 %v11696_v30  ;;  %v11167_v30 = vld.sshfl [vmem:[%s11790_s27 + $0xd8] sm:$0xff pattern:$0x75316420] }
  0x64   : > { %v12294_v63 = vpack.i.b16 %v2226_v45, %v3209_v36  ;;  %v12296_v15 = vpack.i.b16 %v2228_v47, %v3211_v5  ;;  %v12298_v59 = vpack.i.b16 %v2265_v27, %v3213_v7  ;;  %v11414_v24 = vcombine.low %v12262_v29, %v12269_v35  ;;  %6789 = vmatprep.subr.bf16.mxu0 %v14923_v9  ;;  %v11168_v27 = vld.sshfl [vmem:[%s11790_s27 + $0xe0] sm:$0xff pattern:$0x75316420] }
  0x65   : > { %14933 = vst [vmem:[#allocation30_spill] sm:$0xff] %v12284_v39  ;;  %14934 = vst [vmem:[#allocation31_spill] sm:$0xff] %v12286_v6  ;;  %6457 = vmatprep.mubr.bf16.mxu0 %v3947_v10  ;;  %v5156_v1 = vcombine.low %v12284_v39, %v12286_v6  ;;  %v3880_v12 = vcombine.low %v12220_v55, %v12229_v28  ;;  %v3884_v45 = vcombine.low %v12237_v44, %v12242_v37  ;;  %v11699_v28 = vld [vmem:[%s14756_s1 + $0x88] sm:$0xff]  }
  0x66   : > { %14935 = vst [vmem:[#allocation32_spill] sm:$0xff] %v12288_v0  ;;  %14936 = vst [vmem:[#allocation33_spill] sm:$0xff] %v12294_v63  ;;  %v855_v61 = vcombine.high %v12154_v58, %v12154_v58  ;;  %v5158_v47 = vcombine.low %v12288_v0, %v12294_v63  ;;  %v5160_v16 = vcombine.low %v12296_v15, %v12298_v59  ;;  %6604 = vmatpush1.bf16.msra.mxu1 %v11697_v18 }
  0x67   : > { %14937 = vst [vmem:[#allocation34_spill] sm:$0xff] %v12296_v15  ;;  %14938 = vst [vmem:[#allocation35_spill] sm:$0xff] %v12298_v59  ;;  %v5212_v32 = vrot.slane %v11414_v24, %v11813_v31  ;;  %v909_v36 = vcombine.low %v11164_v52, %v11165_v22  ;;  %v5170_v55 = vrot.slane %v5156_v1, %v11813_v31  ;;  %6790 = vmatpush1.bf16.msra.mxu0 %v11698_v17  ;;  %v11169_v52 = vld.sshfl [vmem:[%s11790_s27 + $0xe8] sm:$0xff pattern:$0x75316420]  ;;  %v11701_v15 = vld [vmem:[%s14756_s1 + $0x80] sm:$0xff]  }
  0x68   : > { %v12323_v58 = vrot.slane %v3880_v12, %v11813_v31  ;;  %v12326_v44 = vrot.slane %v3884_v45, %v11813_v31  ;;  %v12329_v37 = vrot.slane %v855_v61, %v11813_v31  ;;  %v5184_v5 = vrot.slane %v5158_v47, %v11813_v31  ;;  %6605 = vmatprep.subr.bf16.mxu1 %v14923_v9  ;;  %v11170_v24 = vld.sshfl [vmem:[%s11790_s27 + $0xf0] sm:$0xff pattern:$0x75316420]  ;;  %v11700_v45 = vld [vmem:[%s14756_s1 + $0x100] sm:$0xff]  }
  0x69   : > { %v5198_v22 = vrot.slane %v5160_v16, %v11813_v31  ;;  %v916_v7 = vrot.slane %v909_v36, %v11813_v31  ;;  %v923_v18 = vrot.slane %v11166_v25, %v11813_v31  ;;  %v946_v1 = vcombine.low %v11167_v30, %v11168_v27  ;;  %6791 = vmatprep.subr.bf16.mxu0 %v14923_v9  ;;  %v11171_v36 = vld.sshfl [vmem:[%s11790_s27 + $0xf8] sm:$0xff pattern:$0x75316420] }
  0x6a   : > { %14939 = vst [vmem:[#allocation36_spill] sm:$0xff] %v12329_v37  ;;  %v3944_v10 = vcombine.low %v12323_v58, %v12326_v44  ;;  %v947_v12 = vcombine.high %v11167_v30, %v11168_v27  ;;  %v5221_v61 = vcombine.high %v5170_v55, %v5184_v5  ;;  %v5220_v47 = vcombine.low %v5170_v55, %v5184_v5  ;;  %v11172_v30 = vld.sshfl [vmem:[%s11790_s27 + $0x100] sm:$0xff pattern:$0x75316420] }
  0x6b   : > { %v5225_v25 = vcombine.high %v5198_v22, %v5212_v32  ;;  %v5224_v16 = vcombine.low %v5198_v22, %v5212_v32  ;;  %6606 = vmatpush1.bf16.msra.mxu1 %v11699_v28  ;;  %v924_v27 = vcombine.low %v916_v7, %v923_v18  ;;  %v948_v17 = vcombine.high %v11169_v52, %v11169_v52  ;;  %v11251_v5 = vld.sshfl [vmem:[%s11790_s27 + $0x378] sm:$0xff pattern:$0x75316420] }
  0x6c   : > { %6458 = vmatmul.mubr.bf16.gmra.mxu0 %v3944_v10  ;;  %v955_v59 = vrot.slane %v946_v1, %v11813_v31  ;;  %v962_v0 = vrot.slane %v947_v12, %v11813_v31  ;;  %v12354_v63 = vrot.slane %v5221_v61, %v11813_v31  ;;  %v12360_v28 = vrot.slane %v5220_v47, %v11813_v31  ;;  %v11252_v1 = vld.sshfl [vmem:[%s11790_s27 + $0x380] sm:$0xff pattern:$0x75316420] }
  0x6d   : > { %v12357_v32 = vrot.slane %v5225_v25, %v11813_v31  ;;  %v12363_v55 = vrot.slane %v5224_v16, %v11813_v31  ;;  %6607 = vmatprep.subr.bf16.mxu1 %v14923_v9  ;;  %v969_v22 = vrot.slane %v11169_v52, %v11813_v31  ;;  %v976_v7 = vrot.slane %v948_v17, %v11813_v31  ;;  %v11702_v52 = vld [vmem:[%s14756_s1 + $0xf8] sm:$0xff]  }
  0x6e   : > { %14940 = vst [vmem:[#allocation37_spill] sm:$0xff] %v12354_v63  ;;  %14942 = vst [vmem:[#allocation39_spill] sm:$0xff] %v12360_v28  ;;  %v1002_v18 = vcombine.low %v11170_v24, %v11171_v36  ;;  %v1003_v10 = vcombine.high %v11170_v24, %v11171_v36  ;;  %6792 = vmatpush1.bf16.msra.mxu0 %v11700_v45  ;;  %v1004_v25 = vcombine.high %v11172_v30, %v11172_v30  ;;  %v11703_v45 = vld [vmem:[%s14756_s1 + $0x178] sm:$0xff]  }
  0x6f   : > { %14941 = vst [vmem:[#allocation38_spill] sm:$0xff] %v12357_v32  ;;  %14943 = vst [vmem:[#allocation40_spill] sm:$0xff] %v12363_v55  ;;  %v5287_v12 = vcombine.low %v12354_v63, %v12357_v32  ;;  %v5284_v61 = vcombine.low %v12360_v28, %v12363_v55  ;;  %v1025_v47 = vrot.slane %v11172_v30, %v11813_v31  ;;  %6608 = vmatpush1.bf16.msra.mxu1 %v11701_v15  ;;  %v11254_v63 = vld.sshfl [vmem:[%s11790_s27 + $0x390] sm:$0x5 pattern:$0x75316420] }
  0x70   : > { %v977_v16 = vcombine.low %v955_v59, %v969_v22  ;;  %v978_v17 = vcombine.high %v955_v59, %v969_v22  ;;  %v979_v24 = vcombine.low %v962_v0, %v976_v7  ;;  %v980_v36 = vcombine.high %v962_v0, %v976_v7  ;;  %6609 = vmatprep.subr.bf16.mxu1 %v14923_v9 }
  0x71   : > { %6537 = vmatprep.mubr.bf16.mxu1 %v5287_v12  ;;  %v1011_v30 = vrot.slane %v1002_v18, %v11813_v31  ;;  %v12384_v15 = vrot.slane %v1003_v10, %v11813_v31  ;;  %v12387_v28 = vrot.slane %v1004_v25, %v11813_v31  ;;  %v2343_v55 = vcombine.low %v11251_v5, %v11252_v1  ;;  %v11255_v25 = vld.sshfl [vmem:[%s11790_s27 + $0x398] sm:$0x5 pattern:$0x75316420] }
  0x72   : > { %6538 = vmatmul.mubr.bf16.gmra.mxu1 %v5284_v61  ;;  %v3063_v59 = vunpack.i.h.s16 %v977_v16  ;;  %v3065_v0 = vunpack.i.h.s16 %v979_v24  ;;  %v3067_v22 = vunpack.i.h.s16 %v978_v17  ;;  %v3069_v7 = vunpack.i.h.s16 %v980_v36  ;;  %6793 = vmatprep.subr.bf16.mxu0 %v14923_v9  ;;  %v11704_v61 = vld [vmem:[%s14756_s1 + $0xf0] sm:$0xff]  }
  0x73   : > { %v1033_v12 = vcombine.low %v1011_v30, %v1025_v47  ;;  %v12391_v32 = vcombine.high %v1011_v30, %v1025_v47  ;;  %v1035_v18 = vcombine.low %v12384_v15, %v12387_v28  ;;  %v12395_v10 = vpack.i.b16 %v977_v16, %v924_v27  ;;  %6610 = vmatpush2.bf16.msra.mxu1 %v11702_v52  ;;  %v11256_v30 = vld.sshfl [vmem:[%s11790_s27 + $0x3a0] sm:$0x5 pattern:$0x75316420]  ;;  %v11705_v27 = vld [vmem:[%s14756_s1 + $0x170] sm:$0xff]  }
  0x74   : > { %v12401_v39 = vpack.i.b16 %v979_v24, %v3063_v59  ;;  %v12403_v6 = vpack.i.b16 %v978_v17, %v3065_v0  ;;  %v12405_v47 = vpack.i.b16 %v980_v36, %v3067_v22  ;;  %v2344_v11 = vcombine.high %v11251_v5, %v11252_v1  ;;  %6794 = vmatpush2.bf16.msra.mxu0 %v11703_v45  ;;  %v11257_v17 = vld.sshfl [vmem:[%s11790_s27 + $0x3a8] sm:$0xff pattern:$0x75316420]  ;;  %v11258_v0 = vld.sshfl [vmem:[%s11790_s27 + $0x3b0] sm:$0xff pattern:$0x75316420] }
  0x75   : > { %14944 = vst [vmem:[#allocation41_spill] sm:$0xff] %v12395_v10  ;;  %v3071_v16 = vunpack.i.h.s16 %v1033_v12  ;;  %v3073_v52 = vunpack.i.h.s16 %v1035_v18  ;;  %v12411_v60 = vpack.i.b16 %v1033_v12, %v3069_v7  ;;  %v14949_v24 = vcombine.high %v12193_v23, %v12329_v37  ;;  %6611 = vmatprep.subr.bf16.mxu1 %v14923_v9  ;;  %6795 = vmatprep.subr.bf16.mxu0 %v14923_v9  ;;  %v11259_v1 = vld.sshfl [vmem:[%s11790_s27 + $0x3b8] sm:$0xff pattern:$0x75316420] }
  0x76   : > { %14945 = vst [vmem:[#allocation42_spill] sm:$0xff] %v12401_v39  ;;  %14946 = vst [vmem:[#allocation43_spill] sm:$0xff] %v12403_v6  ;;  %v3952_v5 = vcombine.low %v12401_v39, %v12403_v6  ;;  %v2352_v36 = vrot.slane %v2343_v55, %v11813_v31  ;;  %v2359_v45 = vrot.slane %v2344_v11, %v11813_v31  ;;  %v11706_v39 = vld [vmem:[%s14756_s1 + $0xe8] sm:$0xff]   ;;  %v11176_v6 = vld.sshfl [vmem:[%s11790_s27 + $0x120] sm:$0xff pattern:$0x75316420] }
  0x77   : > { %14947 = vst [vmem:[#allocation44_spill] sm:$0xff] %v12405_v47  ;;  %14948 = vst [vmem:[#allocation45_spill] sm:$0xff] %v12411_v60  ;;  %v3950_v59 = vcombine.low %v14949_v24, %v12395_v10  ;;  %v2399_v22 = vcombine.low %v11254_v63, %v11255_v25  ;;  %v12426_v7 = vpack.i.b16 %v1035_v18, %v3071_v16  ;;  %6612 = vmatpush2.bf16.msra.mxu1 %v11704_v61  ;;  %v11707_v25 = vld [vmem:[%s14756_s1 + $0x168] sm:$0xff]   ;;  %v11179_v37 = vld.sshfl [vmem:[%s11790_s27 + $0x138] sm:$0xff pattern:$0x75316420] }
  0x78   : > { %v12429_v12 = vpack.i.b16 %v12391_v32, %v3073_v52  ;;  %v3954_v24 = vcombine.low %v12405_v47, %v12411_v60  ;;  %v3978_v55 = vrot.slane %v3952_v5, %v11813_v31  ;;  %v2413_v63 = vrot.slane %v11256_v30, %v11813_v31  ;;  %6796 = vmatpush2.bf16.msra.mxu0 %v11705_v27  ;;  %v11177_v23 = vld.sshfl [vmem:[%s11790_s27 + $0x128] sm:$0xff pattern:$0x75316420] }
  0x79   : > { %14950 = vst [vmem:[#allocation46_spill] sm:$0xff] %v12426_v7  ;;  %v3964_v10 = vrot.slane %v3950_v59, %v11813_v31  ;;  %v2406_v11 = vrot.slane %v2399_v22, %v11813_v31  ;;  %v2436_v18 = vcombine.low %v11257_v17, %v11258_v0  ;;  %v2437_v52 = vcombine.high %v11257_v17, %v11258_v0 }
  0x7a   : > { %14951 = vst [vmem:[#allocation47_spill] sm:$0xff] %v12429_v12  ;;  %v3956_v61 = vcombine.low %v12426_v7, %v12429_v12  ;;  %v3992_v16 = vrot.slane %v3954_v24, %v11813_v31  ;;  %v2438_v59 = vcombine.high %v11259_v1, %v11259_v1  ;;  %6613 = vmatprep.subr.bf16.mxu1 %v14923_v9  ;;  %v11173_v24 = vld.sshfl [vmem:[%s11790_s27 + $0x108] sm:$0x5 pattern:$0x75316420] }
  0x7b   : > { %v4015_v5 = vcombine.high %v3964_v10, %v3978_v55  ;;  %v2414_v22 = vcombine.low %v2406_v11, %v2413_v63  ;;  %v12448_v30 = vrot.slane %v2436_v18, %v11813_v31  ;;  %v12451_v27 = vrot.slane %v11259_v1, %v11813_v31  ;;  %6797 = vmatprep.subr.bf16.mxu0 %v14923_v9  ;;  %v11174_v11 = vld.sshfl [vmem:[%s11790_s27 + $0x110] sm:$0x5 pattern:$0x75316420]  ;;  %v11708_v1 = vld [vmem:[%s14756_s1 + $0xe0] sm:$0xff]  }
  0x7c   : > { %v4006_v47 = vrot.slane %v3956_v61, %v11813_v31  ;;  %v12456_v7 = vrot.slane %v2437_v52, %v11813_v31  ;;  %v12459_v17 = vrot.slane %v2438_v59, %v11813_v31  ;;  %v11416_v0 = vcombine.high %v12262_v29, %v12269_v35  ;;  %6614 = vmatpush2.bf16.msra.mxu1 %v11706_v39  ;;  %v11175_v59 = vld.sshfl [vmem:[%s11790_s27 + $0x118] sm:$0x5 pattern:$0x75316420] }
  0x7d   : > { %v12469_v63 = vrot.slane %v4015_v5, %v11813_v31  ;;  %v2467_v18 = vcombine.low %v12448_v30, %v12451_v27  ;;  %v11418_v61 = vcombine.low %v2352_v36, %v2359_v45  ;;  %v11420_v52 = vcombine.high %v2352_v36, %v2359_v45  ;;  %6798 = vmatpush2.bf16.msra.mxu0 %v11707_v25  ;;  %v11709_v5 = vld [vmem:[%s14756_s1 + $0x160] sm:$0xff]  }
  0x7e   : > { %v4019_v29 = vcombine.high %v3992_v16, %v4006_v47  ;;  %v12476_v35 = vcombine.low %v12456_v7, %v12459_v17  ;;  %v5304_v39 = vrot.slane %v11416_v0, %v11813_v31  ;;  %v4014_v12 = vcombine.low %v3964_v10, %v3978_v55  ;;  %6615 = vmatprep.subr.bf16.mxu1 %v14923_v9 }
  0x7f   : > { %14952 = vst [vmem:[#allocation48_spill] sm:$0xff] %v12469_v63  ;;  %v3233_v60 = vunpack.i.h.s16 %v2467_v18  ;;  %v12483_v36 = vpack.i.b16 %v2467_v18, %v2414_v22  ;;  %v5318_v45 = vrot.slane %v11418_v61, %v11813_v31  ;;  %v5332_v25 = vrot.slane %v11420_v52, %v11813_v31  ;;  %6799 = vmatprep.subr.bf16.mxu0 %v14923_v9 }
  0x80   : > { %v12491_v10 = vrot.slane %v4019_v29, %v11813_v31  ;;  %v4018_v55 = vcombine.low %v3992_v16, %v4006_v47  ;;  %v12494_v0 = vrot.slane %v4014_v12, %v11813_v31  ;;  %v1036_v22 = vcombine.high %v12384_v15, %v12387_v28  ;;  %6616 = vmatpush2.bf16.msra.mxu1 %v11708_v1  ;;  %v11710_v47 = vld [vmem:[%s14756_s1 + $0xd8] sm:$0xff]  }
  0x81   : > { %14953 = vst [vmem:[#allocation49_spill] sm:$0xff] %v12483_v36  ;;  %v12500_v18 = vpack.i.b16 %v12476_v35, %v3233_v60  ;;  %v5355_v61 = vcombine.high %v5304_v39, %v5318_v45  ;;  %v5354_v52 = vcombine.low %v5304_v39, %v5318_v45  ;;  %v1058_v50 = vcombine.low %v11173_v24, %v11174_v11 }
  0x82   : > { %14954 = vst [vmem:[#allocation50_spill] sm:$0xff] %v12491_v10  ;;  %14955 = vst [vmem:[#allocation51_spill] sm:$0xff] %v12494_v0  ;;  %6617 = vmatprep.subr.bf16.mxu1 %v14923_v9  ;;  %v4081_v12 = vcombine.low %v12469_v63, %v12491_v10  ;;  %v12510_v16 = vrot.slane %v4018_v55, %v11813_v31  ;;  %v1072_v28 = vrot.slane %v11175_v59, %v11813_v31  ;;  %v11712_v59 = vld [vmem:[%s14756_s1 + $0x158] sm:$0xff]  }
  0x83   : > { %14956 = vst [vmem:[#allocation52_spill] sm:$0xff] %v12500_v18  ;;  %v1095_v60 = vcombine.low %v11176_v6, %v11177_v23  ;;  %6800 = vmatpush2.bf16.msra.mxu0 %v11709_v5  ;;  %v5296_v15 = vcombine.low %v12483_v36, %v12500_v18  ;;  %v12516_v24 = vrot.slane %v5355_v61, %v11813_v31  ;;  %v11260_v36 = vld.sshfl [vmem:[%s11790_s27 + $0x3c0] sm:$0xff pattern:$0x75316420] }
  0x84   : > { %14957 = vst [vmem:[#allocation53_spill] sm:$0xff] %v12510_v16  ;;  %v12519_v11 = vrot.slane %v5354_v52, %v11813_v31  ;;  %v1065_v1 = vrot.slane %v1058_v50, %v11813_v31  ;;  %6801 = vmatprep.subr.bf16.mxu0 %v14923_v9  ;;  %6465 = vmatprep.mubr.bf16.mxu0 %v4081_v12  ;;  %v3075_v50 = vunpack.i.h.s16 %v12391_v32  ;;  %v11711_v12 = vld [vmem:[%s14756_s1 + $0xd0] sm:$0xff]  }
  0x85   : > { %14958 = vst [vmem:[#allocation54_spill] sm:$0xff] %v12516_v24  ;;  %v4078_v29 = vcombine.low %v12494_v0, %v12510_v16  ;;  %v1096_v39 = vcombine.high %v11176_v6, %v11177_v23  ;;  %v1104_v5 = vrot.slane %v1095_v60, %v11813_v31  ;;  %v1151_v45 = vcombine.low %v11179_v37, %v11180_v19  ;;  %v11261_v60 = vld.sshfl [vmem:[%s11790_s27 + $0x3c8] sm:$0xff pattern:$0x75316420] }
  0x86   : > { %14959 = vst [vmem:[#allocation55_spill] sm:$0xff] %v12519_v11  ;;  %v5346_v55 = vrot.slane %v5296_v15, %v11813_v31  ;;  %v1073_v61 = vcombine.low %v1065_v1, %v1072_v28  ;;  %v1152_v52 = vcombine.high %v11179_v37, %v11180_v19  ;;  %6618 = vmatpush2.bf16.msra.mxu1 %v11710_v47  ;;  %v3077_v6 = vunpack.i.h.s16 %v1036_v22  ;;  %v11262_v15 = vld.sshfl [vmem:[%s11790_s27 + $0x3d0] sm:$0xff pattern:$0x75316420] }
  0x87   : > { %6466 = vmatmul.mubr.bf16.gmra.mxu0 %v4078_v29  ;;  %v1111_v18 = vrot.slane %v1096_v39, %v11813_v31  ;;  %v12537_v23 = vrot.slane %v1151_v45, %v11813_v31  ;;  %v12542_v19 = vcombine.high %v12448_v30, %v12451_v27  ;;  %6619 = vmatprep.subr.bf16.mxu1 %v14923_v9  ;;  %v11714_v1 = vld [vmem:[%s14756_s1 + $0x150] sm:$0xff]   ;;  %v11263_v39 = vld.sshfl [vmem:[%s11790_s27 + $0x3d8] sm:$0x5 pattern:$0x75316420] }
  0x88   : > { %v5359_v37 = vcombine.high %v5332_v25, %v5346_v55  ;;  %v5358_v32 = vcombine.low %v5332_v25, %v5346_v55  ;;  %v12546_v47 = vrot.slane %v1152_v52, %v11813_v31  ;;  %v12548_v28 = vpack.i.b16 %v1036_v22, %v3075_v50  ;;  %6802 = vmatpush2.bf16.msra.mxu0 %v11712_v59  ;;  %v11264_v55 = vld.sshfl [vmem:[%s11790_s27 + $0x3e0] sm:$0x5 pattern:$0x75316420] }
  0x89   : > { %v12554_v29 = vpack.i.b16 %v1073_v61, %v3077_v6  ;;  %v11382_v30 = vcombine.low %v1104_v5, %v1111_v18  ;;  %v11384_v27 = vcombine.high %v1104_v5, %v1111_v18  ;;  %v12559_v25 = vcombine.high %v12456_v7, %v12459_v17  ;;  %6803 = vmatprep.subr.bf16.mxu0 %v14923_v9  ;;  %v12572_v61 = vld.sshfl [vmem:[%s11790_s27 + $0x3f0] sm:$0xff pattern:$0x75316420] }
  0x8a   : > { %14960 = vst [vmem:[#allocation56_spill] sm:$0xff] %v12548_v28  ;;  %v12563_v22 = vrot.slane %v5359_v37, %v11813_v31  ;;  %v12566_v59 = vrot.slane %v5358_v32, %v11813_v31  ;;  %v11386_v45 = vcombine.low %v12537_v23, %v12546_v47  ;;  %v2492_v18 = vcombine.low %v11260_v36, %v11261_v60  ;;  %v11265_v52 = vld.sshfl [vmem:[%s11790_s27 + $0x3e8] sm:$0x5 pattern:$0x75316420] }
  0x8b   : > { %14961 = vst [vmem:[#allocation57_spill] sm:$0xff] %v12554_v29  ;;  %6620 = vmatpush2.bf16.msra.mxu1 %v11711_v12  ;;  %v4084_v7 = vcombine.low %v12548_v28, %v12554_v29  ;;  %v12577_v17 = vrot.slane %v11382_v30, %v11813_v31  ;;  %v12580_v5 = vrot.slane %v11384_v27, %v11813_v31  ;;  %v12592_v32 = vld.sshfl [vmem:[%s11790_s27 + $0x3f8] sm:$0xff pattern:$0x75316420]  ;;  %v11713_v27 = vld [vmem:[%s14756_s1 + $0xc8] sm:$0xff]  }
  0x8c   : > { %14962 = vst [vmem:[#allocation58_spill] sm:$0xff] %v12563_v22  ;;  %14963 = vst [vmem:[#allocation59_spill] sm:$0xff] %v12566_v59  ;;  %v2493_v50 = vcombine.high %v11260_v36, %v11261_v60  ;;  %6621 = vmatprep.subr.bf16.mxu1 %v14923_v9  ;;  %v5421_v6 = vcombine.low %v12516_v24, %v12563_v22  ;;  %v5418_v37 = vcombine.low %v12519_v11, %v12566_v59 }
  0x8d   : > { %v12589_v12 = vrot.slane %v11386_v45, %v11813_v31  ;;  %v2494_v30 = vcombine.high %v11262_v15, %v11262_v15  ;;  %6804 = vmatpush2.bf16.msra.mxu0 %v11714_v1  ;;  %v4098_v36 = vrot.slane %v4084_v7, %v11813_v31  ;;  %v2501_v60 = vrot.slane %v2492_v18, %v11813_v31  ;;  %v11716_v45 = vld [vmem:[%s14756_s1 + $0x148] sm:$0xff]  }
  0x8e   : > { %v2508_v24 = vrot.slane %v2493_v50, %v11813_v31  ;;  %v2515_v22 = vrot.slane %v11262_v15, %v11813_v31  ;;  %6805 = vmatprep.subr.bf16.mxu0 %v14923_v9  ;;  %6545 = vmatprep.mubr.bf16.mxu1 %v5421_v6  ;;  %v2548_v59 = vcombine.low %v11263_v39, %v11264_v55  ;;  %v11715_v39 = vld [vmem:[%s14756_s1 + $0xc0] sm:$0xff]  }
  0x8f   : > { %v4153_v11 = vcombine.high %v12580_v5, %v12589_v12  ;;  %v2522_v1 = vrot.slane %v2494_v30, %v11813_v31  ;;  %v2562_v7 = vrot.slane %v11265_v52, %v11813_v31  ;;  %6546 = vmatmul.mubr.bf16.gmra.mxu1 %v5418_v37  ;;  %v4149_v18 = vcombine.high %v4098_v36, %v12577_v17  ;;  %v11182_v37 = vld.sshfl [vmem:[%s11790_s27 + $0x150] sm:$0x5 pattern:$0x75316420] }
  0x90   : > { %v2523_v15 = vcombine.low %v2501_v60, %v2515_v22  ;;  %v2524_v50 = vcombine.high %v2501_v60, %v2515_v22  ;;  %v2585_v28 = vcombine.low %v12572_v61, %v12592_v32  ;;  %v2555_v30 = vrot.slane %v2548_v59, %v11813_v31  ;;  %6622 = vmatpush2.bf16.msra.mxu1 %v11713_v27 }
  0x91   : > { %v12613_v29 = vrot.slane %v4153_v11, %v11813_v31  ;;  %v2525_v6 = vcombine.low %v2508_v24, %v2522_v1  ;;  %v2526_v0 = vcombine.high %v2508_v24, %v2522_v1  ;;  %v12620_v55 = vrot.slane %v4149_v18, %v11813_v31  ;;  %6623 = vmatprep.subr.bf16.mxu1 %v14923_v9  ;;  %v11183_v1 = vld.sshfl [vmem:[%s11790_s27 + $0x158] sm:$0x5 pattern:$0x75316420] }
  0x92   : > { %v12623_v22 = vrot.slane %v2585_v28, %v11813_v31  ;;  %v3235_v52 = vunpack.i.h.s16 %v12476_v35  ;;  %v3237_v11 = vunpack.i.h.s16 %v12542_v19  ;;  %6806 = vmatpush2.bf16.msra.mxu0 %v11716_v45  ;;  %v2563_v24 = vcombine.low %v2555_v30, %v2562_v7  ;;  %v11717_v28 = vld [vmem:[%s14756_s1 + $0x140] sm:$0xff]  }
  0x93   : > { %14964 = vst [vmem:[#allocation60_spill] sm:$0xff] %v12613_v29  ;;  %14965 = vst [vmem:[#allocation61_spill] sm:$0xff] %v12620_v55  ;;  %v3239_v59 = vunpack.i.h.s16 %v12559_v25  ;;  %v3241_v27 = vunpack.i.h.s16 %v2523_v15  ;;  %v3243_v60 = vunpack.i.h.s16 %v2525_v6  ;;  %6807 = vmatprep.subr.bf16.mxu0 %v14923_v9  ;;  %v4215_v35 = vcombine.low %v12620_v55, %v12613_v29  ;;  %v11184_v7 = vld.sshfl [vmem:[%s11790_s27 + $0x160] sm:$0x5 pattern:$0x75316420] }
  0x94   : > { %14966 = vst [vmem:[#allocation62_spill] sm:$0xff] %v12623_v22  ;;  %v3245_v18 = vunpack.i.h.s16 %v2524_v50  ;;  %v3247_v16 = vunpack.i.h.s16 %v2526_v0  ;;  %v12638_v45 = vpack.i.b16 %v12542_v19, %v3235_v52  ;;  %v12642_v30 = vpack.i.b16 %v12559_v25, %v3237_v11  ;;  %6624 = vmatpush2.bf16.msra.mxu1 %v11715_v39  ;;  %v11185_v25 = vld.sshfl [vmem:[%s11790_s27 + $0x168] sm:$0xff pattern:$0x75316420] }
  0x95   : > { %v12644_v63 = vpack.i.b16 %v2523_v15, %v3239_v59  ;;  %v12646_v9 = vpack.i.b16 %v2525_v6, %v3241_v27  ;;  %v12648_v10 = vpack.i.b16 %v2524_v50, %v3243_v60  ;;  %6473 = vmatprep.mubr.bf16.mxu0 %v4215_v35  ;;  %v4148_v19 = vcombine.low %v4098_v36, %v12577_v17  ;;  %v11186_v11 = vld.sshfl [vmem:[%s11790_s27 + $0x170] sm:$0xff pattern:$0x75316420] }
  0x96   : > { %14967 = vst [vmem:[#allocation63_spill] sm:$0xff] %v12638_v45  ;;  %14968 = vst [vmem:[#allocation64_spill] sm:$0xff] %v12642_v30  ;;  %v12650_v55 = vpack.i.b16 %v2526_v0, %v3245_v18  ;;  %v12652_v29 = vpack.i.b16 %v2563_v24, %v3247_v16  ;;  %v4152_v52 = vcombine.low %v12580_v5, %v12589_v12  ;;  %6808 = vmatpush2.bf16.msra.mxu0 %v11717_v28  ;;  %v11187_v12 = vld.sshfl [vmem:[%s11790_s27 + $0x178] sm:$0xff pattern:$0x75316420] }
  0x97   : > { %14969 = vst [vmem:[#allocation65_spill] sm:$0xff] %v12644_v63  ;;  %14970 = vst [vmem:[#allocation66_spill] sm:$0xff] %v12646_v9  ;;  %v5424_v15 = vcombine.low %v12638_v45, %v12642_v30  ;;  %v5426_v50 = vcombine.low %v12644_v63, %v12646_v9  ;;  %v1207_v6 = vcombine.low %v11182_v37, %v11183_v1  ;;  %v12767_v30 = vld.sshfl [vmem:[%s11790_s27 + $0x440] sm:$0xff pattern:$0x75316420] }
  0x98   : > { %14971 = vst [vmem:[#allocation67_spill] sm:$0xff] %v12648_v10  ;;  %14972 = vst [vmem:[#allocation68_spill] sm:$0xff] %v12650_v55  ;;  %v1221_v39 = vrot.slane %v11184_v7, %v11813_v31  ;;  %v5428_v0 = vcombine.low %v12648_v10, %v12650_v55  ;;  %v11422_v16 = vcombine.low %v12652_v29, %v12623_v22  ;;  %v11188_v7 = vld.sshfl [vmem:[%s11790_s27 + $0x180] sm:$0xff pattern:$0x75316420] }
  0x99   : > { %14973 = vst [vmem:[#allocation69_spill] sm:$0xff] %v12652_v29  ;;  %v12669_v17 = vrot.slane %v4148_v19, %v11813_v31  ;;  %v12672_v5 = vrot.slane %v4152_v52, %v11813_v31  ;;  %v5438_v36 = vrot.slane %v5424_v15, %v11813_v31  ;;  %v5452_v37 = vrot.slane %v5426_v50, %v11813_v31  ;;  %v11189_v19 = vld.sshfl [vmem:[%s11790_s27 + $0x188] sm:$0xff pattern:$0x75316420] }
  0x9a   : > { %v1214_v24 = vrot.slane %v1207_v6, %v11813_v31  ;;  %v1244_v59 = vcombine.low %v11185_v25, %v11186_v11  ;;  %v5466_v27 = vrot.slane %v5428_v0, %v11813_v31  ;;  %v5480_v60 = vrot.slane %v11422_v16, %v11813_v31 }
  0x9b   : > { %14974 = vst [vmem:[#allocation70_spill] sm:$0xff] %v12669_v17  ;;  %14975 = vst [vmem:[#allocation71_spill] sm:$0xff] %v12672_v5  ;;  %v4212_v1 = vcombine.low %v12669_v17, %v12672_v5  ;;  %v1245_v28 = vcombine.high %v11185_v25, %v11186_v11  ;;  %v5489_v35 = vcombine.high %v5438_v36, %v5452_v37  ;;  %v11190_v25 = vld.sshfl [vmem:[%s11790_s27 + $0x190] sm:$0xff pattern:$0x75316420] }
  0x9c   : > { %v5488_v18 = vcombine.low %v5438_v36, %v5452_v37  ;;  %v1222_v52 = vcombine.low %v1214_v24, %v1221_v39  ;;  %v1246_v15 = vcombine.high %v11187_v12, %v11187_v12  ;;  %v5493_v29 = vcombine.high %v5466_v27, %v5480_v60 }
  0x9d   : > { %6474 = vmatmul.mubr.bf16.gmra.mxu0 %v4212_v1  ;;  %v5492_v50 = vcombine.low %v5466_v27, %v5480_v60  ;;  %v1253_v6 = vrot.slane %v1244_v59, %v11813_v31  ;;  %v1260_v0 = vrot.slane %v1245_v28, %v11813_v31  ;;  %v12687_v16 = vrot.slane %v5489_v35, %v11813_v31 }
  0x9e   : > { %v12690_v10 = vrot.slane %v5488_v18, %v11813_v31  ;;  %v1267_v11 = vrot.slane %v11187_v12, %v11813_v31  ;;  %v1274_v36 = vrot.slane %v1246_v15, %v11813_v31  ;;  %v12696_v39 = vrot.slane %v5493_v29, %v11813_v31 }
  0x9f   : > { %14976 = vst [vmem:[#allocation72_spill] sm:$0xff] %v12687_v16  ;;  %v12699_v37 = vrot.slane %v5492_v50, %v11813_v31  ;;  %v1300_v24 = vcombine.low %v11188_v7, %v11189_v19  ;;  %v1301_v59 = vcombine.high %v11188_v7, %v11189_v19  ;;  %v1302_v18 = vcombine.high %v11190_v25, %v11190_v25 }
  0xa0   : > { %14977 = vst [vmem:[#allocation73_spill] sm:$0xff] %v12690_v10  ;;  %14978 = vst [vmem:[#allocation74_spill] sm:$0xff] %v12696_v39  ;;  %v1275_v27 = vcombine.low %v1253_v6, %v1267_v11  ;;  %v1276_v60 = vcombine.high %v1253_v6, %v1267_v11  ;;  %v1277_v1 = vcombine.low %v1260_v0, %v1274_v36  ;;  %v11268_v6 = vld.sshfl [vmem:[%s11790_s27 + $0x400] sm:$0xff pattern:$0x75316420] }
  0xa1   : > { %14979 = vst [vmem:[#allocation75_spill] sm:$0xff] %v12699_v37  ;;  %v1278_v28 = vcombine.high %v1260_v0, %v1274_v36  ;;  %v5555_v35 = vcombine.low %v12687_v16, %v12696_v39  ;;  %v5552_v12 = vcombine.low %v12690_v10, %v12699_v37  ;;  %v12706_v29 = vrot.slane %v1300_v24, %v11813_v31  ;;  %v11272_v16 = vld.sshfl [vmem:[%s11790_s27 + $0x420] sm:$0x5 pattern:$0x75316420] }
  0xa2   : > { %v12709_v15 = vrot.slane %v1301_v59, %v11813_v31  ;;  %v12712_v7 = vrot.slane %v11190_v25, %v11813_v31  ;;  %v3097_v19 = vunpack.i.h.s16 %v1275_v27  ;;  %v3099_v50 = vunpack.i.h.s16 %v1277_v1  ;;  %v11274_v39 = vld.sshfl [vmem:[%s11790_s27 + $0x430] sm:$0x5 pattern:$0x75316420] }
  0xa3   : > { %6553 = vmatprep.mubr.bf16.mxu1 %v5555_v35  ;;  %v12716_v0 = vrot.slane %v1302_v18, %v11813_v31  ;;  %v3101_v11 = vunpack.i.h.s16 %v1276_v60  ;;  %v3103_v36 = vunpack.i.h.s16 %v1278_v28  ;;  %v12718_v24 = vpack.i.b16 %v1275_v27, %v1222_v52  ;;  %v11269_v18 = vld.sshfl [vmem:[%s11790_s27 + $0x408] sm:$0xff pattern:$0x75316420]  ;;  %v11270_v27 = vld.sshfl [vmem:[%s11790_s27 + $0x410] sm:$0xff pattern:$0x75316420] }
  0xa4   : > { %6554 = vmatmul.mubr.bf16.gmra.mxu1 %v5552_v12  ;;  %v1331_v59 = vcombine.low %v12706_v29, %v12712_v7  ;;  %v12722_v25 = vpack.i.b16 %v1277_v1, %v3097_v19  ;;  %v12724_v10 = vpack.i.b16 %v1276_v60, %v3099_v50  ;;  %v11388_v35 = vcombine.high %v12537_v23, %v12546_v47  ;;  %v11271_v12 = vld.sshfl [vmem:[%s11790_s27 + $0x418] sm:$0xff pattern:$0x75316420] }
  0xa5   : > { %14980 = vst [vmem:[#allocation76_spill] sm:$0xff] %v12718_v24  ;;  %v12731_v37 = vcombine.low %v12709_v15, %v12716_v0  ;;  %v12733_v52 = vpack.i.b16 %v1278_v28, %v3101_v11  ;;  %v2586_v1 = vcombine.high %v12572_v61, %v12592_v32  ;;  %v2587_v19 = vcombine.high %v11268_v6, %v11268_v6  ;;  %v11273_v28 = vld.sshfl [vmem:[%s11790_s27 + $0x428] sm:$0x5 pattern:$0x75316420] }
  0xa6   : > { %14981 = vst [vmem:[#allocation77_spill] sm:$0xff] %v12722_v25  ;;  %14982 = vst [vmem:[#allocation78_spill] sm:$0xff] %v12724_v10  ;;  %v3105_v60 = vunpack.i.h.s16 %v1331_v59  ;;  %v12739_v50 = vpack.i.b16 %v1331_v59, %v3103_v36  ;;  %v4220_v23 = vcombine.low %v12718_v24, %v12722_v25  ;;  %v4232_v47 = vrot.slane %v11388_v35, %v11813_v31  ;;  %v12763_v35 = vld.sshfl [vmem:[%s11790_s27 + $0x438] sm:$0xff pattern:$0x75316420] }
  0xa7   : > { %14983 = vst [vmem:[#allocation79_spill] sm:$0xff] %v12733_v52  ;;  %v4222_v11 = vcombine.low %v12724_v10, %v12733_v52  ;;  %v12750_v55 = vrot.slane %v2586_v1, %v11813_v31  ;;  %v12753_v61 = vrot.slane %v11268_v6, %v11813_v31  ;;  %v12756_v32 = vrot.slane %v2587_v19, %v11813_v31  ;;  %v12770_v1 = vld.sshfl [vmem:[%s11790_s27 + $0x448] sm:$0xff pattern:$0x75316420] }
  0xa8   : > { %14984 = vst [vmem:[#allocation80_spill] sm:$0xff] %v12739_v50  ;;  %v12759_v36 = vpack.i.b16 %v12731_v37, %v3105_v60  ;;  %v4246_v59 = vrot.slane %v4220_v23, %v11813_v31  ;;  %v2641_v63 = vcombine.low %v11269_v18, %v11270_v27  ;;  %v2642_v9 = vcombine.high %v11269_v18, %v11270_v27  ;;  %v11191_v10 = vld.sshfl [vmem:[%s11790_s27 + $0x198] sm:$0x5 pattern:$0x75316420] }
  0xa9   : > { %14985 = vst [vmem:[#allocation81_spill] sm:$0xff] %v12750_v55  ;;  %14986 = vst [vmem:[#allocation82_spill] sm:$0xff] %v12753_v61  ;;  %v4260_v45 = vrot.slane %v4222_v11, %v11813_v31  ;;  %v2617_v6 = vcombine.high %v12623_v22, %v12753_v61  ;;  %v2619_v19 = vcombine.high %v12750_v55, %v12756_v32  ;;  %v11192_v52 = vld.sshfl [vmem:[%s11790_s27 + $0x1a0] sm:$0x5 pattern:$0x75316420] }
  0xaa   : > { %14987 = vst [vmem:[#allocation83_spill] sm:$0xff] %v12756_v32  ;;  %14988 = vst [vmem:[#allocation84_spill] sm:$0xff] %v12759_v36  ;;  %v2643_v60 = vcombine.high %v11271_v12, %v11271_v12  ;;  %v4224_v23 = vcombine.low %v12739_v50, %v12759_v36  ;;  %v4283_v17 = vcombine.high %v4232_v47, %v4246_v59 }
  0xab   : > { %v12779_v5 = vrot.slane %v2641_v63, %v11813_v31  ;;  %v12782_v18 = vrot.slane %v2642_v9, %v11813_v31  ;;  %v12785_v27 = vrot.slane %v11271_v12, %v11813_v31  ;;  %v2697_v32 = vcombine.low %v11272_v16, %v11273_v28 }
  0xac   : > { %v12788_v11 = vrot.slane %v2643_v60, %v11813_v31  ;;  %v2711_v22 = vrot.slane %v11274_v39, %v11813_v31  ;;  %v4274_v61 = vrot.slane %v4224_v23, %v11813_v31  ;;  %v12793_v50 = vrot.slane %v4283_v17, %v11813_v31 }
  0xad   : > { %14989 = vst [vmem:[#allocation85_spill] sm:$0xff] %v12779_v5  ;;  %14990 = vst [vmem:[#allocation86_spill] sm:$0xff] %v12782_v18  ;;  %v2734_v63 = vcombine.low %v12763_v35, %v12767_v30  ;;  %v12799_v9 = vrot.slane %v12770_v1, %v11813_v31  ;;  %v2673_v12 = vcombine.high %v12779_v5, %v12785_v27 }
  0xae   : > { %14991 = vst [vmem:[#allocation87_spill] sm:$0xff] %v12785_v27  ;;  %14992 = vst [vmem:[#allocation88_spill] sm:$0xff] %v12788_v11  ;;  %v2675_v16 = vcombine.high %v12782_v18, %v12788_v11  ;;  %v2704_v39 = vrot.slane %v2697_v32, %v11813_v31  ;;  %v11423_v28 = vcombine.low %v12750_v55, %v2617_v6  ;;  %v11193_v32 = vld.sshfl [vmem:[%s11790_s27 + $0x1a8] sm:$0x5 pattern:$0x75316420] }
  0xaf   : > { %14993 = vst [vmem:[#allocation89_spill] sm:$0xff] %v12793_v50  ;;  %v4287_v17 = vcombine.high %v4260_v45, %v4274_v61  ;;  %v12808_v60 = vrot.slane %v2734_v63, %v11813_v31  ;;  %v11425_v23 = vcombine.low %v2619_v19, %v12779_v5  ;;  %v4282_v36 = vcombine.low %v4232_v47, %v4246_v59  ;;  %v11194_v59 = vld.sshfl [vmem:[%s11790_s27 + $0x1b0] sm:$0xff pattern:$0x75316420] }
  0xb0   : > { %v2712_v24 = vcombine.low %v2704_v39, %v2711_v22  ;;  %v11427_v27 = vcombine.low %v12782_v18, %v2673_v12  ;;  %v5572_v11 = vrot.slane %v11423_v28, %v11813_v31  ;;  %v4286_v25 = vcombine.low %v4260_v45, %v4274_v61  ;;  %v11195_v19 = vld.sshfl [vmem:[%s11790_s27 + $0x1b8] sm:$0xff pattern:$0x75316420]  ;;  %v11196_v18 = vld.sshfl [vmem:[%s11790_s27 + $0x1c0] sm:$0xff pattern:$0x75316420] }
  0xb1   : > { %v12817_v6 = vrot.slane %v4287_v17, %v11813_v31  ;;  %v12821_v63 = vcombine.low %v12808_v60, %v12799_v9  ;;  %v5586_v47 = vrot.slane %v11425_v23, %v11813_v31  ;;  %v12825_v22 = vrot.slane %v4282_v36, %v11813_v31  ;;  %v12849_v5 = vld.sshfl [vmem:[%s11790_s27 + $0x1d0] sm:$0xff pattern:$0x75316420] }
  0xb2   : > { %v5600_v45 = vrot.slane %v11427_v27, %v11813_v31  ;;  %v12831_v61 = vrot.slane %v4286_v25, %v11813_v31  ;;  %v1332_v12 = vcombine.high %v12706_v29, %v12712_v7  ;;  %v1334_v39 = vcombine.high %v12709_v15, %v12716_v0  ;;  %v12846_v25 = vld.sshfl [vmem:[%s11790_s27 + $0x1c8] sm:$0xff pattern:$0x75316420] }
  0xb3   : > { %14994 = vst [vmem:[#allocation90_spill] sm:$0xff] %v12817_v6  ;;  %14995 = vst [vmem:[#allocation91_spill] sm:$0xff] %v12825_v22  ;;  %v4349_v28 = vcombine.low %v12793_v50, %v12817_v6  ;;  %v12840_v17 = vpack.i.b16 %v12821_v63, %v2712_v24  ;;  %v5623_v36 = vcombine.high %v5572_v11, %v5586_v47 }
  0xb4   : > { %14996 = vst [vmem:[#allocation92_spill] sm:$0xff] %v12831_v61  ;;  %v5622_v23 = vcombine.low %v5572_v11, %v5586_v47  ;;  %v4346_v27 = vcombine.low %v12825_v22, %v12831_v61  ;;  %v1356_v29 = vcombine.low %v11191_v10, %v11192_v52  ;;  %v1370_v7 = vrot.slane %v11193_v32, %v11813_v31 }
  0xb5   : > { %14997 = vst [vmem:[#allocation93_spill] sm:$0xff] %v12840_v17  ;;  %v1393_v15 = vcombine.low %v11194_v59, %v11195_v19  ;;  %6481 = vmatprep.mubr.bf16.mxu0 %v4349_v28  ;;  %v5564_v0 = vcombine.low %v2675_v16, %v12840_v17  ;;  %v12854_v24 = vrot.slane %v5623_v36, %v11813_v31  ;;  %v11282_v17 = vld.sshfl [vmem:[%s11790_s27 + $0x470] sm:$0x5 pattern:$0x75316420] }
  0xb6   : > { %v12857_v11 = vrot.slane %v5622_v23, %v11813_v31  ;;  %v1394_v47 = vcombine.high %v11194_v59, %v11195_v19  ;;  %6482 = vmatmul.mubr.bf16.gmra.mxu0 %v4346_v27  ;;  %v1363_v55 = vrot.slane %v1356_v29, %v11813_v31  ;;  %v1395_v22 = vcombine.high %v11196_v18, %v11196_v18 }
  0xb7   : > { %14998 = vst [vmem:[#allocation94_spill] sm:$0xff] %v12854_v24  ;;  %v12861_v61 = vrot.slane %v1393_v15, %v11813_v31  ;;  %v12864_v10 = vrot.slane %v11196_v18, %v11813_v31  ;;  %v5614_v52 = vrot.slane %v5564_v0, %v11813_v31  ;;  %v1449_v32 = vcombine.low %v12846_v25, %v12849_v5 }
  0xb8   : > { %14999 = vst [vmem:[#allocation95_spill] sm:$0xff] %v12857_v11  ;;  %v12868_v16 = vrot.slane %v1394_v47, %v11813_v31  ;;  %v3107_v59 = vunpack.i.h.s16 %v12731_v37  ;;  %v1371_v19 = vcombine.low %v1363_v55, %v1370_v7  ;;  %v12874_v28 = vrot.slane %v1395_v22, %v11813_v31 }
  0xb9   : > { %v1425_v36 = vcombine.high %v12861_v61, %v12864_v10  ;;  %v3109_v18 = vunpack.i.h.s16 %v1332_v12  ;;  %v5627_v23 = vcombine.high %v5600_v45, %v5614_v52  ;;  %v5626_v27 = vcombine.low %v5600_v45, %v5614_v52  ;;  %v11278_v52 = vld.sshfl [vmem:[%s11790_s27 + $0x450] sm:$0xff pattern:$0x75316420] }
  0xba   : > { %15000 = vst [vmem:[#allocation96_spill] sm:$0xff] %v12868_v16  ;;  %15001 = vst [vmem:[#allocation97_spill] sm:$0xff] %v12874_v28  ;;  %v12879_v29 = vrot.slane %v1449_v32, %v11813_v31  ;;  %v3111_v15 = vunpack.i.h.s16 %v1334_v39  ;;  %v1427_v37 = vcombine.high %v12868_v16, %v12874_v28  ;;  %v12883_v0 = vpack.i.b16 %v1332_v12, %v3107_v59 }
  0xbb   : > { %v12885_v55 = vpack.i.b16 %v1334_v39, %v3109_v18  ;;  %v11391_v22 = vcombine.low %v12868_v16, %v1425_v36  ;;  %v12889_v7 = vrot.slane %v5627_v23, %v11813_v31  ;;  %v12892_v45 = vrot.slane %v5626_v27, %v11813_v31  ;;  %v11279_v36 = vld.sshfl [vmem:[%s11790_s27 + $0x458] sm:$0xff pattern:$0x75316420]  ;;  %v11280_v18 = vld.sshfl [vmem:[%s11790_s27 + $0x460] sm:$0xff pattern:$0x75316420] }
  0xbc   : > { %15002 = vst [vmem:[#allocation98_spill] sm:$0xff] %v12883_v0  ;;  %v12894_v47 = vpack.i.b16 %v1371_v19, %v3111_v15  ;;  %v2735_v32 = vcombine.high %v12763_v35, %v12767_v30  ;;  %v11393_v39 = vcombine.low %v1427_v37, %v12879_v29  ;;  %v2736_v19 = vcombine.high %v12770_v1, %v12770_v1  ;;  %v11281_v27 = vld.sshfl [vmem:[%s11790_s27 + $0x468] sm:$0x5 pattern:$0x75316420] }
  0xbd   : > { %15003 = vst [vmem:[#allocation99_spill] sm:$0xff] %v12885_v55  ;;  %15004 = vst [vmem:[#allocation100_spill] sm:$0xff] %v12889_v7  ;;  %v4352_v12 = vcombine.low %v12883_v0, %v12885_v55  ;;  %v12903_v59 = vrot.slane %v11391_v22, %v11813_v31  ;;  %v5689_v23 = vcombine.low %v12854_v24, %v12889_v7 }
  0xbe   : > { %15005 = vst [vmem:[#allocation101_spill] sm:$0xff] %v12892_v45  ;;  %15006 = vst [vmem:[#allocation102_spill] sm:$0xff] %v12894_v47  ;;  %v5686_v30 = vcombine.low %v12857_v11, %v12892_v45  ;;  %v11390_v35 = vcombine.low %v12894_v47, %v12861_v61  ;;  %v2750_v15 = vrot.slane %v2735_v32, %v11813_v31  ;;  %v11283_v11 = vld.sshfl [vmem:[%s11790_s27 + $0x478] sm:$0x5 pattern:$0x75316420] }
  0xbf   : > { %v4366_v37 = vrot.slane %v4352_v12, %v11813_v31  ;;  %v4408_v22 = vrot.slane %v11393_v39, %v11813_v31  ;;  %v2764_v0 = vrot.slane %v2736_v19, %v11813_v31  ;;  %v2766_v1 = vcombine.high %v12808_v60, %v12799_v9  ;;  %6561 = vmatprep.mubr.bf16.mxu1 %v5689_v23 }
  0xc0   : > { %v4380_v24 = vrot.slane %v11390_v35, %v11813_v31  ;;  %v2790_v45 = vcombine.low %v11278_v52, %v11279_v36  ;;  %v2791_v7 = vcombine.high %v11278_v52, %v11279_v36  ;;  %v2792_v47 = vcombine.high %v11280_v18, %v11280_v18  ;;  %6562 = vmatmul.mubr.bf16.gmra.mxu1 %v5686_v30 }
  0xc1   : > { %v4421_v32 = vcombine.high %v12903_v59, %v4408_v22  ;;  %v2767_v55 = vcombine.low %v2750_v15, %v2764_v0  ;;  %v2768_v12 = vcombine.high %v2750_v15, %v2764_v0  ;;  %v2813_v39 = vrot.slane %v11280_v18, %v11813_v31 }
  0xc2   : > { %v4417_v16 = vcombine.high %v4366_v37, %v4380_v24  ;;  %v2799_v19 = vrot.slane %v2790_v45, %v11813_v31  ;;  %v2806_v28 = vrot.slane %v2791_v7, %v11813_v31  ;;  %v2820_v9 = vrot.slane %v2792_v47, %v11813_v31 }
  0xc3   : > { %v12931_v60 = vrot.slane %v4421_v32, %v11813_v31  ;;  %v2846_v23 = vcombine.low %v11281_v27, %v11282_v17  ;;  %v2860_v52 = vrot.slane %v11283_v11, %v11813_v31  ;;  %v3267_v36 = vunpack.i.h.s16 %v12821_v63 }
  0xc4   : > { %v12936_v30 = vrot.slane %v4417_v16, %v11813_v31  ;;  %v2821_v0 = vcombine.low %v2799_v19, %v2813_v39  ;;  %v2822_v18 = vcombine.high %v2799_v19, %v2813_v39  ;;  %v2823_v35 = vcombine.low %v2806_v28, %v2820_v9 }
  0xc5   : > { %15007 = vst [vmem:[#allocation103_spill] sm:$0xff] %v12931_v60  ;;  %v2824_v15 = vcombine.high %v2806_v28, %v2820_v9  ;;  %v2853_v45 = vrot.slane %v2846_v23, %v11813_v31  ;;  %v3269_v7 = vunpack.i.h.s16 %v2767_v55  ;;  %v3271_v47 = vunpack.i.h.s16 %v2766_v1  ;;  %v11199_v23 = vld.sshfl [vmem:[%s11790_s27 + $0x1d8] sm:$0xff pattern:$0x75316420] }
  0xc6   : > { %15008 = vst [vmem:[#allocation104_spill] sm:$0xff] %v12936_v30  ;;  %v4483_v32 = vcombine.low %v12936_v30, %v12931_v60  ;;  %v3273_v17 = vunpack.i.h.s16 %v2768_v12  ;;  %v3275_v27 = vunpack.i.h.s16 %v2821_v0  ;;  %v3277_v11 = vunpack.i.h.s16 %v2823_v35 }
  0xc7   : > { %v2861_v50 = vcombine.low %v2853_v45, %v2860_v52  ;;  %v3279_v63 = vunpack.i.h.s16 %v2822_v18  ;;  %v3281_v16 = vunpack.i.h.s16 %v2824_v15  ;;  %v12941_v6 = vpack.i.b16 %v2767_v55, %v3267_v36 }
  0xc8   : > { %6489 = vmatprep.mubr.bf16.mxu0 %v4483_v32  ;;  %v12943_v39 = vpack.i.b16 %v2766_v1, %v3269_v7  ;;  %v12945_v28 = vpack.i.b16 %v2768_v12, %v3271_v47  ;;  %v12947_v19 = vpack.i.b16 %v2821_v0, %v3273_v17  ;;  %v12949_v9 = vpack.i.b16 %v2823_v35, %v3275_v27  ;;  %v11200_v0 = vld.sshfl [vmem:[%s11790_s27 + $0x1e0] sm:$0x5 pattern:$0x75316420] }
  0xc9   : > { %15009 = vst [vmem:[#allocation105_spill] sm:$0xff] %v12941_v6  ;;  %v12952_v30 = vpack.i.b16 %v2822_v18, %v3277_v11  ;;  %v12954_v60 = vpack.i.b16 %v2824_v15, %v3279_v63  ;;  %v12956_v52 = vpack.i.b16 %v2861_v50, %v3281_v16  ;;  %v4416_v55 = vcombine.low %v4366_v37, %v4380_v24  ;;  %v11201_v37 = vld.sshfl [vmem:[%s11790_s27 + $0x1e8] sm:$0x5 pattern:$0x75316420] }
  0xca   : > { %15010 = vst [vmem:[#allocation106_spill] sm:$0xff] %v12943_v39  ;;  %15011 = vst [vmem:[#allocation107_spill] sm:$0xff] %v12945_v28  ;;  %v5692_v1 = vcombine.low %v12941_v6, %v12943_v39  ;;  %v5694_v12 = vcombine.low %v12945_v28, %v12947_v19  ;;  %v4420_v36 = vcombine.low %v12903_v59, %v4408_v22  ;;  %v11203_v32 = vld.sshfl [vmem:[%s11790_s27 + $0x1f8] sm:$0xff pattern:$0x75316420] }
  0xcb   : > { %15012 = vst [vmem:[#allocation108_spill] sm:$0xff] %v12947_v19  ;;  %15013 = vst [vmem:[#allocation109_spill] sm:$0xff] %v12949_v9  ;;  %v1450_v18 = vcombine.high %v12846_v25, %v12849_v5  ;;  %v5696_v35 = vcombine.low %v12949_v9, %v12952_v30  ;;  %v5698_v50 = vcombine.low %v12954_v60, %v12956_v52  ;;  %v11202_v5 = vld.sshfl [vmem:[%s11790_s27 + $0x1f0] sm:$0x5 pattern:$0x75316420] }
  0xcc   : > { %15014 = vst [vmem:[#allocation110_spill] sm:$0xff] %v12952_v30  ;;  %15015 = vst [vmem:[#allocation111_spill] sm:$0xff] %v12954_v60  ;;  %v12971_v24 = vrot.slane %v4416_v55, %v11813_v31  ;;  %v1451_v15 = vcombine.high %v11199_v23, %v11199_v23  ;;  %v5706_v45 = vrot.slane %v5692_v1, %v11813_v31  ;;  %v11204_v55 = vld.sshfl [vmem:[%s11790_s27 + $0x200] sm:$0xff pattern:$0x75316420] }
  0xcd   : > { %15016 = vst [vmem:[#allocation112_spill] sm:$0xff] %v12956_v52  ;;  %v5720_v59 = vrot.slane %v5694_v12, %v11813_v31  ;;  %v12977_v22 = vrot.slane %v4420_v36, %v11813_v31  ;;  %v12981_v25 = vrot.slane %v1450_v18, %v11813_v31  ;;  %v5734_v7 = vrot.slane %v5696_v35, %v11813_v31  ;;  %v11205_v1 = vld.sshfl [vmem:[%s11790_s27 + $0x208] sm:$0xff pattern:$0x75316420] }
  0xce   : > { %15017 = vst [vmem:[#allocation113_spill] sm:$0xff] %v12971_v24  ;;  %v5748_v47 = vrot.slane %v5698_v50, %v11813_v31  ;;  %v12987_v17 = vrot.slane %v11199_v23, %v11813_v31  ;;  %v12990_v27 = vrot.slane %v1451_v15, %v11813_v31  ;;  %v1505_v12 = vcombine.low %v11200_v0, %v11201_v37  ;;  %v12997_v35 = vld.sshfl [vmem:[%s11790_s27 + $0x210] sm:$0xff pattern:$0x75316420] }
  0xcf   : > { %15018 = vst [vmem:[#allocation114_spill] sm:$0xff] %v12977_v22  ;;  %15019 = vst [vmem:[#allocation115_spill] sm:$0xff] %v12981_v25  ;;  %v5757_v11 = vcombine.high %v5706_v45, %v5720_v59  ;;  %v4480_v63 = vcombine.low %v12971_v24, %v12977_v22  ;;  %v5756_v16 = vcombine.low %v5706_v45, %v5720_v59  ;;  %v13000_v50 = vld.sshfl [vmem:[%s11790_s27 + $0x218] sm:$0xff pattern:$0x75316420] }
  0xd0   : > { %15020 = vst [vmem:[#allocation116_spill] sm:$0xff] %v12990_v27  ;;  %v5761_v36 = vcombine.high %v5734_v7, %v5748_v47  ;;  %v5760_v18 = vcombine.low %v5734_v7, %v5748_v47  ;;  %v1481_v23 = vcombine.high %v12879_v29, %v12987_v17  ;;  %v1483_v15 = vcombine.high %v12981_v25, %v12990_v27  ;;  %v13021_v60 = vld.sshfl [vmem:[%s11790_s27 + $0x220] sm:$0xff pattern:$0x75316420] }
  0xd1   : > { %v13007_v45 = vrot.slane %v5757_v11, %v11813_v31  ;;  %6490 = vmatmul.mubr.bf16.gmra.mxu0 %v4480_v63  ;;  %v13010_v0 = vrot.slane %v5756_v16, %v11813_v31  ;;  %v1512_v37 = vrot.slane %v1505_v12, %v11813_v31  ;;  %v1519_v59 = vrot.slane %v11202_v5, %v11813_v31  ;;  %v11284_v5 = vld.sshfl [vmem:[%s11790_s27 + $0x480] sm:$0xff pattern:$0x75316420]  ;;  %v11285_v12 = vld.sshfl [vmem:[%s11790_s27 + $0x488] sm:$0xff pattern:$0x75316420] }
  0xd2   : > { %v13015_v7 = vrot.slane %v5761_v36, %v11813_v31  ;;  %v13018_v47 = vrot.slane %v5760_v18, %v11813_v31  ;;  %v1542_v52 = vcombine.low %v11203_v32, %v11204_v55  ;;  %v1543_v9 = vcombine.high %v11203_v32, %v11204_v55  ;;  %v11287_v19 = vld.sshfl [vmem:[%s11790_s27 + $0x498] sm:$0xff pattern:$0x75316420] }
  0xd3   : > { %15021 = vst [vmem:[#allocation117_spill] sm:$0xff] %v13007_v45  ;;  %15022 = vst [vmem:[#allocation118_spill] sm:$0xff] %v13010_v0  ;;  %v1520_v11 = vcombine.low %v1512_v37, %v1519_v59  ;;  %v1544_v30 = vcombine.high %v11205_v1, %v11205_v1  ;;  %v1565_v63 = vrot.slane %v11205_v1, %v11813_v31 }
  0xd4   : > { %15023 = vst [vmem:[#allocation119_spill] sm:$0xff] %v13015_v7  ;;  %15024 = vst [vmem:[#allocation120_spill] sm:$0xff] %v13018_v47  ;;  %v1598_v16 = vcombine.low %v12997_v35, %v13000_v50  ;;  %v5823_v36 = vcombine.low %v13007_v45, %v13015_v7  ;;  %v5820_v18 = vcombine.low %v13010_v0, %v13018_v47  ;;  %v11288_v0 = vld.sshfl [vmem:[%s11790_s27 + $0x4a0] sm:$0xff pattern:$0x75316420] }
  0xd5   : > { %v1551_v28 = vrot.slane %v1542_v52, %v11813_v31  ;;  %v1558_v32 = vrot.slane %v1543_v9, %v11813_v31  ;;  %v1572_v55 = vrot.slane %v1544_v30, %v11813_v31  ;;  %v13040_v37 = vrot.slane %v13021_v60, %v11813_v31 }
  0xd6   : > { %v13036_v1 = vrot.slane %v1598_v16, %v11813_v31  ;;  %v11395_v59 = vcombine.low %v12981_v25, %v1481_v23  ;;  %6569 = vmatprep.mubr.bf16.mxu1 %v5823_v36  ;;  %v2883_v47 = vcombine.low %v11284_v5, %v11285_v12  ;;  %v2884_v52 = vcombine.high %v11284_v5, %v11285_v12 }
  0xd7   : > { %v1573_v45 = vcombine.low %v1551_v28, %v1565_v63  ;;  %v1574_v7 = vcombine.high %v1551_v28, %v1565_v63  ;;  %6570 = vmatmul.mubr.bf16.gmra.mxu1 %v5820_v18  ;;  %v1575_v9 = vcombine.low %v1558_v32, %v1572_v55  ;;  %v1576_v6 = vcombine.high %v1558_v32, %v1572_v55 }
  0xd8   : > { %v13047_v30 = vcombine.low %v13036_v1, %v13040_v37  ;;  %v4500_v16 = vrot.slane %v11395_v59, %v11813_v31  ;;  %v2892_v23 = vrot.slane %v2883_v47, %v11813_v31  ;;  %v2899_v36 = vrot.slane %v2884_v52, %v11813_v31 }
  0xd9   : > { %v3131_v39 = vunpack.i.h.s16 %v1573_v45  ;;  %v3135_v24 = vunpack.i.h.s16 %v1574_v7  ;;  %v13050_v22 = vpack.i.b16 %v1573_v45, %v1520_v11  ;;  %v3133_v28 = vunpack.i.h.s16 %v1575_v9 }
  0xda   : > { %v3137_v63 = vunpack.i.h.s16 %v1576_v6  ;;  %v2939_v5 = vcombine.low %v11287_v19, %v11288_v0  ;;  %v2940_v55 = vcombine.high %v11287_v19, %v11288_v0  ;;  %v11430_v47 = vcombine.low %v2892_v23, %v2899_v36 }
  0xdb   : > { %15025 = vst [vmem:[#allocation121_spill] sm:$0xff] %v13050_v22  ;;  %v13054_v12 = vpack.i.b16 %v1575_v9, %v3131_v39  ;;  %v13056_v18 = vpack.i.b16 %v1576_v6, %v3135_v24  ;;  %v4488_v32 = vcombine.low %v1483_v15, %v13050_v22  ;;  %v13059_v25 = vpack.i.b16 %v1574_v7, %v3133_v28  ;;  %v11219_v22 = vld.sshfl [vmem:[%s11790_s27 + $0x278] sm:$0x5 pattern:$0x75316420] }
  0xdc   : > { %v13062_v59 = vpack.i.b16 %v13047_v30, %v3137_v63  ;;  %v2948_v45 = vrot.slane %v2939_v5, %v11813_v31  ;;  %v2955_v52 = vrot.slane %v2940_v55, %v11813_v31  ;;  %v11432_v27 = vcombine.high %v2892_v23, %v2899_v36  ;;  %v11209_v55 = vld.sshfl [vmem:[%s11790_s27 + $0x228] sm:$0x5 pattern:$0x75316420] }
  0xdd   : > { %15026 = vst [vmem:[#allocation122_spill] sm:$0xff] %v13054_v12  ;;  %15027 = vst [vmem:[#allocation123_spill] sm:$0xff] %v13056_v18  ;;  %v4514_v11 = vrot.slane %v4488_v32, %v11813_v31  ;;  %v1599_v6 = vcombine.high %v12997_v35, %v13000_v50  ;;  %v4490_v39 = vcombine.low %v13054_v12, %v13059_v25  ;;  %v3139_v12 = vunpack.i.h.s16 %v13047_v30 }
  0xde   : > { %15028 = vst [vmem:[#allocation124_spill] sm:$0xff] %v13059_v25  ;;  %15029 = vst [vmem:[#allocation125_spill] sm:$0xff] %v13062_v59  ;;  %v4492_v19 = vcombine.low %v13056_v18, %v13062_v59  ;;  %v5840_v24 = vrot.slane %v11430_v47, %v11813_v31  ;;  %v1600_v15 = vcombine.high %v13021_v60, %v13021_v60  ;;  %v11292_v18 = vld.sshfl [vmem:[%s11790_s27 + $0x4c0] sm:$0x5 pattern:$0x75316420] }
  0xdf   : > { %v4551_v0 = vcombine.high %v4500_v16, %v4514_v11  ;;  %v11434_v7 = vcombine.low %v2948_v45, %v2955_v52  ;;  %v11436_v9 = vcombine.high %v2948_v45, %v2955_v52  ;;  %v5854_v23 = vrot.slane %v11432_v27, %v11813_v31 }
  0xe0   : > { %v4528_v35 = vrot.slane %v4490_v39, %v11813_v31  ;;  %v4542_v50 = vrot.slane %v4492_v19, %v11813_v31  ;;  %v4550_v28 = vcombine.low %v4500_v16, %v4514_v11  ;;  %v1614_v63 = vrot.slane %v1599_v6, %v11813_v31  ;;  %v11210_v16 = vld.sshfl [vmem:[%s11790_s27 + $0x230] sm:$0x5 pattern:$0x75316420] }
  0xe1   : > { %v13081_v36 = vrot.slane %v4551_v0, %v11813_v31  ;;  %v5868_v5 = vrot.slane %v11434_v7, %v11813_v31  ;;  %v5882_v60 = vrot.slane %v11436_v9, %v11813_v31  ;;  %v5891_v32 = vcombine.high %v5840_v24, %v5854_v23  ;;  %v11211_v19 = vld.sshfl [vmem:[%s11790_s27 + $0x238] sm:$0x5 pattern:$0x75316420] }
  0xe2   : > { %v4555_v27 = vcombine.high %v4528_v35, %v4542_v50  ;;  %v4554_v45 = vcombine.low %v4528_v35, %v4542_v50  ;;  %v13087_v47 = vrot.slane %v4550_v28, %v11813_v31  ;;  %v5890_v52 = vcombine.low %v5840_v24, %v5854_v23  ;;  %v11212_v24 = vld.sshfl [vmem:[%s11790_s27 + $0x240] sm:$0xff pattern:$0x75316420]  ;;  %v11213_v23 = vld.sshfl [vmem:[%s11790_s27 + $0x248] sm:$0xff pattern:$0x75316420] }
  0xe3   : > { %v5895_v11 = vcombine.high %v5868_v5, %v5882_v60  ;;  %v13091_v6 = vrot.slane %v5891_v32, %v11813_v31  ;;  %v5894_v39 = vcombine.low %v5868_v5, %v5882_v60  ;;  %v1628_v0 = vrot.slane %v1600_v15, %v11813_v31  ;;  %v11290_v32 = vld.sshfl [vmem:[%s11790_s27 + $0x4b0] sm:$0x5 pattern:$0x75316420] }
  0xe4   : > { %15030 = vst [vmem:[#allocation126_spill] sm:$0xff] %v13087_v47  ;;  %v13096_v7 = vrot.slane %v4555_v27, %v11813_v31  ;;  %v13099_v9 = vrot.slane %v4554_v45, %v11813_v31  ;;  %v13102_v35 = vrot.slane %v5890_v52, %v11813_v31  ;;  %v1630_v50 = vcombine.high %v13036_v1, %v13040_v37  ;;  %v11291_v37 = vld.sshfl [vmem:[%s11790_s27 + $0x4b8] sm:$0x5 pattern:$0x75316420] }
  0xe5   : > { %15031 = vst [vmem:[#allocation127_spill] sm:$0xff] %v13091_v6  ;;  %v13109_v28 = vrot.slane %v5895_v11, %v11813_v31  ;;  %v13112_v15 = vrot.slane %v5894_v39, %v11813_v31  ;;  %v1631_v5 = vcombine.low %v1614_v63, %v1628_v0  ;;  %v1632_v60 = vcombine.high %v1614_v63, %v1628_v0 }
  0xe6   : > { %15032 = vst [vmem:[#allocation128_spill] sm:$0xff] %v13102_v35  ;;  %v4617_v27 = vcombine.low %v13081_v36, %v13096_v7  ;;  %v4614_v45 = vcombine.low %v13087_v47, %v13099_v9  ;;  %v1654_v52 = vcombine.low %v11209_v55, %v11210_v16  ;;  %v1668_v1 = vrot.slane %v11211_v19, %v11813_v31  ;;  %v11215_v16 = vld.sshfl [vmem:[%s11790_s27 + $0x258] sm:$0xff pattern:$0x75316420] }
  0xe7   : > { %15033 = vst [vmem:[#allocation129_spill] sm:$0xff] %v13109_v28  ;;  %15034 = vst [vmem:[#allocation130_spill] sm:$0xff] %v13112_v15  ;;  %v5957_v11 = vcombine.low %v13091_v6, %v13109_v28  ;;  %v5954_v39 = vcombine.low %v13102_v35, %v13112_v15  ;;  %v1691_v63 = vcombine.low %v11212_v24, %v11213_v23  ;;  %v3141_v25 = vunpack.i.h.s16 %v1631_v5  ;;  %v11216_v19 = vld.sshfl [vmem:[%s11790_s27 + $0x260] sm:$0xff pattern:$0x75316420] }
  0xe8   : > { %v1692_v0 = vcombine.high %v11212_v24, %v11213_v23  ;;  %6497 = vmatprep.mubr.bf16.mxu0 %v4617_v27  ;;  %v1661_v59 = vrot.slane %v1654_v52, %v11813_v31  ;;  %v3143_v55 = vunpack.i.h.s16 %v1630_v50  ;;  %v3145_v15 = vunpack.i.h.s16 %v1632_v60  ;;  %v11218_v24 = vld.sshfl [vmem:[%s11790_s27 + $0x270] sm:$0x5 pattern:$0x75316420] }
  0xe9   : > { %6577 = vmatprep.mubr.bf16.mxu1 %v5957_v11  ;;  %6498 = vmatmul.mubr.bf16.gmra.mxu0 %v4614_v45  ;;  %v1700_v6 = vrot.slane %v1691_v63, %v11813_v31  ;;  %v2995_v28 = vcombine.low %v11290_v32, %v11291_v37  ;;  %v13133_v27 = vpack.i.b16 %v1631_v5, %v3139_v12 }
  0xea   : > { %v1707_v35 = vrot.slane %v1692_v0, %v11813_v31  ;;  %6578 = vmatmul.mubr.bf16.gmra.mxu1 %v5954_v39  ;;  %v1669_v23 = vcombine.low %v1661_v59, %v1668_v1  ;;  %v13135_v30 = vpack.i.b16 %v1630_v50, %v3141_v25  ;;  %v13137_v52 = vpack.i.b16 %v1632_v60, %v3143_v55 }
  0xeb   : > { %v3002_v45 = vrot.slane %v2995_v28, %v11813_v31  ;;  %v3009_v63 = vrot.slane %v11292_v18, %v11813_v31  ;;  %v1747_v59 = vcombine.low %v11215_v16, %v11216_v19  ;;  %v1748_v1 = vcombine.high %v11215_v16, %v11216_v19  ;;  %v11719_v19 = vld.sshfl [vmem:[%s11790_s27 + $0x290] sm:$0xff pattern:$0x75316420] }
  0xec   : > { %v11398_v47 = vcombine.low %v1700_v6, %v1707_v35  ;;  %v11400_v11 = vcombine.high %v1700_v6, %v1707_v35  ;;  %v13142_v0 = vpack.i.b16 %v1669_v23, %v3145_v15  ;;  %v4620_v32 = vcombine.low %v13133_v27, %v13135_v30  ;;  %v11220_v6 = vld.sshfl [vmem:[%s11790_s27 + $0x280] sm:$0x5 pattern:$0x75316420] }
  0xed   : > { %v3010_v50 = vcombine.low %v3002_v45, %v3009_v63  ;;  %v1803_v35 = vcombine.low %v11218_v24, %v11219_v22  ;;  %v1756_v15 = vrot.slane %v1747_v59, %v11813_v31  ;;  %v1763_v5 = vrot.slane %v1748_v1, %v11813_v31  ;;  %v11718_v22 = vld.sshfl [vmem:[%s11790_s27 + $0x288] sm:$0xff pattern:$0x75316420]  ;;  %v11720_v23 = vld.sshfl [vmem:[%s11790_s27 + $0x298] sm:$0xff pattern:$0x75316420] }
  0xee   : > { %v4662_v25 = vrot.slane %v11398_v47, %v11813_v31  ;;  %v4676_v12 = vrot.slane %v11400_v11, %v11813_v31  ;;  %v4622_v18 = vcombine.low %v13137_v52, %v13142_v0  ;;  %v4634_v28 = vrot.slane %v4620_v32, %v11813_v31 }
  0xef   : > { %v13154_v37 = vunpack.i.l.s16 %v3010_v50  ;;  %v1810_v39 = vrot.slane %v1803_v35, %v11813_v31  ;;  %v1817_v16 = vrot.slane %v11220_v6, %v11813_v31  ;;  %v1840_v24 = vcombine.low %v11718_v22, %v11719_v19  ;;  %v11142_v19 = vld.sshfl [vmem:[%s11790_s27 + $0x10] sm:$0xff pattern:$0x75316420] }
  0xf0   : > { %v4689_v60 = vcombine.high %v4662_v25, %v4676_v12  ;;  %v4688_v47 = vcombine.low %v4662_v25, %v4676_v12  ;;  %v4648_v55 = vrot.slane %v4622_v18, %v11813_v31  ;;  %v1863_v11 = vrot.slane %v11720_v23, %v11813_v31 }
  0xf1   : > { %v5967_v63 = vrot.slane %v13154_v37, %v11813_v31  ;;  %v1873_v59 = vcombine.low %v11824_v41, %v11827_v42  ;;  %v1818_v12 = vcombine.low %v1810_v39, %v1817_v16  ;;  %v1849_v50 = vrot.slane %v1840_v24, %v11813_v31 }
  0xf2   : > { %v13164_v45 = vrot.slane %v4689_v60, %v11813_v31  ;;  %v13169_v32 = vrot.slane %v4688_v47, %v11813_v31  ;;  %v4685_v1 = vcombine.high %v4634_v28, %v4648_v55  ;;  %v4684_v25 = vcombine.low %v4634_v28, %v4648_v55 }
  0xf3   : > { %v5975_v6 = vcombine.high %v5967_v63, %v5967_v63  ;;  %v13175_v35 = vrot.slane %v5967_v63, %v11813_v31  ;;  %v3167_v18 = vunpack.i.h.s16 %v1873_v59  ;;  %v11402_v60 = vcombine.low %v1756_v15, %v1763_v5 }
  0xf4   : > { %v13178_v22 = vrot.slane %v4685_v1, %v11813_v31  ;;  %v13181_v47 = vrot.slane %v4684_v25, %v11813_v31  ;;  %v1871_v41 = vcombine.low %v1849_v50, %v1863_v11  ;;  %v1872_v42 = vcombine.high %v1849_v50, %v1863_v11 }
  0xf5   : > { %v13184_v28 = vrot.slane %v5975_v6, %v11813_v31  ;;  %v11404_v39 = vcombine.high %v1756_v15, %v1763_v5  ;;  %v4768_v55 = vrot.slane %v11402_v60, %v11813_v31  ;;  %v3680_v16 = vcombine.high %v11867_v8, %v11879_v13  ;;  %v11145_v5 = vld.sshfl [vmem:[%s11790_s27 + $0x28] sm:$0xff pattern:$0x75316420] }
  0xf6   : > { %v4751_v24 = vcombine.low %v13178_v22, %v13164_v45  ;;  %v4748_v23 = vcombine.low %v13181_v47, %v13169_v32  ;;  %v3165_v63 = vunpack.i.h.s16 %v1871_v41  ;;  %v3169_v1 = vunpack.i.h.s16 %v1872_v42 }
  0xf7   : > { %6585 = vmatprep.mubr.bf16.mxu1 %v13184_v28  ;;  %v13195_v11 = vpack.i.b16 %v1871_v41, %v1818_v12  ;;  %v13197_v25 = vpack.i.b16 %v1872_v42, %v3167_v18  ;;  %v4782_v15 = vrot.slane %v11404_v39, %v11813_v31  ;;  %v501_v50 = vcombine.high %v11142_v19, %v11142_v19 }
  0xf8   : > { %6505 = vmatprep.mubr.bf16.mxu0 %v4751_v24  ;;  %6586 = vmatmul.mubr.bf16.gmra.mxu1 %v13175_v35  ;;  %v13202_v8 = vpack.i.b16 %v1873_v59, %v3165_v63  ;;  %v13205_v13 = vpack.i.b16 %v11835_v49, %v3169_v1  ;;  %v522_v12 = vrot.slane %v11142_v19, %v11813_v31 }
  0xf9   : > { %6506 = vmatmul.mubr.bf16.gmra.mxu0 %v4748_v23  ;;  %v4819_v6 = vcombine.high %v4768_v55, %v4782_v15  ;;  %6625 = vmatprep.mubr.bf16.mxu1 %v3680_v16  ;;  %v4818_v60 = vcombine.low %v4768_v55, %v4782_v15  ;;  %v529_v42 = vrot.slane %v501_v50, %v11813_v31 }
  0xfa   : > { %v4758_v18 = vcombine.low %v13195_v11, %v13202_v8  ;;  %v4760_v41 = vcombine.low %v13197_v25, %v13205_v13  ;;  %v557_v59 = vcombine.high %v11145_v5, %v11145_v5  ;;  %v3814_v49 = vcombine.high %v12062_v3, %v12092_v48 }
  0xfb   : > { %v13214_v39 = vrot.slane %v4819_v6, %v11813_v31  ;;  %v578_v16 = vrot.slane %v11145_v5, %v11813_v31  ;;  %v11367_v23 = vcombine.low %v522_v12, %v529_v42  ;;  %v13223_v63 = vrot.slane %v4818_v60, %v11813_v31 }
  0xfc   : > { %v4796_v55 = vrot.slane %v4758_v18, %v11813_v31  ;;  %v4810_v19 = vrot.slane %v4760_v41, %v11813_v31  ;;  %v585_v24 = vrot.slane %v557_v59, %v11813_v31  ;;  %v11369_v1 = vcombine.high %v522_v12, %v529_v42 }
  0xfd   : > { %v3683_v15 = vcombine.high %v11983_v51, %v11985_v54  ;;  %v3685_v50 = vcombine.high %v11992_v62, %v11987_v57  ;;  %v3569_v18 = vrot.slane %v11367_v23, %v11813_v31  ;;  %v3687_v59 = vcombine.high %v12003_v4, %v12015_v20 }
  0xfe   : > { %v4823_v3 = vcombine.high %v4796_v55, %v4810_v19  ;;  %v4822_v48 = vcombine.low %v4796_v55, %v4810_v19  ;;  %v11371_v5 = vcombine.low %v578_v16, %v585_v24  ;;  %v11373_v6 = vcombine.high %v578_v16, %v585_v24 }
  0xff   : > { %v3583_v41 = vrot.slane %v11369_v1, %v11813_v31  ;;  %v3689_v60 = vcombine.high %v12027_v33, %v12018_v21  ;;  %v15035_v54 = vcombine.high %v11924_v43, %v11929_v46  ;;  %v3703_v20 = vrot.slane %v3683_v15, %v11813_v31 }
 0x100   : > { %v13236_v12 = vrot.slane %v4823_v3, %v11813_v31  ;;  %v13239_v51 = vrot.slane %v4822_v48, %v11813_v31  ;;  %v3597_v57 = vrot.slane %v11371_v5, %v11813_v31  ;;  %v3611_v62 = vrot.slane %v11373_v6, %v11813_v31 }
 0x101   : > { %6626 = vmatmul.mubr.bf16.vlgmr.msra.gmra.mxu1 %v15035_v54  ;;  %v3614_v42 = vcombine.low %v3569_v18, %v3583_v41  ;;  %v3615_v4 = vcombine.high %v3569_v18, %v3583_v41  ;;  %v3717_v21 = vrot.slane %v3685_v50, %v11813_v31  ;;  %v3731_v19 = vrot.slane %v3687_v59, %v11813_v31  ;;  %v15036_v59 = vld [vmem:[#allocation24_spill] sm:$0xff]  ;;  %v15039_v54 = vld [vmem:[#allocation27_spill] sm:$0xff] }
 0x102   : > { %6633 = vmatprep.mubr.bf16.mxu1 %v3814_v49  ;;  %v4885_v33 = vcombine.low %v13214_v39, %v13236_v12  ;;  %v4882_v16 = vcombine.low %v13223_v63, %v13239_v51  ;;  %v3618_v55 = vcombine.low %v3597_v57, %v3611_v62  ;;  %v3619_v43 = vcombine.high %v3597_v57, %v3611_v62  ;;  %v15040_v62 = vld [vmem:[#allocation25_spill] sm:$0xff] }
 0x103   : > { %v3647_v46 = vrot.slane %v3615_v4, %v11813_v31  ;;  %v3745_v49 = vrot.slane %v3689_v60, %v11813_v31  ;;  %v3811_v23 = vcombine.high %v12124_v34, %v12131_v53  ;;  %v3749_v1 = vcombine.high %v3703_v20, %v3717_v21  ;;  %v15037_v60 = vld [vmem:[#allocation26_spill] sm:$0xff] }
 0x104   : > { %6513 = vmatprep.mubr.bf16.mxu0 %v4885_v33  ;;  %v3675_v24 = vrot.slane %v3619_v43, %v11813_v31  ;;  %v3633_v15 = vrot.slane %v3614_v42, %v11813_v31  ;;  %v3661_v50 = vrot.slane %v3618_v55, %v11813_v31  ;;  %v3948_v3 = vcombine.high %v12255_v26, %v12266_v38  ;;  %v15038_v38 = vld [vmem:[#allocation36_spill] sm:$0xff] }
 0x105   : > { %6514 = vmatmul.mubr.bf16.gmra.mxu0 %v4882_v16  ;;  %v3753_v48 = vcombine.high %v3731_v19, %v3745_v49  ;;  %v3781_v6 = vrot.slane %v3749_v1, %v11813_v31  ;;  %v828_v18 = vcombine.low %v12158_v14, %v12165_v2  ;;  %v3945_v34 = vcombine.high %v12323_v58, %v12326_v44  ;;  %v15043_v1 = vld [vmem:[#allocation42_spill] sm:$0xff] }
 0x106   : > { %v3681_v5 = vcombine.low %v3647_v46, %v3675_v24  ;;  %v830_v53 = vcombine.low %v12169_v56, %v12172_v40  ;;  %v884_v26 = vcombine.low %v15037_v60, %v15036_v59  ;;  %v886_v57 = vcombine.low %v15039_v54, %v15038_v38  ;;  %v15041_v46 = vld [vmem:[#allocation41_spill] sm:$0xff] }
 0x107   : > { %v3809_v41 = vrot.slane %v3753_v48, %v11813_v31  ;;  %v3817_v42 = vcombine.high %v15040_v62, %v828_v18  ;;  %v3678_v4 = vcombine.low %v3633_v15, %v3661_v50  ;;  %v3748_v14 = vcombine.low %v3703_v20, %v3717_v21  ;;  %v15044_v50 = vld [vmem:[#allocation45_spill] sm:$0xff]  ;;  %v15045_v20 = vld [vmem:[#allocation44_spill] sm:$0xff]  ;;  %v15048_v48 = vld [vmem:[#allocation47_spill] sm:$0xff] }
 0x108   : > { %6809 = vmatprep.mubr.bf16.mxu0 %v3681_v5  ;;  %v3752_v33 = vcombine.low %v3731_v19, %v3745_v49  ;;  %v11376_v16 = vcombine.high %v830_v53, %v12165_v2  ;;  %v11378_v44 = vcombine.high %v12172_v40, %v884_v26  ;;  %v11380_v56 = vcombine.high %v886_v57, %v15036_v59  ;;  %v15046_v2 = vld [vmem:[#allocation50_spill] sm:$0xff]  ;;  %v15047_v19 = vld [vmem:[#allocation48_spill] sm:$0xff] }
 0x109   : > { %6634 = vmatmul.mubr.bf16.gmra.mxu1 %v3811_v23  ;;  %v3815_v58 = vcombine.low %v3781_v6, %v3809_v41  ;;  %v3837_v55 = vrot.slane %v3817_v42, %v11813_v31  ;;  %v11381_v24 = vcombine.high %v15038_v38, %v15041_v46  ;;  %v15042_v23 = vld [vmem:[#allocation43_spill] sm:$0xff]  ;;  %v3955_v21 = vcombine.high %v15045_v20, %v15044_v50  ;;  %v15049_v5 = vld [vmem:[#allocation46_spill] sm:$0xff]  ;;  %v11178_v57 = vld.sshfl [vmem:[%s11790_s27 + $0x130] sm:$0xff pattern:$0x75316420] }
 0x10a   : > { %6641 = vmatprep.mubr.bf16.mxu1 %v3948_v3  ;;  %v3851_v43 = vrot.slane %v11376_v16, %v11813_v31  ;;  %v3953_v15 = vcombine.high %v15043_v1, %v15042_v23  ;;  %v4082_v49 = vcombine.high %v15047_v19, %v15046_v2  ;;  %v3865_v40 = vrot.slane %v11378_v44, %v11813_v31  ;;  %v15050_v50 = vld [vmem:[#allocation53_spill] sm:$0xff] }
 0x10b   : > { %v3879_v3 = vrot.slane %v11380_v56, %v11813_v31  ;;  %v3957_v6 = vcombine.high %v15049_v5, %v15048_v48  ;;  %v3767_v18 = vrot.slane %v3748_v14, %v11813_v31  ;;  %v3795_v41 = vrot.slane %v3752_v33, %v11813_v31  ;;  %v11181_v14 = vld.sshfl [vmem:[%s11790_s27 + $0x148] sm:$0xff pattern:$0x75316420]  ;;  %v15054_v19 = vld [vmem:[#allocation57_spill] sm:$0xff] }
 0x10c   : > { %v3883_v53 = vcombine.high %v3837_v55, %v3851_v43  ;;  %v3971_v59 = vrot.slane %v11381_v24, %v11813_v31  ;;  %v3985_v26 = vrot.slane %v3953_v15, %v11813_v31  ;;  %v3999_v38 = vrot.slane %v3955_v21, %v11813_v31  ;;  %v15053_v21 = vld [vmem:[#allocation61_spill] sm:$0xff] }
 0x10d   : > { %6810 = vmatmul.mubr.bf16.vlgmr.msra.gmra.mxu0 %v3678_v4  ;;  %v3887_v60 = vcombine.high %v3865_v40, %v3879_v3  ;;  %v4013_v54 = vrot.slane %v3957_v6, %v11813_v31  ;;  %v3882_v4 = vcombine.low %v3837_v55, %v3851_v43  ;;  %v3812_v33 = vcombine.low %v3767_v18, %v3795_v41  ;;  %v15052_v43 = vld [vmem:[#allocation60_spill] sm:$0xff]  ;;  %v13314_v18 = vpop.f32.mrf.mxu0  ;;  %v13316_v41 = vpop.f32.mrf.mxu1 }
 0x10e   : > { %6817 = vmatprep.mubr.bf16.mxu0 %v3815_v58  ;;  %v3915_v62 = vrot.slane %v3883_v53, %v11813_v31  ;;  %v3886_v16 = vcombine.low %v3865_v40, %v3879_v3  ;;  %v1097_v44 = vcombine.high %v11178_v57, %v11178_v57  ;;  %v4017_v56 = vcombine.high %v3971_v59, %v3985_v26 }
 0x10f   : > { %v3943_v42 = vrot.slane %v3887_v60, %v11813_v31  ;;  %v4021_v46 = vcombine.high %v3999_v38, %v4013_v54  ;;  %v1118_v24 = vrot.slane %v11178_v57, %v11813_v31  ;;  %v1153_v1 = vcombine.high %v11181_v14, %v11181_v14 }
 0x110   : > { %v1125_v23 = vrot.slane %v1097_v44, %v11813_v31  ;;  %v1174_v15 = vrot.slane %v11181_v14, %v11813_v31  ;;  %v3901_v55 = vrot.slane %v3882_v4, %v11813_v31  ;;  %v4216_v2 = vcombine.high %v15053_v21, %v15052_v43  ;;  %v15061_v43 = vld [vmem:[#allocation80_spill] sm:$0xff] }
 0x111   : > { %6642 = vmatmul.mubr.bf16.gmra.mxu1 %v3945_v34  ;;  %v3949_v58 = vcombine.low %v3915_v62, %v3943_v42  ;;  %v15051_v34 = vld [vmem:[#allocation51_spill] sm:$0xff]  ;;  %v3929_v3 = vrot.slane %v3886_v16, %v11813_v31  ;;  %v1181_v48 = vrot.slane %v1153_v1, %v11813_v31  ;;  %v4049_v53 = vrot.slane %v4017_v56, %v11813_v31  ;;  %v6525_v16 = vpop.f32.mrf.mxu1 }
 0x112   : > { %6649 = vmatprep.mubr.bf16.mxu1 %v4082_v49  ;;  %v4079_v20 = vcombine.high %v15051_v34, %v15050_v50  ;;  %v15055_v49 = vld [vmem:[#allocation56_spill] sm:$0xff]  ;;  %v11383_v5 = vcombine.low %v1118_v24, %v1125_v23  ;;  %v11385_v6 = vcombine.high %v1118_v24, %v1125_v23  ;;  %v4077_v60 = vrot.slane %v4021_v46, %v11813_v31  ;;  %v15058_v23 = vld [vmem:[#allocation79_spill] sm:$0xff]  ;;  %v15059_v46 = vld [vmem:[#allocation78_spill] sm:$0xff] }
 0x113   : > { %v4085_v40 = vcombine.high %v15055_v49, %v15054_v19  ;;  %v4016_v62 = vcombine.low %v3971_v59, %v3985_v26  ;;  %v11387_v42 = vcombine.low %v1174_v15, %v1181_v48  ;;  %v4020_v44 = vcombine.low %v3999_v38, %v4013_v54  ;;  %v15057_v24 = vld [vmem:[#allocation76_spill] sm:$0xff]  ;;  %v13338_v49 = vpop.f32.mrf.mxu1 }
 0x114   : > { %v13324_v4 = vrot.slane %v11383_v5, %v11813_v31  ;;  %v13327_v14 = vrot.slane %v11385_v6, %v11813_v31  ;;  %v4223_v1 = vcombine.high %v15059_v46, %v15058_v23  ;;  %v3946_v50 = vcombine.low %v3901_v55, %v3929_v3  ;;  %v15060_v34 = vld [vmem:[#allocation84_spill] sm:$0xff]  ;;  %v15066_v23 = vld [vmem:[#allocation97_spill] sm:$0xff] }
 0x115   : > { %6818 = vmatmul.mubr.bf16.gmra.mxu0 %v3812_v33  ;;  %v13321_v57 = vrot.slane %v4085_v40, %v11813_v31  ;;  %v6445_v33 = vpop.f32.mrf.mxu0  ;;  %v4147_v59 = vrot.slane %v11387_v42, %v11813_v31  ;;  %v11389_v26 = vcombine.high %v1174_v15, %v1181_v48  ;;  %v4225_v21 = vcombine.high %v15061_v43, %v15060_v34  ;;  %v15063_v40 = vld [vmem:[#allocation70_spill] sm:$0xff]  ;;  %v6528_v6 = vpop.f32.mrf.mxu1  ;;  %v15065_v42 = vld [vmem:[#allocation89_spill] sm:$0xff] }
 0x116   : > { %6825 = vmatprep.mubr.bf16.mxu0 %v3949_v58  ;;  %v15056_v58 = vld [vmem:[#allocation77_spill] sm:$0xff]  ;;  %v4618_v54 = vcombine.high %v13081_v36, %v13096_v7  ;;  %v1424_v55 = vcombine.low %v12861_v61, %v12864_v10  ;;  %v4035_v3 = vrot.slane %v4016_v62, %v11813_v31  ;;  %v15067_v62 = vld [vmem:[#allocation96_spill] sm:$0xff]  ;;  %v1480_v34 = vcombine.low %v12879_v29, %v12987_v17 }
 0x117   : > { %v4221_v56 = vcombine.high %v15057_v24, %v15056_v58  ;;  %v13336_v19 = vpop.f32.mrf.mxu0  ;;  %v4151_v38 = vcombine.high %v13321_v57, %v13324_v4  ;;  %v4155_v48 = vcombine.high %v13327_v14, %v4147_v59  ;;  %v4267_v58 = vrot.slane %v4223_v1, %v11813_v31  ;;  %v15070_v1 = vld [vmem:[#allocation102_spill] sm:$0xff] }
 0x118   : > { %v4239_v61 = vrot.slane %v11389_v26, %v11813_v31  ;;  %v4281_v24 = vrot.slane %v4225_v21, %v11813_v31  ;;  %v1426_v46 = vcombine.low %v15067_v62, %v15066_v23  ;;  %v4150_v21 = vcombine.low %v13321_v57, %v13324_v4  ;;  %v15072_v4 = vld [vmem:[#allocation92_spill] sm:$0xff] }
 0x119   : > { %6650 = vmatmul.mubr.bf16.gmra.mxu1 %v4079_v20  ;;  %v4083_v20 = vcombine.low %v4049_v53, %v4077_v60  ;;  %v6448_v5 = vpop.f32.mrf.mxu0  ;;  %v4063_v53 = vrot.slane %v4020_v44, %v11813_v31  ;;  %v15064_v60 = vld [vmem:[#allocation90_spill] sm:$0xff]  ;;  %v4253_v16 = vrot.slane %v4221_v56, %v11813_v31  ;;  %v4183_v44 = vrot.slane %v4151_v38, %v11813_v31 }
 0x11a   : > { %6657 = vmatprep.mubr.bf16.mxu1 %v4216_v2  ;;  %v15062_v2 = vld [vmem:[#allocation71_spill] sm:$0xff]  ;;  %v4350_v33 = vcombine.high %v15065_v42, %v15064_v60  ;;  %v4211_v43 = vrot.slane %v4155_v48, %v11813_v31  ;;  %v15069_v56 = vld [vmem:[#allocation98_spill] sm:$0xff]  ;;  %v11392_v6 = vcombine.high %v1426_v46, %v12864_v10  ;;  %v11394_v29 = vcombine.high %v15066_v23, %v1480_v34  ;;  %v15075_v23 = vld [vmem:[#allocation104_spill] sm:$0xff] }
 0x11b   : > { %v4213_v15 = vcombine.high %v15063_v40, %v15062_v2  ;;  %v15068_v2 = vld [vmem:[#allocation99_spill] sm:$0xff]  ;;  %v13366_v5 = vpop.f32.mrf.mxu0  ;;  %v4080_v26 = vcombine.low %v4035_v3, %v4063_v53  ;;  %v4154_v38 = vcombine.low %v13327_v14, %v4147_v59  ;;  %v4289_v48 = vcombine.high %v4267_v58, %v4281_v24  ;;  %v15071_v60 = vld [vmem:[#allocation126_spill] sm:$0xff] }
 0x11c   : > { %v4353_v40 = vcombine.high %v15069_v56, %v15068_v2  ;;  %v4285_v3 = vcombine.high %v4239_v61, %v4253_v16  ;;  %v15074_v59 = vld [vmem:[#allocation103_spill] sm:$0xff]  ;;  %v13390_v46 = vrot.slane %v11392_v6, %v11813_v31  ;;  %v13393_v34 = vrot.slane %v11394_v29, %v11813_v31 }
 0x11d   : > { %6826 = vmatmul.mubr.bf16.gmra.mxu0 %v3946_v50  ;;  %v4355_v50 = vcombine.high %v15070_v1, %v1424_v55  ;;  %v4484_v62 = vcombine.high %v15075_v23, %v15074_v59  ;;  %v4197_v1 = vrot.slane %v4154_v38, %v11813_v31  ;;  %v4284_v6 = vcombine.low %v4239_v61, %v4253_v16  ;;  %v11214_v59 = vld.sshfl [vmem:[%s11790_s27 + $0x250] sm:$0xff pattern:$0x75316420]  ;;  %v15078_v23 = vld [vmem:[#allocation114_spill] sm:$0xff] }
 0x11e   : > { %6833 = vmatprep.mubr.bf16.mxu0 %v4083_v20  ;;  %v6453_v20 = vpop.f32.mrf.mxu0  ;;  %v13378_v53 = vrot.slane %v4353_v40, %v11813_v31  ;;  %v4169_v40 = vrot.slane %v4150_v21, %v11813_v31  ;;  %v15080_v21 = vld [vmem:[#allocation121_spill] sm:$0xff]  ;;  %v15081_v61 = vld [vmem:[#allocation124_spill] sm:$0xff] }
 0x11f   : > { %v13381_v10 = vrot.slane %v4355_v50, %v11813_v31  ;;  %v4345_v50 = vrot.slane %v4289_v48, %v11813_v31  ;;  %v4288_v20 = vcombine.low %v4267_v58, %v4281_v24  ;;  %v4423_v58 = vcombine.high %v13390_v46, %v13393_v34  ;;  %v15082_v24 = vld [vmem:[#allocation122_spill] sm:$0xff] }
 0x120   : > { %v13383_v57 = vpop.f32.mrf.mxu0  ;;  %v4491_v48 = vcombine.high %v15082_v24, %v15081_v61  ;;  %v4214_v55 = vcombine.low %v4169_v40, %v4197_v1  ;;  %v4303_v42 = vrot.slane %v4284_v6, %v11813_v31  ;;  %v4422_v24 = vcombine.low %v13390_v46, %v13393_v34 }
 0x121   : > { %6658 = vmatmul.mubr.bf16.gmra.mxu1 %v4213_v15  ;;  %v4217_v15 = vcombine.low %v4183_v44, %v4211_v43  ;;  %v15076_v44 = vld [vmem:[#allocation116_spill] sm:$0xff]  ;;  %v15077_v43 = vld [vmem:[#allocation115_spill] sm:$0xff]  ;;  %v4419_v29 = vcombine.high %v13378_v53, %v13381_v10 }
 0x122   : > { %6665 = vmatprep.mubr.bf16.mxu1 %v4350_v33  ;;  %v15073_v33 = vld [vmem:[#allocation91_spill] sm:$0xff]  ;;  %v1482_v2 = vcombine.low %v15077_v43, %v15076_v44  ;;  %v6456_v56 = vpop.f32.mrf.mxu0  ;;  %v11397_v38 = vcombine.high %v15076_v44, %v15080_v21  ;;  %v4621_v44 = vcombine.high %v13133_v27, %v13135_v30  ;;  %v4883_v27 = vcombine.high %v13223_v63, %v13239_v51  ;;  %v15107_v63 = vld [vmem:[#allocation12_spill] sm:$0xff] }
 0x123   : > { %v4347_v14 = vcombine.high %v15073_v33, %v15072_v4  ;;  %v4317_v4 = vrot.slane %v4285_v3, %v11813_v31  ;;  %v13410_v56 = vpop.f32.mrf.mxu1  ;;  %v15084_v3 = vld [vmem:[#allocation123_spill] sm:$0xff]  ;;  %v4535_v1 = vrot.slane %v4491_v48, %v11813_v31  ;;  %v4465_v36 = vrot.slane %v4422_v24, %v11813_v31 }
 0x124   : > { %v11396_v16 = vcombine.high %v1482_v2, %v12987_v17  ;;  %v4331_v17 = vrot.slane %v4288_v20, %v11813_v31  ;;  %v4451_v2 = vrot.slane %v4419_v29, %v11813_v31  ;;  %v4521_v61 = vrot.slane %v11397_v38, %v11813_v31 }
 0x125   : > { %6834 = vmatmul.mubr.bf16.gmra.mxu0 %v4080_v26  ;;  %v15079_v26 = vld [vmem:[#allocation113_spill] sm:$0xff]  ;;  %v4351_v21 = vcombine.low %v4317_v4, %v4345_v50  ;;  %v13428_v40 = vrot.slane %v4621_v44, %v11813_v31  ;;  %v1714_v20 = vrot.slane %v11214_v59, %v11813_v31 }
 0x126   : > { %6841 = vmatprep.mubr.bf16.mxu0 %v4217_v15  ;;  %v4481_v43 = vcombine.high %v15079_v26, %v15078_v23  ;;  %v15083_v15 = vld [vmem:[#allocation125_spill] sm:$0xff]  ;;  %v1693_v23 = vcombine.high %v11214_v59, %v11214_v59  ;;  %v6533_v26 = vpop.f32.mrf.mxu1  ;;  %v4418_v59 = vcombine.low %v13378_v53, %v13381_v10 }
 0x127   : > { %v4493_v33 = vcombine.high %v15084_v3, %v15083_v15 }
 0x128   : > { %v13435_v30 = vpop.f32.mrf.mxu1  ;;  %v1721_v4 = vrot.slane %v1693_v23, %v11813_v31  ;;  %v4437_v34 = vrot.slane %v4418_v59, %v11813_v31 }
 0x129   : > { %6666 = vmatmul.mubr.bf16.gmra.mxu1 %v4347_v14  ;;  %v4623_v14 = vcombine.high %v13137_v52, %v13142_v0  ;;  %v4479_v52 = vrot.slane %v4423_v58, %v11813_v31  ;;  %v4507_v0 = vrot.slane %v11396_v16, %v11813_v31  ;;  %v4549_v50 = vrot.slane %v4493_v33, %v11813_v31 }
 0x12a   : > { %6673 = vmatprep.mubr.bf16.mxu1 %v4484_v62  ;;  %v6536_v38 = vpop.f32.mrf.mxu1  ;;  %v4759_v58 = vcombine.high %v13195_v11, %v13202_v8  ;;  %v4761_v16 = vcombine.high %v13197_v25, %v13205_v13  ;;  %v4348_v33 = vcombine.low %v4303_v42, %v4331_v17  ;;  %v11399_v13 = vcombine.low %v1714_v20, %v1721_v4 }
 0x12b   : > { %v13431_v62 = vrot.slane %v4623_v14, %v11813_v31  ;;  %v4485_v11 = vcombine.low %v4451_v2, %v4479_v52  ;;  %v4553_v25 = vcombine.high %v4507_v0, %v4521_v61  ;;  %v4557_v8 = vcombine.high %v4535_v1, %v4549_v50 }
 0x12c   : > { %v13457_v48 = vrot.slane %v4759_v58, %v11813_v31  ;;  %v13460_v15 = vrot.slane %v4761_v16, %v11813_v31  ;;  %v11401_v42 = vcombine.high %v1714_v20, %v1721_v4  ;;  %v13469_v46 = vpop.f32.mrf.mxu0  ;;  %v4669_v3 = vrot.slane %v11399_v13, %v11813_v31 }
 0x12d   : > { %6842 = vmatmul.mubr.bf16.gmra.mxu0 %v4214_v55  ;;  %v4687_v6 = vcombine.high %v13428_v40, %v13431_v62  ;;  %v4686_v29 = vcombine.low %v13428_v40, %v13431_v62  ;;  %v11217_v55 = vld.sshfl [vmem:[%s11790_s27 + $0x268] sm:$0xff pattern:$0x75316420]  ;;  %v4585_v7 = vrot.slane %v4553_v25, %v11813_v31  ;;  %v4552_v17 = vcombine.low %v4507_v0, %v4521_v61  ;;  %v15087_v0 = vld [vmem:[#allocation2_spill] sm:$0xff]  ;;  %v15099_v62 = vld [vmem:[#allocation17_spill] sm:$0xff] }
 0x12e   : > { %6849 = vmatprep.mubr.bf16.mxu0 %v4351_v21  ;;  %v4825_v53 = vcombine.high %v13457_v48, %v13460_v15  ;;  %v4824_v10 = vcombine.low %v13457_v48, %v13460_v15  ;;  %v4683_v23 = vrot.slane %v11401_v42, %v11813_v31  ;;  %v1770_v44 = vrot.slane %v11217_v55, %v11813_v31  ;;  %v6461_v26 = vpop.f32.mrf.mxu0 }
 0x12f   : > { %v15085_v21 = vcombine.high %v15071_v60, %v13099_v9  ;;  %v4556_v2 = vcombine.low %v4535_v1, %v4549_v50  ;;  %v4482_v20 = vcombine.low %v4437_v34, %v4465_v36  ;;  %v15086_v4 = vcombine.high %v13178_v22, %v13164_v45  ;;  %v15088_v1 = vld [vmem:[#allocation3_spill] sm:$0xff]  ;;  %v15089_v22 = vld [vmem:[#allocation14_spill] sm:$0xff]  ;;  %v15090_v50 = vld [vmem:[#allocation4_spill] sm:$0xff] }
 0x130   : > { %v13482_v52 = vpop.f32.mrf.mxu0  ;;  %v4691_v58 = vcombine.high %v4669_v3, %v4683_v23  ;;  %v4571_v24 = vrot.slane %v4552_v17, %v11813_v31  ;;  %v4886_v61 = vcombine.high %v13214_v39, %v13236_v12  ;;  %v2020_v45 = vcombine.low %v15088_v1, %v15087_v0  ;;  %v11250_v1 = vld.sshfl [vmem:[%s11790_s27 + $0x370] sm:$0xff pattern:$0x75316420] }
 0x131   : > { %6674 = vmatmul.mubr.bf16.gmra.mxu1 %v4481_v43  ;;  %v1749_v43 = vcombine.high %v11217_v55, %v11217_v55  ;;  %v4599_v9 = vrot.slane %v4556_v2, %v11813_v31  ;;  %v4719_v25 = vrot.slane %v4687_v6, %v11813_v31  ;;  %v15091_v39 = vcombine.high %v13181_v47, %v13169_v32  ;;  %v15094_v6 = vld [vmem:[#allocation8_spill] sm:$0xff] }
 0x132   : > { %6681 = vmatprep.mubr.bf16.mxu1 %v4618_v54  ;;  %v4613_v54 = vrot.slane %v4557_v8, %v11813_v31  ;;  %v13487_v55 = vpop.f32.mrf.mxu1  ;;  %v6464_v59 = vpop.f32.mrf.mxu0  ;;  %v4747_v8 = vrot.slane %v4691_v58, %v11813_v31  ;;  %v4690_v34 = vcombine.low %v4669_v3, %v4683_v23  ;;  %v4705_v32 = vrot.slane %v4686_v29, %v11813_v31  ;;  %v15097_v3 = vld [vmem:[#allocation11_spill] sm:$0xff]  ;;  %v15098_v23 = vld [vmem:[#allocation10_spill] sm:$0xff] }
 0x133   : > { %v1777_v14 = vrot.slane %v1749_v43, %v11813_v31  ;;  %v4616_v12 = vcombine.low %v4571_v24, %v4599_v9  ;;  %v4881_v40 = vrot.slane %v4825_v53, %v11813_v31  ;;  %v15100_v29 = vld [vmem:[#allocation15_spill] sm:$0xff]  ;;  %v2289_v53 = vcombine.high %v11250_v1, %v11250_v1 }
 0x134   : > { %v4619_v38 = vcombine.low %v4585_v7, %v4613_v54  ;;  %v6541_v60 = vpop.f32.mrf.mxu1  ;;  %v15092_v7 = vld [vmem:[#allocation6_spill] sm:$0xff]  ;;  %v15093_v54 = vld [vmem:[#allocation5_spill] sm:$0xff]  ;;  %v4733_v47 = vrot.slane %v4690_v34, %v11813_v31  ;;  %v2076_v9 = vcombine.low %v15100_v29, %v15099_v62 }
 0x135   : > { %6850 = vmatmul.mubr.bf16.gmra.mxu0 %v4348_v33  ;;  %v11403_v16 = vcombine.low %v1770_v44, %v1777_v14  ;;  %v11405_v33 = vcombine.high %v1770_v44, %v1777_v14  ;;  %v4889_v44 = vcombine.high %v15093_v54, %v15092_v7  ;;  %v15095_v14 = vld [vmem:[#allocation7_spill] sm:$0xff]  ;;  %v15101_v60 = vld [vmem:[#allocation18_spill] sm:$0xff]  ;;  %v15104_v7 = vld [vmem:[#allocation21_spill] sm:$0xff] }
 0x136   : > { %6857 = vmatprep.mubr.bf16.mxu0 %v4485_v11  ;;  %v2022_v11 = vcombine.low %v15090_v50, %v15089_v22  ;;  %v13501_v43 = vpop.f32.mrf.mxu1  ;;  %v4891_v26 = vcombine.high %v15095_v14, %v15094_v6  ;;  %v11410_v34 = vcombine.high %v15089_v22, %v2076_v9  ;;  %v15105_v54 = vld [vmem:[#allocation20_spill] sm:$0xff]  ;;  %v15106_v6 = vld [vmem:[#allocation13_spill] sm:$0xff]  ;;  %v15109_v14 = vld [vmem:[#allocation22_spill] sm:$0xff] }
 0x137   : > { %v4775_v13 = vrot.slane %v11403_v16, %v11813_v31  ;;  %v4789_v42 = vrot.slane %v11405_v33, %v11813_v31  ;;  %v4909_v58 = vrot.slane %v4889_v44, %v11813_v31  ;;  %v5029_v44 = vcombine.high %v15105_v54, %v15104_v7  ;;  %v15112_v29 = vld [vmem:[#allocation33_spill] sm:$0xff]  ;;  %v15113_v9 = vld [vmem:[#allocation32_spill] sm:$0xff] }
 0x138   : > { %v6544_v36 = vpop.f32.mrf.mxu1  ;;  %v11408_v2 = vcombine.high %v2022_v11, %v15087_v0  ;;  %v4923_v16 = vrot.slane %v4891_v26, %v11813_v31  ;;  %v5017_v51 = vcombine.high %v15107_v63, %v15106_v6 }
 0x139   : > { %6682 = vmatmul.mubr.bf16.gmra.mxu1 %v15085_v21  ;;  %v15096_v21 = vld [vmem:[#allocation9_spill] sm:$0xff]  ;;  %v4820_v50 = vcombine.low %v4775_v13, %v4789_v42 }
 0x13a   : > { %6689 = vmatprep.mubr.bf16.mxu1 %v15086_v4  ;;  %v4893_v17 = vcombine.high %v15096_v21, %v2020_v45  ;;  %v4821_v4 = vcombine.high %v4775_v13, %v4789_v42  ;;  %v4951_v59 = vrot.slane %v11408_v2, %v11813_v31  ;;  %v4750_v45 = vcombine.low %v4705_v32, %v4733_v47  ;;  %v15108_v42 = vld [vmem:[#allocation28_spill] sm:$0xff]  ;;  %v11253_v32 = vld.sshfl [vmem:[%s11790_s27 + $0x388] sm:$0xff pattern:$0x75316420] }
 0x13b   : > { %v4955_v11 = vcombine.high %v4909_v58, %v4923_v16  ;;  %v4867_v13 = vrot.slane %v4824_v10, %v11813_v31  ;;  %v5154_v26 = vcombine.high %v15109_v14, %v15108_v42  ;;  %v2317_v2 = vrot.slane %v2289_v53, %v11813_v31 }
 0x13c   : > { %v4937_v33 = vrot.slane %v4893_v17, %v11813_v31  ;;  %v4853_v24 = vrot.slane %v4821_v4, %v11813_v31  ;;  %v13551_v17 = vrot.slane %v11250_v1, %v11813_v31  ;;  %v5043_v4 = vrot.slane %v11410_v34, %v11813_v31  ;;  %v15118_v34 = vld [vmem:[#allocation38_spill] sm:$0xff] }
 0x13d   : > { %6858 = vmatmul.mubr.bf16.gmra.mxu0 %v4482_v20  ;;  %v4753_v20 = vcombine.low %v4719_v25, %v4747_v8  ;;  %v15103_v8 = vld [vmem:[#allocation19_spill] sm:$0xff]  ;;  %v4987_v22 = vrot.slane %v4955_v11, %v11813_v31  ;;  %v5085_v10 = vrot.slane %v5029_v44, %v11813_v31  ;;  %v2366_v42 = vrot.slane %v11253_v32, %v11813_v31 }
 0x13e   : > { %6865 = vmatprep.mubr.bf16.mxu0 %v4619_v38  ;;  %v5020_v38 = vcombine.high %v15098_v23, %v15097_v3  ;;  %v4959_v25 = vcombine.high %v4937_v33, %v4951_v59  ;;  %v4954_v23 = vcombine.low %v4909_v58, %v4923_v16  ;;  %v15116_v16 = vld [vmem:[#allocation29_spill] sm:$0xff] }
 0x140   : > { %v5015_v21 = vrot.slane %v4959_v25, %v11813_v31  ;;  %v4973_v53 = vrot.slane %v4954_v23, %v11813_v31 }
 0x141   : > { %6690 = vmatmul.mubr.bf16.gmra.mxu1 %v15091_v39  ;;  %v11413_v39 = vcombine.high %v15101_v60, %v15103_v8 }
 0x142   : > { %6697 = vmatprep.mubr.bf16.mxu1 %v4886_v61  ;;  %v15102_v61 = vld [vmem:[#allocation16_spill] sm:$0xff]  ;;  %v5021_v11 = vcombine.low %v4987_v22, %v5015_v21 }
 0x143   : > { %v2078_v0 = vcombine.low %v15102_v61, %v15101_v60  ;;  %v5071_v15 = vrot.slane %v11413_v39, %v11813_v31  ;;  %v5159_v60 = vcombine.high %v15113_v9, %v15112_v29  ;;  %v15114_v61 = vld [vmem:[#allocation35_spill] sm:$0xff]  ;;  %v2345_v39 = vcombine.high %v11253_v32, %v11253_v32  ;;  %v15120_v9 = vld [vmem:[#allocation52_spill] sm:$0xff] }
 0x145   : > { %6866 = vmatmul.mubr.bf16.gmra.mxu0 %v4616_v12  ;;  %v4887_v12 = vcombine.low %v4853_v24, %v4881_v40  ;;  %v11412_v36 = vcombine.high %v2078_v0, %v15099_v62  ;;  %v15110_v24 = vld [vmem:[#allocation31_spill] sm:$0xff]  ;;  %v15111_v40 = vld [vmem:[#allocation30_spill] sm:$0xff]  ;;  %v5093_v8 = vcombine.high %v5071_v15, %v5085_v10  ;;  %v5191_v44 = vrot.slane %v5159_v60, %v11813_v31  ;;  %v15121_v60 = vld [vmem:[#allocation49_spill] sm:$0xff] }
 0x146   : > { %6873 = vmatprep.mubr.bf16.mxu0 %v4753_v20  ;;  %v5157_v62 = vcombine.high %v15111_v40, %v15110_v24  ;;  %v15115_v0 = vld [vmem:[#allocation34_spill] sm:$0xff]  ;;  %v2373_v14 = vrot.slane %v2345_v39, %v11813_v31  ;;  %v5297_v32 = vcombine.high %v15121_v60, %v15120_v9 }
 0x147   : > { %v13554_v20 = vpop.f32.mrf.mxu0  ;;  %v5057_v48 = vrot.slane %v11412_v36, %v11813_v31  ;;  %v5161_v1 = vcombine.high %v15115_v0, %v15114_v61  ;;  %v15119_v36 = vld [vmem:[#allocation37_spill] sm:$0xff]  ;;  %v15122_v0 = vld [vmem:[#allocation40_spill] sm:$0xff]  ;;  %v15137_v60 = vld [vmem:[#allocation74_spill] sm:$0xff] }
 0x148   : > { %v5288_v7 = vcombine.high %v15119_v36, %v15118_v34  ;;  %v5177_v54 = vrot.slane %v5157_v62, %v11813_v31  ;;  %v11419_v62 = vcombine.low %v2366_v42, %v2373_v14  ;;  %v11421_v29 = vcombine.high %v2366_v42, %v2373_v14  ;;  %v15128_v34 = vld [vmem:[#allocation64_spill] sm:$0xff]  ;;  %v15129_v36 = vld [vmem:[#allocation63_spill] sm:$0xff]  ;;  %v15130_v42 = vld [vmem:[#allocation66_spill] sm:$0xff] }
 0x149   : > { %6698 = vmatmul.mubr.bf16.gmra.mxu1 %v4883_v27  ;;  %v4839_v27 = vrot.slane %v4820_v50, %v11813_v31  ;;  %v6469_v47 = vpop.f32.mrf.mxu0  ;;  %v5089_v25 = vcombine.high %v5043_v4, %v5057_v48  ;;  %v5205_v6 = vrot.slane %v5161_v1, %v11813_v31  ;;  %v5088_v21 = vcombine.low %v5043_v4, %v5057_v48  ;;  %v15123_v1 = vld [vmem:[#allocation39_spill] sm:$0xff]  ;;  %v15124_v48 = vld [vmem:[#allocation58_spill] sm:$0xff]  ;;  %v15131_v14 = vld [vmem:[#allocation65_spill] sm:$0xff] }
 0x14a   : > { %6705 = vmatprep.mubr.bf16.mxu1 %v5020_v38  ;;  %v4958_v38 = vcombine.low %v4937_v33, %v4951_v59  ;;  %v15117_v33 = vld [vmem:[#allocation23_spill] sm:$0xff]  ;;  %v5092_v47 = vcombine.low %v5071_v15, %v5085_v10  ;;  %v15125_v15 = vld [vmem:[#allocation54_spill] sm:$0xff]  ;;  %v5339_v39 = vrot.slane %v11421_v29, %v11813_v31 }
 0x14b   : > { %v4884_v3 = vcombine.low %v4839_v27, %v4867_v13  ;;  %v13568_v50 = vpop.f32.mrf.mxu0  ;;  %v5151_v59 = vcombine.high %v15117_v33, %v15116_v16  ;;  %v5121_v27 = vrot.slane %v5089_v25, %v11813_v31  ;;  %v5149_v13 = vrot.slane %v5093_v8, %v11813_v31  ;;  %v15126_v16 = vld [vmem:[#allocation82_spill] sm:$0xff] }
 0x14c   : > { %v5107_v4 = vrot.slane %v5088_v21, %v11813_v31  ;;  %v5422_v10 = vcombine.high %v15125_v15, %v15124_v48  ;;  %v5325_v8 = vrot.slane %v11419_v62, %v11813_v31  ;;  %v15127_v33 = vld [vmem:[#allocation62_spill] sm:$0xff]  ;;  %v15141_v15 = vld [vmem:[#allocation87_spill] sm:$0xff] }
 0x14d   : > { %6874 = vmatmul.mubr.bf16.gmra.mxu0 %v4750_v45  ;;  %v11415_v45 = vcombine.low %v13551_v17, %v2317_v2  ;;  %v6472_v58 = vpop.f32.mrf.mxu0  ;;  %v5155_v40 = vcombine.low %v5121_v27, %v5149_v13 }
 0x14e   : > { %6881 = vmatprep.mubr.bf16.mxu0 %v4887_v12  ;;  %v5001_v12 = vrot.slane %v4958_v38, %v11813_v31  ;;  %v11417_v38 = vcombine.high %v13551_v17, %v2317_v2  ;;  %v5135_v17 = vrot.slane %v5092_v47, %v11813_v31  ;;  %v5353_v58 = vrot.slane %v5297_v32, %v11813_v31  ;;  %v15138_v32 = vld [vmem:[#allocation72_spill] sm:$0xff] }
 0x14f   : > { %v5219_v63 = vrot.slane %v11415_v45, %v11813_v31  ;;  %v5285_v45 = vcombine.high %v15123_v1, %v15122_v0 }
 0x150   : > { %v5018_v22 = vcombine.low %v4973_v53, %v5001_v12  ;;  %v5311_v25 = vrot.slane %v11417_v38, %v11813_v31  ;;  %v5222_v53 = vcombine.low %v5177_v54, %v5191_v44  ;;  %v5152_v27 = vcombine.low %v5107_v4, %v5135_v17  ;;  %v15140_v4 = vld [vmem:[#allocation81_spill] sm:$0xff] }
 0x151   : > { %6706 = vmatmul.mubr.bf16.gmra.mxu1 %v5017_v51  ;;  %v13580_v51 = vpop.f32.mrf.mxu1  ;;  %v5227_v23 = vcombine.high %v5205_v6, %v5219_v63  ;;  %v5226_v12 = vcombine.low %v5205_v6, %v5219_v63  ;;  %v5361_v47 = vcombine.high %v5339_v39, %v5353_v58 }
 0x152   : > { %6713 = vmatprep.mubr.bf16.mxu1 %v5154_v26  ;;  %v5357_v21 = vcombine.high %v5311_v25, %v5325_v8  ;;  %v5241_v29 = vrot.slane %v5222_v53, %v11813_v31 }
 0x153   : > { %v6549_v26 = vpop.f32.mrf.mxu1  ;;  %v5269_v9 = vrot.slane %v5226_v12, %v11813_v31  ;;  %v5417_v12 = vrot.slane %v5361_v47, %v11813_v31 }
 0x154   : > { %v5427_v26 = vcombine.high %v15131_v14, %v15130_v42  ;;  %v5389_v53 = vrot.slane %v5357_v21, %v11813_v31 }
 0x155   : > { %6882 = vmatmul.mubr.bf16.gmra.mxu0 %v4884_v3  ;;  %v5223_v3 = vcombine.high %v5177_v54, %v5191_v44  ;;  %v13587_v24 = vpop.f32.mrf.mxu1  ;;  %v15135_v54 = vld [vmem:[#allocation59_spill] sm:$0xff]  ;;  %v5286_v14 = vcombine.low %v5241_v29, %v5269_v9 }
 0x156   : > { %6889 = vmatprep.mubr.bf16.mxu0 %v5021_v11  ;;  %v5283_v11 = vrot.slane %v5227_v23, %v11813_v31  ;;  %v15133_v23 = vld [vmem:[#allocation67_spill] sm:$0xff]  ;;  %v5459_v1 = vrot.slane %v5427_v26, %v11813_v31 }
 0x157   : > { %v6552_v61 = vpop.f32.mrf.mxu1  ;;  %v5255_v2 = vrot.slane %v5223_v3, %v11813_v31  ;;  %v15132_v3 = vld [vmem:[#allocation68_spill] sm:$0xff]  ;;  %v15136_v44 = vld [vmem:[#allocation55_spill] sm:$0xff] }
 0x158   : > { %v5429_v38 = vcombine.high %v15133_v23, %v15132_v3  ;;  %v5419_v6 = vcombine.high %v15136_v44, %v15135_v54  ;;  %v5556_v61 = vcombine.high %v15138_v32, %v15137_v60  ;;  %v15145_v23 = vld [vmem:[#allocation93_spill] sm:$0xff]  ;;  %v15148_v44 = vld [vmem:[#allocation100_spill] sm:$0xff] }
 0x159   : > { %6714 = vmatmul.mubr.bf16.gmra.mxu1 %v5151_v59  ;;  %v2616_v59 = vcombine.low %v15127_v33, %v15126_v16  ;;  %v5289_v13 = vcombine.low %v5255_v2, %v5283_v11  ;;  %v15143_v2 = vld [vmem:[#allocation88_spill] sm:$0xff]  ;;  %v15144_v11 = vld [vmem:[#allocation86_spill] sm:$0xff]  ;;  %v15147_v54 = vld [vmem:[#allocation73_spill] sm:$0xff] }
 0x15a   : > { %6721 = vmatprep.mubr.bf16.mxu1 %v5288_v7  ;;  %v5425_v7 = vcombine.high %v15129_v36, %v15128_v34  ;;  %v2674_v33 = vcombine.low %v15144_v11, %v15143_v2  ;;  %v5473_v34 = vrot.slane %v5429_v38, %v11813_v31  ;;  %v11429_v47 = vcombine.high %v15143_v2, %v15145_v23 }
 0x15b   : > { %v5423_v38 = vcombine.low %v5389_v53, %v5417_v12  ;;  %v15151_v53 = vld [vmem:[#allocation105_spill] sm:$0xff] }
 0x15c   : > { %v5445_v0 = vrot.slane %v5425_v7, %v11813_v31  ;;  %v5356_v7 = vcombine.low %v5311_v25, %v5325_v8  ;;  %v11428_v21 = vcombine.high %v2674_v33, %v15141_v15  ;;  %v15150_v33 = vld [vmem:[#allocation106_spill] sm:$0xff] }
 0x15d   : > { %6890 = vmatmul.mubr.bf16.gmra.mxu0 %v5018_v22  ;;  %v13609_v22 = vpop.f32.mrf.mxu0  ;;  %v5693_v12 = vcombine.high %v15151_v53, %v15150_v33 }
 0x15e   : > { %6897 = vmatprep.mubr.bf16.mxu0 %v5155_v40  ;;  %v15134_v40 = vld [vmem:[#allocation69_spill] sm:$0xff]  ;;  %v5375_v8 = vrot.slane %v5356_v7, %v11813_v31  ;;  %v5607_v32 = vrot.slane %v11428_v21, %v11813_v31  ;;  %v5490_v2 = vcombine.low %v5445_v0, %v5459_v1  ;;  %v15152_v7 = vld [vmem:[#allocation108_spill] sm:$0xff] }
 0x15f   : > { %v5431_v62 = vcombine.high %v15134_v40, %v2616_v59  ;;  %v6477_v63 = vpop.f32.mrf.mxu0  ;;  %v5491_v40 = vcombine.high %v5445_v0, %v5459_v1  ;;  %v15155_v21 = vld [vmem:[#allocation109_spill] sm:$0xff]  ;;  %v15159_v1 = vld [vmem:[#allocation95_spill] sm:$0xff] }
 0x160   : > { %v15158_v0 = vld [vmem:[#allocation101_spill] sm:$0xff] }
 0x161   : > { %6722 = vmatmul.mubr.bf16.gmra.mxu1 %v5285_v45  ;;  %v15139_v45 = vld [vmem:[#allocation83_spill] sm:$0xff]  ;;  %v13628_v59 = vpop.f32.mrf.mxu0  ;;  %v5487_v36 = vrot.slane %v5431_v62, %v11813_v31 }
 0x162   : > { %6729 = vmatprep.mubr.bf16.mxu1 %v5422_v10  ;;  %v2618_v48 = vcombine.low %v15140_v4, %v15139_v45  ;;  %v15142_v10 = vld [vmem:[#allocation85_spill] sm:$0xff] }
 0x163   : > { %v2672_v17 = vcombine.low %v15142_v10, %v15141_v15  ;;  %v6480_v42 = vpop.f32.mrf.mxu0  ;;  %v5495_v62 = vcombine.high %v5473_v34, %v5487_v36  ;;  %v11286_v10 = vld.sshfl [vmem:[%s11790_s27 + $0x490] sm:$0xff pattern:$0x75316420]  ;;  %v5494_v11 = vcombine.low %v5473_v34, %v5487_v36  ;;  %v5687_v34 = vcombine.high %v15159_v1, %v15158_v0  ;;  %v15160_v36 = vld [vmem:[#allocation119_spill] sm:$0xff] }
 0x164   : > { %v13634_v26 = vpop.f32.mrf.mxu1  ;;  %v11424_v3 = vcombine.high %v2618_v48, %v15126_v16  ;;  %v2906_v33 = vrot.slane %v11286_v10, %v11813_v31 }
 0x165   : > { %6898 = vmatmul.mubr.bf16.gmra.mxu0 %v5152_v27  ;;  %v5360_v27 = vcombine.low %v5339_v39, %v5353_v58  ;;  %v15146_v58 = vld [vmem:[#allocation75_spill] sm:$0xff]  ;;  %v5551_v4 = vrot.slane %v5495_v62, %v11813_v31 }
 0x166   : > { %6905 = vmatprep.mubr.bf16.mxu0 %v5289_v13  ;;  %v11426_v13 = vcombine.high %v15139_v45, %v2672_v17  ;;  %v6557_v25 = vpop.f32.mrf.mxu1  ;;  %v5553_v16 = vcombine.high %v15147_v54, %v15146_v58  ;;  %v5579_v9 = vrot.slane %v11424_v3, %v11813_v31  ;;  %v5523_v45 = vrot.slane %v5491_v40, %v11813_v31  ;;  %v11289_v17 = vld.sshfl [vmem:[%s11790_s27 + $0x4a8] sm:$0xff pattern:$0x75316420] }
 0x167   : > { %v5403_v39 = vrot.slane %v5360_v27, %v11813_v31  ;;  %v15153_v27 = vld [vmem:[#allocation107_spill] sm:$0xff]  ;;  %v2885_v25 = vcombine.high %v11286_v10, %v11286_v10  ;;  %v5509_v54 = vrot.slane %v5490_v2, %v11813_v31 }
 0x168   : > { %v13647_v29 = vpop.f32.mrf.mxu1  ;;  %v5593_v60 = vrot.slane %v11426_v13, %v11813_v31  ;;  %v5695_v42 = vcombine.high %v15153_v27, %v15152_v7  ;;  %v15154_v13 = vld [vmem:[#allocation110_spill] sm:$0xff]  ;;  %v5557_v62 = vcombine.low %v5523_v45, %v5551_v4 }
 0x169   : > { %6730 = vmatmul.mubr.bf16.gmra.mxu1 %v5419_v6  ;;  %v15149_v6 = vld [vmem:[#allocation94_spill] sm:$0xff]  ;;  %v5420_v15 = vcombine.low %v5375_v8, %v5403_v39  ;;  %v5697_v23 = vcombine.high %v15155_v21, %v15154_v13  ;;  %v2941_v8 = vcombine.high %v11289_v17, %v11289_v17  ;;  %v15161_v39 = vld [vmem:[#allocation117_spill] sm:$0xff]  ;;  %v2913_v2 = vrot.slane %v2885_v25, %v11813_v31  ;;  %v15165_v25 = vld [vmem:[#allocation127_spill] sm:$0xff] }
 0x16a   : > { %6737 = vmatprep.mubr.bf16.mxu1 %v5556_v61  ;;  %v5690_v63 = vcombine.high %v15149_v6, %v15148_v44  ;;  %v5621_v61 = vrot.slane %v11429_v47, %v11813_v31  ;;  %v6560_v48 = vpop.f32.mrf.mxu1  ;;  %v15156_v47 = vld [vmem:[#allocation112_spill] sm:$0xff]  ;;  %v5824_v58 = vcombine.high %v15161_v39, %v15160_v36  ;;  %v5713_v44 = vrot.slane %v5693_v12, %v11813_v31 }
 0x16b   : > { %v5727_v6 = vrot.slane %v5695_v42, %v11813_v31  ;;  %v5741_v4 = vrot.slane %v5697_v23, %v11813_v31  ;;  %v2969_v53 = vrot.slane %v2941_v8, %v11813_v31  ;;  %v11431_v13 = vcombine.low %v2906_v33, %v2913_v2 }
 0x16c   : > { %v5629_v3 = vcombine.high %v5607_v32, %v5621_v61  ;;  %v5628_v27 = vcombine.low %v5607_v32, %v5621_v61  ;;  %v11433_v21 = vcombine.high %v2906_v33, %v2913_v2 }
 0x16d   : > { %6906 = vmatmul.mubr.bf16.gmra.mxu0 %v5286_v14  ;;  %v5625_v14 = vcombine.high %v5579_v9, %v5593_v60  ;;  %v5759_v42 = vcombine.high %v5713_v44, %v5727_v6  ;;  %v5847_v1 = vrot.slane %v11431_v13, %v11813_v31 }
 0x16e   : > { %6913 = vmatprep.mubr.bf16.mxu0 %v5423_v38  ;;  %v15157_v38 = vld [vmem:[#allocation111_spill] sm:$0xff]  ;;  %v5685_v45 = vrot.slane %v5629_v3, %v11813_v31 }
 0x16f   : > { %v5699_v40 = vcombine.high %v15157_v38, %v15156_v47  ;;  %v15162_v38 = vld [vmem:[#allocation120_spill] sm:$0xff]  ;;  %v5791_v32 = vrot.slane %v5759_v42, %v11813_v31  ;;  %v6006_v42 = vcombine.high %v13184_v28, %v13184_v28 }
 0x171   : > { %6738 = vmatmul.mubr.bf16.gmra.mxu1 %v5553_v16  ;;  %v5537_v16 = vrot.slane %v5494_v11, %v11813_v31  ;;  %v5755_v48 = vrot.slane %v5699_v40, %v11813_v31  ;;  %v2962_v11 = vrot.slane %v11289_v17, %v11813_v31  ;;  %v15163_v40 = vld [vmem:[#allocation118_spill] sm:$0xff] }
 0x172   : > { %6745 = vmatprep.mubr.bf16.mxu1 %v5690_v63  ;;  %v5657_v63 = vrot.slane %v5625_v14, %v11813_v31  ;;  %v5821_v17 = vcombine.high %v15163_v40, %v15162_v38  ;;  %v6005_v38 = vcombine.high %v13175_v35, %v13175_v35 }
 0x173   : > { %v5554_v12 = vcombine.low %v5509_v54, %v5537_v16  ;;  %v5763_v14 = vcombine.high %v5741_v4, %v5755_v48  ;;  %v11435_v23 = vcombine.low %v2962_v11, %v2969_v53  ;;  %v11437_v10 = vcombine.high %v2962_v11, %v2969_v53  ;;  %v15166_v53 = vld [vmem:[#allocation130_spill] sm:$0xff] }
 0x174   : > { %v5691_v7 = vcombine.low %v5657_v63, %v5685_v45  ;;  %v5758_v16 = vcombine.low %v5713_v44, %v5727_v6  ;;  %v5762_v63 = vcombine.low %v5741_v4, %v5755_v48  ;;  %v5960_v4 = vcombine.high %v13154_v37, %v13154_v37 }
 0x175   : > { %6914 = vmatmul.mubr.bf16.gmra.mxu0 %v5420_v15  ;;  %v5624_v15 = vcombine.low %v5579_v9, %v5593_v60  ;;  %v5671_v60 = vrot.slane %v5628_v27, %v11813_v31  ;;  %v5819_v61 = vrot.slane %v5763_v14, %v11813_v31  ;;  %v5875_v36 = vrot.slane %v11435_v23, %v11813_v31 }
 0x176   : > { %6921 = vmatprep.mubr.bf16.mxu0 %v5557_v62  ;;  %v13681_v3 = vpop.f32.mrf.mxu0  ;;  %v15164_v62 = vld [vmem:[#allocation129_spill] sm:$0xff]  ;;  %v5889_v39 = vrot.slane %v11437_v10, %v11813_v31  ;;  %v5805_v27 = vrot.slane %v5762_v63, %v11813_v31  ;;  %v5974_v28 = vrot.slane %v5960_v4, %v11813_v31 }
 0x177   : > { %v5958_v8 = vcombine.high %v15165_v25, %v15164_v62  ;;  %v5643_v9 = vrot.slane %v5624_v15, %v11813_v31  ;;  %v5825_v45 = vcombine.low %v5791_v32, %v5819_v61 }
 0x178   : > { %v6485_v47 = vpop.f32.mrf.mxu0  ;;  %v5897_v2 = vcombine.high %v5875_v36, %v5889_v39  ;;  %v5896_v23 = vcombine.low %v5875_v36, %v5889_v39  ;;  %v5976_v37 = vcombine.high %v5974_v28, %v5974_v28  ;;  %v5990_v61 = vrot.slane %v5974_v28, %v11813_v31 }
 0x179   : > { %6746 = vmatmul.mubr.bf16.gmra.mxu1 %v5687_v34  ;;  %v5861_v34 = vrot.slane %v11433_v21, %v11813_v31  ;;  %v5688_v54 = vcombine.low %v5643_v9, %v5671_v60 }
 0x17a   : > { %6753 = vmatprep.mubr.bf16.mxu1 %v5824_v58  ;;  %v13691_v0 = vpop.f32.mrf.mxu0  ;;  %v5953_v6 = vrot.slane %v5897_v2, %v11813_v31  ;;  %v6004_v25 = vrot.slane %v5976_v37, %v11813_v31 }
 0x17b   : > { %v5893_v33 = vcombine.high %v5847_v1, %v5861_v34  ;;  %v5892_v21 = vcombine.low %v5847_v1, %v5861_v34 }
 0x17c   : > { %v6488_v58 = vpop.f32.mrf.mxu0 }
 0x17d   : > { %6922 = vmatmul.mubr.bf16.gmra.mxu0 %v5554_v12  ;;  %v15167_v12 = vld [vmem:[#allocation128_spill] sm:$0xff]  ;;  %v5925_v44 = vrot.slane %v5893_v33, %v11813_v31  ;;  %v5911_v40 = vrot.slane %v5892_v21, %v11813_v31 }
 0x17e   : > { %6929 = vmatprep.mubr.bf16.mxu0 %v5691_v7  ;;  %v5955_v15 = vcombine.high %v15167_v12, %v15166_v53  ;;  %v5777_v7 = vrot.slane %v5758_v16, %v11813_v31 }
 0x17f   : > { %v5959_v47 = vcombine.low %v5925_v44, %v5953_v6 }
 0x180   : > { %v13697_v11 = vpop.f32.mrf.mxu1  ;;  %v5822_v13 = vcombine.low %v5777_v7, %v5805_v27 }
 0x181   : > { %6754 = vmatmul.mubr.bf16.gmra.mxu1 %v5821_v17  ;;  %v5939_v17 = vrot.slane %v5896_v23, %v11813_v31  ;;  %v11293_v23 = vld [vmem:[%s14757_s2] ss:$0 sm:$0xff] }
 0x182   : > { %6761 = vmatprep.mubr.bf16.mxu1 %v5958_v8  ;;  %v6565_v14 = vpop.f32.mrf.mxu1  ;;  %v6447_v37 = vadd.f32 %v11293_v23, %v13336_v19 }
 0x183   : > { %v5956_v62 = vcombine.low %v5911_v40, %v5939_v17  ;;  %v13743_v40 = vadd.f32 %v11293_v23, %v13316_v41  ;;  %v13759_v41 = vadd.f32 %v11293_v23, %v13487_v55  ;;  %v13778_v55 = vadd.f32 %v11293_v23, %v13609_v22 }
 0x184   : > { %v13709_v48 = vpop.f32.mrf.mxu1  ;;  %v13796_v22 = vadd.f32 %v11293_v23, %v13691_v0 }
 0x185   : > { %6930 = vmatmul.mubr.bf16.gmra.mxu0 %v5688_v54 }
 0x186   : > { %6937 = vmatprep.mubr.bf16.mxu0 %v5825_v45  ;;  %v6568_v10 = vpop.f32.mrf.mxu1 }
 0x189   : > { %6762 = vmatmul.mubr.bf16.gmra.mxu1 %v5955_v15 }
 0x18a   : > { %6769 = vmatprep.mubr.bf16.mxu1 %v6006_v42 }
 0x18d   : > { %6938 = vmatmul.mubr.bf16.gmra.mxu0 %v5822_v13 }
 0x18e   : > { %6945 = vmatprep.mubr.bf16.mxu0 %v5959_v47 }
 0x191   : > { %6770 = vmatmul.mubr.bf16.gmra.mxu1 %v6005_v38  ;;  %v13717_v8 = vpop.f32.mrf.mxu0  ;;  %v6444_v38 = vadd.f32 %v11293_v23, %v13314_v18  ;;  %v6460_v18 = vadd.f32 %v11293_v23, %v13469_v46  ;;  %v13775_v46 = vadd.f32 %v11293_v23, %v13587_v24  ;;  %v13793_v24 = vadd.f32 %v11293_v23, %v13697_v11 }
 0x193   : > { %v6493_v9 = vpop.f32.mrf.mxu0  ;;  %15170 = vst [vmem:[#allocation36_spill] sm:$0xff] %v13793_v24 }
 0x194   : > { %v13751_v9 = vadd.f32 %v11293_v23, %v13410_v56 }
 0x195   : > { %6946 = vmatmul.mubr.bf16.gmra.mxu0 %v5956_v62  ;;  %v13719_v60 = vpop.f32.mrf.mxu0  ;;  %v13747_v62 = vadd.f32 %v11293_v23, %v13338_v49  ;;  %v6463_v49 = vadd.f32 %v11293_v23, %v13482_v52 }
 0x196   : > { %6953 = vmatprep.mubr.bf16.mxu0 %v6004_v25  ;;  %v6452_v25 = vadd.f32 %v11293_v23, %v13366_v5  ;;  %v13766_v5 = vadd.f32 %v11293_v23, %v13554_v20  ;;  %v13784_v20 = vadd.f32 %v11293_v23, %v13628_v59  ;;  %v13802_v59 = vadd.f32 %v11293_v23, %v13717_v8 }
 0x197   : > { %v13721_v32 = vpop.f32.mrf.mxu1  ;;  %v6496_v35 = vpop.f32.mrf.mxu0 }
 0x199   : > { %v6573_v1 = vpop.f32.mrf.mxu1 }
 0x19a   : > { %v13755_v1 = vadd.f32 %v11293_v23, %v13435_v30  ;;  %v13772_v30 = vadd.f32 %v11293_v23, %v13568_v50  ;;  %v13790_v50 = vadd.f32 %v11293_v23, %v13681_v3 }
 0x19b   : > { %v13724_v34 = vpop.f32.mrf.mxu1 }
 0x19c   : > { %v13811_v11 = vadd.f32 %v11293_v23, %v13724_v34 }
 0x19d   : > { %6954 = vmatmul.mubr.bf16.gmra.mxu0 %v5990_v61  ;;  %v6576_v36 = vpop.f32.mrf.mxu1  ;;  %v6455_v61 = vadd.f32 %v11293_v23, %v13383_v57  ;;  %v13769_v57 = vadd.f32 %v11293_v23, %v13580_v51 }
 0x19e   : > { %v13763_v36 = vadd.f32 %v11293_v23, %v13501_v43  ;;  %v13781_v43 = vadd.f32 %v11293_v23, %v13634_v26  ;;  %v13799_v26 = vadd.f32 %v11293_v23, %v13709_v48  ;;  %15173 = vst [vmem:[#allocation41_spill] sm:$0xff] %v13811_v11  ;;  %v11000_v11 = vld [vmem:[%s13878_s20 + $0x14] sm:$0x1] }
 0x1a0   : > { %15168 = vst [vmem:[#allocation24_spill] sm:$0xff] %v13781_v43  ;;  %15171 = vst [vmem:[#allocation27_spill] sm:$0xff] %v13799_v26 }
 0x1a9   : > { %v13726_v39 = vpop.f32.mrf.mxu0 }
 0x1aa   : > { %v13728_v58 = vpop.f32.mrf.mxu1  ;;  %v13814_v0 = vadd.f32 %v11293_v23, %v13726_v39 }
 0x1ab   : > { %v6501_v54 = vpop.f32.mrf.mxu0  ;;  %v13817_v48 = vadd.f32 %v11293_v23, %v13728_v58 }
 0x1ac   : > { %v6581_v16 = vpop.f32.mrf.mxu1 }
 0x1ad   : > { %v13730_v63 = vpop.f32.mrf.mxu0  ;;  %v13787_v16 = vadd.f32 %v11293_v23, %v13647_v29  ;;  %v13805_v29 = vadd.f32 %v11293_v23, %v13719_v60  ;;  %15174 = vst [vmem:[#allocation43_spill] sm:$0xff] %v13817_v48 }
 0x1ae   : > { %v13732_v45 = vpop.f32.mrf.mxu1 }
 0x1af   : > { %v6504_v33 = vpop.f32.mrf.mxu0  ;;  %15169 = vst [vmem:[#allocation26_spill] sm:$0xff] %v13787_v16 }
 0x1b0   : > { %v6584_v2 = vpop.f32.mrf.mxu1 }
 0x1b8   : > { %v13734_v53 = vpop.f32.mrf.mxu1 }
 0x1b9   : > { %v13736_v12 = vpop.f32.mrf.mxu0  ;;  %v13830_v39 = vadd.f32 %v11293_v23, %v13734_v53 }
 0x1ba   : > { %v6589_v15 = vpop.f32.mrf.mxu1  ;;  %v13827_v34 = vadd.f32 %v11293_v23, %v13736_v12 }
 0x1bb   : > { %v6509_v7 = vpop.f32.mrf.mxu0  ;;  %15176 = vst [vmem:[#allocation45_spill] sm:$0xff] %v13830_v39 }
 0x1bc   : > { %v6590_v27 = vpop.f32.mrf.mxu1 }
 0x1bd   : > { %v6510_v42 = vpop.f32.mrf.mxu0  ;;  %v13808_v27 = vadd.f32 %v11293_v23, %v13721_v32  ;;  %v13824_v32 = vadd.f32 %v11293_v23, %v13732_v45 }
 0x1be   : > { %v6591_v14 = vpop.f32.mrf.mxu1  ;;  %v13832_v58 = vadd.f32 %v11293_v23, %v6510_v42 }
 0x1bf   : > { %v6512_v44 = vpop.f32.mrf.mxu0  ;;  %15172 = vst [vmem:[#allocation25_spill] sm:$0xff] %v13808_v27  ;;  %v13820_v14 = vadd.f32 %v11293_v23, %v13730_v63  ;;  %15175 = vst [vmem:[#allocation42_spill] sm:$0xff] %v13824_v32 }
 0x1c1   : > { %v6627_v6 = vpop.f32.mrf.mxu1 }
 0x1c2   : > { %v6628_v56 = vadd.f32 %v6627_v6, %v6444_v38 }
 0x1c3   : > { %v6629_v4 = vpop.f32.mrf.mxu1 }
 0x1c5   : > { %v6630_v13 = vpop.f32.mrf.mxu1  ;;  %v6515_v21 = vpop.f32.mrf.mxu0 }
 0x1c6   : > { %v6631_v15 = vadd.f32 %v6630_v13, %v6447_v37 }
 0x1c7   : > { %v6632_v10 = vpop.f32.mrf.mxu1  ;;  %v6517_v47 = vpop.f32.mrf.mxu0 }
 0x1c8   : > { %v13834_v10 = vadd.f32 %v11293_v23, %v6515_v21 }
 0x1c9   : > { %v6635_v28 = vpop.f32.mrf.mxu1  ;;  %v6518_v17 = vpop.f32.mrf.mxu0 }
 0x1ca   : > { %v6636_v45 = vadd.f32 %v6635_v28, %v6452_v25 }
 0x1cb   : > { %v6637_v35 = vpop.f32.mrf.mxu1  ;;  %v6520_v19 = vpop.f32.mrf.mxu0 }
 0x1cc   : > { %v13837_v35 = vadd.f32 %v11293_v23, %v6518_v17 }
 0x1cd   : > { %v6638_v54 = vpop.f32.mrf.mxu1  ;;  %v6811_v52 = vpop.f32.mrf.mxu0 }
 0x1ce   : > { %v6812_v51 = vadd.f32 %v6811_v52, %v6628_v56  ;;  %v13839_v19 = vadd.f32 %v6638_v54, %v6455_v61 }
 0x1cf   : > { %v6640_v33 = vpop.f32.mrf.mxu1  ;;  %v6813_v2 = vpop.f32.mrf.mxu0 }
 0x1d0   : > { %v6961_v7 = vmax.f32 %v6812_v51, 0.0 }
 0x1d1   : > { %v6643_v3 = vpop.f32.mrf.mxu1  ;;  %v6814_v8 = vpop.f32.mrf.mxu0 }
 0x1d2   : > { %v7035_v60 = vcombine.high %v6961_v7, %v6961_v7  ;;  %v7042_v44 = vrot.slane %v6961_v7, %v11813_v31  ;;  %v6815_v6 = vadd.f32 %v6814_v8, %v6631_v15  ;;  %v13841_v12 = vadd.f32 %v6643_v3, %v6460_v18 }
 0x1d3   : > { %v6645_v4 = vpop.f32.mrf.mxu1  ;;  %v6816_v13 = vpop.f32.mrf.mxu0 }
 0x1d4   : > { %v7049_v63 = vrot.slane %v7035_v60, %v11813_v31  ;;  %v7050_v47 = vcombine.high %v7042_v44, %v7042_v44  ;;  %v6962_v38 = vmax.f32 %v6815_v6, 0.0  ;;  %v7058_v42 = vrot.slane %v7042_v44, %v11813_v31 }
 0x1d5   : > { %v6646_v37 = vpop.f32.mrf.mxu1  ;;  %v6819_v56 = vpop.f32.mrf.mxu0 }
 0x1d6   : > { %v7051_v53 = vcombine.high %v7049_v63, %v7049_v63  ;;  %v7072_v52 = vrot.slane %v7050_v47, %v11813_v31  ;;  %v7084_v21 = vcombine.high %v6962_v38, %v6962_v38  ;;  %v7065_v33 = vrot.slane %v7049_v63, %v11813_v31 }
 0x1d7   : > { %v6648_v51 = vpop.f32.mrf.mxu1  ;;  %v7091_v2 = vrot.slane %v6962_v38, %v11813_v31  ;;  %v6820_v15 = vadd.f32 %v6819_v56, %v6636_v45  ;;  %v6821_v23 = vpop.f32.mrf.mxu0  ;;  %v13847_v17 = vadd.f32 %v6646_v37, %v6463_v49 }
 0x1d8   : > { %v7079_v28 = vrot.slane %v7051_v53, %v11813_v31  ;;  %v8813_v25 = vcombine.low %v7058_v42, %v7072_v52  ;;  %v11486_v61 = vcombine.high %v7058_v42, %v7072_v52  ;;  %v7098_v18 = vrot.slane %v7084_v21, %v11813_v31 }
 0x1d9   : > { %v6651_v54 = vpop.f32.mrf.mxu1  ;;  %v7099_v7 = vcombine.high %v7091_v2, %v7091_v2  ;;  %v7107_v3 = vrot.slane %v7091_v2, %v11813_v31  ;;  %v6963_v8 = vmax.f32 %v6820_v15, 0.0  ;;  %v6822_v60 = vpop.f32.mrf.mxu0 }
 0x1da   : > { %v13853_v44 = vadd.f32 %v6651_v54, %v13766_v5  ;;  %v8815_v6 = vcombine.low %v7065_v33, %v7079_v28  ;;  %v11487_v4 = vcombine.high %v7065_v33, %v7079_v28  ;;  %v8823_v49 = vrot.slane %v8813_v25, %v11813_v31 }
 0x1db   : > { %v8830_v13 = vrot.slane %v11486_v61, %v11813_v31  ;;  %v6653_v63 = vpop.f32.mrf.mxu1  ;;  %v7100_v47 = vcombine.high %v7098_v18, %v7098_v18  ;;  %v7114_v38 = vrot.slane %v7098_v18, %v11813_v31  ;;  %v7121_v37 = vrot.slane %v7099_v7, %v11813_v31  ;;  %v6824_v56 = vpop.f32.mrf.mxu0 }
 0x1dc   : > { %v7133_v45 = vcombine.high %v6963_v8, %v6963_v8  ;;  %v8837_v5 = vrot.slane %v8815_v6, %v11813_v31  ;;  %v8844_v53 = vrot.slane %v11487_v4, %v11813_v31  ;;  %v7140_v52 = vrot.slane %v6963_v8, %v11813_v31 }
 0x1dd   : > { %v8845_v42 = vcombine.low %v8823_v49, %v8830_v13  ;;  %v6654_v21 = vpop.f32.mrf.mxu1  ;;  %v7128_v51 = vrot.slane %v7100_v47, %v11813_v31  ;;  %v8862_v33 = vcombine.low %v7107_v3, %v7121_v37  ;;  %v11488_v2 = vcombine.high %v7107_v3, %v7121_v37  ;;  %v6827_v23 = vpop.f32.mrf.mxu0 }
 0x1de   : > { %v7147_v15 = vrot.slane %v7133_v45, %v11813_v31  ;;  %v8846_v28 = vcombine.low %v8837_v5, %v8844_v53  ;;  %v7148_v61 = vcombine.high %v7140_v52, %v7140_v52  ;;  %v7156_v18 = vrot.slane %v7140_v52, %v11813_v31 }
 0x1df   : > { %v8853_v25 = vrot.slane %v8845_v42, %v11813_v31  ;;  %v6656_v54 = vpop.f32.mrf.mxu1  ;;  %v8864_v7 = vcombine.low %v7114_v38, %v7128_v51  ;;  %v11489_v6 = vcombine.high %v7114_v38, %v7128_v51  ;;  %v8872_v8 = vrot.slane %v8862_v33, %v11813_v31  ;;  %v6829_v49 = vpop.f32.mrf.mxu0 }
 0x1e0   : > { %v8879_v4 = vrot.slane %v11488_v2, %v11813_v31  ;;  %v8860_v3 = vrot.slane %v8846_v28, %v11813_v31  ;;  %v7149_v13 = vcombine.high %v7147_v15, %v7147_v15  ;;  %v7163_v63 = vrot.slane %v7147_v15, %v11813_v31 }
 0x1e1   : > { %v7170_v47 = vrot.slane %v7148_v61, %v11813_v31  ;;  %v6659_v37 = vpop.f32.mrf.mxu1  ;;  %v8886_v45 = vrot.slane %v8864_v7, %v11813_v31  ;;  %v8893_v56 = vrot.slane %v11489_v6, %v11813_v31  ;;  %v7178_v53 = vcombine.high %v7156_v18, %v7156_v18  ;;  %v6830_v38 = vpop.f32.mrf.mxu0 }
 0x1e2   : > { %v8894_v5 = vcombine.low %v8872_v8, %v8879_v4  ;;  %v8861_v42 = vcombine.low %v8853_v25, %v8860_v3  ;;  %v7177_v52 = vrot.slane %v7149_v13, %v11813_v31  ;;  %v7179_v51 = vcombine.high %v7163_v63, %v7163_v63 }
 0x1e3   : > { %v7180_v33 = vcombine.high %v7170_v47, %v7170_v47  ;;  %v6661_v2 = vpop.f32.mrf.mxu1  ;;  %v8895_v15 = vcombine.low %v8886_v45, %v8893_v56  ;;  %v8917_v61 = vrot.slane %v7156_v18, %v11813_v31  ;;  %v8925_v54 = vcombine.low %v7170_v47, %v7178_v53  ;;  %v6832_v7 = vpop.f32.mrf.mxu0 }
 0x1e4   : > { %v8902_v28 = vrot.slane %v8894_v5, %v11813_v31  ;;  %v11575_v25 = vpack.c.bf16 %v8861_v42, %v8861_v42  ;;  %v13882_v8 = vcombine.low %v7177_v52, %v7179_v51  ;;  %v6823_v4 = vadd.f32 %v6822_v60, %v13839_v19  ;;  %v10995_v19 = vld [vmem:[%s13878_s20 + $0x8] sm:$0x1] }
 0x1e5   : > { %v8926_v6 = vcombine.low %v7180_v33, %v7163_v63  ;;  %v13885_v49 = vpop.f32.mrf.mxu1  ;;  %v8909_v3 = vrot.slane %v8895_v15, %v11813_v31  ;;  %v8924_v13 = vrot.slane %v8917_v61, %v11813_v31  ;;  %v8935_v45 = vrot.slane %v8925_v54, %v11813_v31  ;;  %v13890_v5 = vpop.f32.mrf.mxu0 }
 0x1e6   : > { %v7181_v56 = vcombine.high %v7177_v52, %v7177_v52  ;;  %10990 = vst.msk [vmem:[%s13878_s20] sm:$0xf] %vm10989_vm0, %v11575_v25  ;;  %v6964_v60 = vmax.f32 %v6823_v4, 0.0  ;;  %v8949_v47 = vrot.slane %v13882_v8, %v11813_v31  ;;  %v6828_v53 = vadd.f32 %v6827_v23, %v13841_v12 }
 0x1e7   : > { %v8942_v18 = vrot.slane %v8926_v6, %v11813_v31  ;;  %v6664_v42 = vpop.f32.mrf.mxu1  ;;  %v8910_v52 = vcombine.low %v8902_v28, %v8909_v3  ;;  %v11577_v51 = vpack.c.bf16 %v8924_v13, %v8924_v13  ;;  %v13906_v33 = vadd.f32 %v6654_v21, %v13772_v30  ;;  %v6837_v15 = vpop.f32.mrf.mxu0 }
 0x1e8   : > { %v6831_v2 = vadd.f32 %v6830_v38, %v13847_v17  ;;  %v7182_v54 = vcombine.high %v6964_v60, %v6964_v60  ;;  %v7189_v7 = vrot.slane %v6964_v60, %v11813_v31  ;;  %v6965_v25 = vmax.f32 %v6828_v53, 0.0 }
 0x1e9   : > { %v13909_v61 = vcombine.low %v8935_v45, %v8942_v18  ;;  %v13912_v6 = vpop.f32.mrf.mxu1  ;;  %v11576_v12 = vpack.c.bf16 %v8910_v52, %v8910_v52  ;;  %v10996_v23 = vsel %vm13897_vm3, %v11577_v51, %v10995_v19  ;;  %v13917_v30 = vadd.f32 %v6659_v37, %v13778_v55  ;;  %v13919_v21 = vpop.f32.mrf.mxu0 }
 0x1ea   : > { %v6966_v28 = vmax.f32 %v6831_v2, 0.0  ;;  %10997 = vst [vmem:[%s13878_s20 + $0x8] sm:$0x1] %v10996_v23  ;;  %v7196_v38 = vrot.slane %v7182_v54, %v11813_v31  ;;  %v7197_v8 = vcombine.high %v7189_v7, %v7189_v7  ;;  %v7205_v4 = vrot.slane %v7189_v7, %v11813_v31 }
 0x1eb   : > { %v8965_v17 = vrot.slane %v13909_v61, %v11813_v31  ;;  %v6669_v3 = vpop.f32.mrf.mxu1  ;;  %10991 = vst.msk [vmem:[%s13878_s20 + $0x4] sm:$0xf] %vm10989_vm0, %v11576_v12  ;;  %v7231_v13 = vcombine.high %v6965_v25, %v6965_v25  ;;  %v7238_v45 = vrot.slane %v6965_v25, %v11813_v31  ;;  %v6840_v37 = vpop.f32.mrf.mxu0 }
 0x1ec   : > { %v7280_v18 = vcombine.high %v6966_v28, %v6966_v28  ;;  %v13930_v55 = vrot.slane %v6966_v28, %v11813_v31  ;;  %v7198_v19 = vcombine.high %v7196_v38, %v7196_v38  ;;  %v7212_v60 = vrot.slane %v7196_v38, %v11813_v31 }
 0x1ed   : > { %v7219_v53 = vrot.slane %v7197_v8, %v11813_v31  ;;  %v7227_v42 = vcombine.high %v7205_v4, %v7205_v4  ;;  %v13934_v52 = vpop.f32.mrf.mxu1  ;;  %v8928_v51 = vcombine.low %v7181_v56, %v7205_v4  ;;  %v7245_v2 = vrot.slane %v7231_v13, %v11813_v31  ;;  %v13938_v54 = vpop.f32.mrf.mxu0 }
 0x1ee   : > { %v7246_v15 = vcombine.high %v7238_v45, %v7238_v45  ;;  %v7254_v61 = vrot.slane %v7238_v45, %v11813_v31  ;;  %v7226_v7 = vrot.slane %v7198_v19, %v11813_v31  ;;  %v7228_v25 = vcombine.high %v7212_v60, %v7212_v60 }
 0x1ef   : > { %v7229_v12 = vcombine.high %v7219_v53, %v7219_v53  ;;  %v8974_v23 = vcombine.low %v7219_v53, %v7227_v42  ;;  %v6672_v28 = vpop.f32.mrf.mxu1  ;;  %v8956_v38 = vrot.slane %v8928_v51, %v11813_v31  ;;  %v7247_v8 = vcombine.high %v7245_v2, %v7245_v2  ;;  %v6845_v4 = vpop.f32.mrf.mxu0 }
 0x1f0   : > { %v7261_v3 = vrot.slane %v7245_v2, %v11813_v31  ;;  %v7268_v56 = vrot.slane %v7246_v15, %v11813_v31  ;;  %v8976_v37 = vcombine.low %v7226_v7, %v7228_v25  ;;  %v7230_v39 = vcombine.high %v7226_v7, %v7226_v7 }
 0x1f1   : > { %v8975_v13 = vcombine.low %v7229_v12, %v7212_v60  ;;  %v8984_v45 = vrot.slane %v8974_v23, %v11813_v31  ;;  %v13945_v32 = vpop.f32.mrf.mxu1  ;;  %v8958_v19 = vcombine.low %v8949_v47, %v8956_v38  ;;  %v7275_v48 = vrot.slane %v7247_v8, %v11813_v31  ;;  %v13949_v51 = vpop.f32.mrf.mxu0 }
 0x1f2   : > { %v9029_v53 = vrot.slane %v7268_v56, %v11813_v31  ;;  %v11490_v42 = vcombine.high %v7254_v61, %v7268_v56  ;;  %v8977_v15 = vcombine.low %v7230_v39, %v7254_v61  ;;  %v8998_v60 = vrot.slane %v8976_v37, %v11813_v31 }
 0x1f3   : > { %v8991_v2 = vrot.slane %v8975_v13, %v11813_v31  ;;  %v7294_v25 = vrot.slane %v7280_v18, %v11813_v31  ;;  %v6677_v12 = vpop.f32.mrf.mxu1  ;;  %v8972_v7 = vrot.slane %v8958_v19, %v11813_v31  ;;  %v9038_v23 = vcombine.low %v7261_v3, %v7275_v48  ;;  %v6848_v38 = vpop.f32.mrf.mxu0 }
 0x1f4   : > { %v9036_v47 = vrot.slane %v9029_v53, %v11813_v31  ;;  %v11491_v28 = vcombine.high %v7261_v3, %v7275_v48  ;;  %v9005_v56 = vrot.slane %v8977_v15, %v11813_v31  ;;  %v9047_v4 = vrot.slane %v11490_v42, %v11813_v31 }
 0x1f5   : > { %v9006_v8 = vcombine.low %v8984_v45, %v8991_v2  ;;  %v7295_v39 = vcombine.high %v13930_v55, %v13930_v55  ;;  %v13961_v61 = vpop.f32.mrf.mxu1  ;;  %v8973_v18 = vcombine.low %v8965_v17, %v8972_v7  ;;  %v9054_v13 = vrot.slane %v9038_v23, %v11813_v31  ;;  %v13965_v48 = vpop.f32.mrf.mxu0 }
 0x1f6   : > { %v9061_v37 = vrot.slane %v11491_v28, %v11813_v31  ;;  %v11580_v19 = vpack.c.bf16 %v9036_v47, %v9036_v47  ;;  %v9007_v45 = vcombine.low %v8998_v60, %v9005_v56  ;;  %v7296_v53 = vcombine.high %v7294_v25, %v7294_v25 }
 0x1f7   : > { %v9014_v3 = vrot.slane %v9006_v8, %v11813_v31  ;;  %v7303_v42 = vrot.slane %v13930_v55, %v11813_v31  ;;  %v6680_v2 = vpop.f32.mrf.mxu1  ;;  %v11578_v15 = vpack.c.bf16 %v8973_v18, %v8973_v18  ;;  %v9069_v12 = vcombine.low %v9047_v4, %v9054_v13  ;;  %v6853_v23 = vpop.f32.mrf.mxu0 }
 0x1f8   : > { %v11001_v17 = vsel %vm13897_vm3, %v11580_v19, %v11000_v11  ;;  %v7310_v7 = vrot.slane %v7294_v25, %v11813_v31  ;;  %v9021_v47 = vrot.slane %v9007_v45, %v11813_v31  ;;  %v7317_v28 = vrot.slane %v7295_v39, %v11813_v31 }
 0x1f9   : > { %11002 = vst [vmem:[%s13878_s20 + $0x14] sm:$0x1] %v11001_v17  ;;  %v7324_v60 = vrot.slane %v7296_v53, %v11813_v31  ;;  %v6836_v38 = vadd.f32 %v13890_v5, %v13853_v44  ;;  %v13979_v55 = vpop.f32.mrf.mxu1  ;;  %10998 = vst.msk [vmem:[%s13878_s20 + $0xc] sm:$0xf] %vm10989_vm0, %v11578_v15  ;;  %v9077_v8 = vrot.slane %v9069_v12, %v11813_v31  ;;  %v13994_v4 = vpop.f32.mrf.mxu0 }
 0x1fa   : > { %v13986_v11 = vadd.f32 %v13885_v49, %v13784_v20  ;;  %v6839_v25 = vadd.f32 %v13919_v21, %v13906_v33  ;;  %v13992_v56 = vadd.f32 %v13912_v6, %v13790_v50  ;;  %v9022_v44 = vcombine.low %v9014_v3, %v9021_v47 }
 0x1fb   : > { %v9040_v5 = vcombine.low %v7303_v42, %v7317_v28  ;;  %v11492_v39 = vcombine.high %v7303_v42, %v7317_v28  ;;  %v9087_v18 = vcombine.low %v7310_v7, %v7324_v60  ;;  %v6685_v13 = vpop.f32.mrf.mxu1  ;;  %v11493_v19 = vcombine.high %v7310_v7, %v7324_v60  ;;  %v6856_v49 = vpop.f32.mrf.mxu0 }
 0x1fc   : > { %v6967_v45 = vmax.f32 %v6836_v38, 0.0  ;;  %v6968_v53 = vmax.f32 %v6839_v25, 0.0  ;;  %v6844_v20 = vadd.f32 %v13938_v54, %v13917_v30  ;;  %v11579_v33 = vpack.c.bf16 %v9022_v44, %v9022_v44 }
 0x1fd   : > { %v9068_v21 = vrot.slane %v9040_v5, %v11813_v31  ;;  %v9096_v50 = vrot.slane %v11492_v39, %v11813_v31  ;;  %v9103_v6 = vrot.slane %v9087_v18, %v11813_v31  ;;  %v14001_v3 = vpop.f32.mrf.mxu1  ;;  %v14004_v42 = vrot.slane %v11493_v19, %v11813_v31  ;;  %v14007_v17 = vpop.f32.mrf.mxu0 }
 0x1fe   : > { %v7329_v2 = vcombine.high %v6967_v45, %v6967_v45  ;;  %v7336_v15 = vrot.slane %v6967_v45, %v11813_v31  ;;  %v7378_v12 = vcombine.high %v6968_v53, %v6968_v53  ;;  %10999 = vst.msk [vmem:[%s13878_s20 + $0x10] sm:$0xf] %vm10989_vm0, %v11579_v33  ;;  %v7385_v7 = vrot.slane %v6968_v53, %v11813_v31 }
 0x1ff   : > { %v9070_v30 = vcombine.low %v9061_v37, %v9068_v21  ;;  %v9118_v54 = vcombine.low %v9096_v50, %v9103_v6  ;;  %v14012_v23 = vmax.f32 %v6844_v20, 0.0  ;;  %v6688_v47 = vpop.f32.mrf.mxu1  ;;  %v6861_v44 = vpop.f32.mrf.mxu0 }
 0x200   : > { %v7343_v28 = vrot.slane %v7329_v2, %v11813_v31  ;;  %v7344_v60 = vcombine.high %v7336_v15, %v7336_v15  ;;  %v7352_v38 = vrot.slane %v7336_v15, %v11813_v31  ;;  %v7392_v25 = vrot.slane %v7378_v12, %v11813_v31 }
 0x201   : > { %v9084_v5 = vrot.slane %v9070_v30, %v11813_v31  ;;  %v9126_v39 = vrot.slane %v9118_v54, %v11813_v31  ;;  %v7393_v18 = vcombine.high %v7385_v7, %v7385_v7  ;;  %v7401_v37 = vrot.slane %v7385_v7, %v11813_v31  ;;  %v14020_v13 = vpop.f32.mrf.mxu1  ;;  %v14024_v49 = vpop.f32.mrf.mxu0 }
 0x202   : > { %v7345_v19 = vcombine.high %v7343_v28, %v7343_v28  ;;  %v7359_v45 = vrot.slane %v7343_v28, %v11813_v31  ;;  %v7366_v53 = vrot.slane %v7344_v60, %v11813_v31  ;;  %v7374_v20 = vcombine.high %v7352_v38, %v7352_v38 }
 0x203   : > { %v9085_v33 = vcombine.low %v9077_v8, %v9084_v5  ;;  %v7394_v21 = vcombine.high %v7392_v25, %v7392_v25  ;;  %v7408_v50 = vrot.slane %v7392_v25, %v11813_v31  ;;  %v7415_v6 = vrot.slane %v7393_v18, %v11813_v31  ;;  %v6693_v2 = vpop.f32.mrf.mxu1  ;;  %v6864_v7 = vpop.f32.mrf.mxu0 }
 0x204   : > { %v7373_v15 = vrot.slane %v7345_v19, %v11813_v31  ;;  %v7375_v12 = vcombine.high %v7359_v45, %v7359_v45  ;;  %v7376_v30 = vcombine.high %v7366_v53, %v7366_v53  ;;  %v9089_v54 = vcombine.low %v7352_v38, %v7366_v53 }
 0x205   : > { %v11581_v47 = vpack.c.bf16 %v9085_v33, %v9085_v33  ;;  %v9141_v28 = vrot.slane %v7374_v20, %v11813_v31  ;;  %v7422_v60 = vrot.slane %v7394_v21, %v11813_v31  ;;  %v7423_v44 = vcombine.high %v7401_v37, %v7401_v37  ;;  %v14031_v8 = vpop.f32.mrf.mxu1  ;;  %v14034_v27 = vpop.f32.mrf.mxu0 }
 0x206   : > { %v9117_v25 = vrot.slane %v9089_v54, %v11813_v31  ;;  %v9149_v5 = vcombine.low %v7376_v30, %v7359_v45  ;;  %v9150_v18 = vcombine.low %v7373_v15, %v7375_v12  ;;  %v7377_v2 = vcombine.high %v7373_v15, %v7373_v15  ;;  %v11005_v54 = vld [vmem:[%s13878_s20 + $0x20] sm:$0x1] }
 0x207   : > { %11003 = vst.msk [vmem:[%s13878_s20 + $0x18] sm:$0xf] %vm10989_vm0, %v11581_v47  ;;  %v9148_v38 = vrot.slane %v9141_v28, %v11813_v31  ;;  %v7424_v19 = vcombine.high %v7408_v50, %v7408_v50  ;;  %v7425_v53 = vcombine.high %v7415_v6, %v7415_v6  ;;  %v9152_v20 = vcombine.low %v7415_v6, %v7423_v44  ;;  %v6696_v33 = vpop.f32.mrf.mxu1  ;;  %v6869_v12 = vpop.f32.mrf.mxu0 }
 0x208   : > { %v9119_v21 = vcombine.low %v14004_v42, %v9117_v25  ;;  %v9159_v7 = vrot.slane %v9149_v5, %v11813_v31  ;;  %v9166_v26 = vrot.slane %v9150_v18, %v11813_v31  ;;  %v9151_v45 = vcombine.low %v7377_v2, %v7401_v37 }
 0x209   : > { %v11583_v15 = vpack.c.bf16 %v9148_v38, %v9148_v38  ;;  %v9180_v30 = vrot.slane %v9152_v20, %v11813_v31  ;;  %v9198_v47 = vcombine.low %v7425_v53, %v7408_v50  ;;  %v9199_v24 = vcombine.low %v7422_v60, %v7424_v19  ;;  %v14044_v28 = vpop.f32.mrf.mxu1  ;;  %v14048_v5 = vpop.f32.mrf.mxu0 }
 0x20a   : > { %v9133_v6 = vrot.slane %v9119_v21, %v11813_v31  ;;  %v9181_v44 = vcombine.low %v9159_v7, %v9166_v26  ;;  %v9173_v42 = vrot.slane %v9151_v45, %v11813_v31  ;;  %v7426_v25 = vcombine.high %v7422_v60, %v7422_v60 }
 0x20b   : > { %v11006_v37 = vsel %vm13897_vm3, %v11583_v15, %v11005_v54  ;;  %v9208_v18 = vrot.slane %v9198_v47, %v11813_v31  ;;  %v9215_v2 = vrot.slane %v9199_v24, %v11813_v31  ;;  %v7427_v50 = vcombine.high %v14012_v23, %v14012_v23  ;;  %v6701_v38 = vpop.f32.mrf.mxu1  ;;  %v6872_v20 = vpop.f32.mrf.mxu0 }
 0x20c   : > { %v9134_v19 = vcombine.low %v9126_v39, %v9133_v6  ;;  %v9189_v53 = vrot.slane %v9181_v44, %v11813_v31  ;;  %11007 = vst [vmem:[%s13878_s20 + $0x20] sm:$0x1] %v11006_v37  ;;  %v9182_v26 = vcombine.low %v9173_v42, %v9180_v30  ;;  %v7434_v60 = vrot.slane %v14012_v23, %v11813_v31 }
 0x20d   : > { %v14060_v33 = vcombine.low %v9208_v18, %v9215_v2  ;;  %v7441_v21 = vrot.slane %v7427_v50, %v11813_v31  ;;  %v6671_v24 = vadd.f32 %v13934_v52, %v13796_v22  ;;  %v6847_v7 = vadd.f32 %v13949_v51, %v13986_v11  ;;  %v14067_v39 = vpop.f32.mrf.mxu1  ;;  %v14071_v15 = vpop.f32.mrf.mxu0 }
 0x20e   : > { %v11582_v54 = vpack.c.bf16 %v9134_v19, %v9134_v19  ;;  %v9196_v45 = vrot.slane %v9182_v26, %v11813_v31  ;;  %v7442_v12 = vcombine.high %v7434_v60, %v7434_v60  ;;  %v7450_v23 = vrot.slane %v7434_v60, %v11813_v31 }
 0x20f   : > { %v9238_v30 = vrot.slane %v14060_v33, %v11813_v31  ;;  %v7443_v47 = vcombine.high %v7441_v21, %v7441_v21  ;;  %v7457_v6 = vrot.slane %v7441_v21, %v11813_v31  ;;  %v6970_v22 = vmax.f32 %v6847_v7, 0.0  ;;  %v6704_v52 = vpop.f32.mrf.mxu1  ;;  %v6877_v37 = vpop.f32.mrf.mxu0 }
 0x210   : > { %11004 = vst.msk [vmem:[%s13878_s20 + $0x1c] sm:$0xf] %vm10989_vm0, %v11582_v54  ;;  %v9197_v51 = vcombine.low %v9189_v53, %v9196_v45  ;;  %v7464_v11 = vrot.slane %v7442_v12, %v11813_v31  ;;  %v7472_v44 = vcombine.high %v7450_v23, %v7450_v23  ;;  %v9200_v42 = vcombine.low %v7426_v25, %v7450_v23 }
 0x211   : > { %v7471_v18 = vrot.slane %v7443_v47, %v11813_v31  ;;  %v7476_v2 = vcombine.high %v6970_v22, %v6970_v22  ;;  %v7483_v50 = vrot.slane %v6970_v22, %v11813_v31  ;;  %v14083_v38 = vadd.f32 %v13945_v32, %v13802_v59  ;;  %v14085_v19 = vpop.f32.mrf.mxu1  ;;  %v14088_v33 = vpop.f32.mrf.mxu0 }
 0x212   : > { %v11584_v26 = vpack.c.bf16 %v9197_v51, %v9197_v51  ;;  %v7474_v60 = vcombine.high %v7464_v11, %v7464_v11  ;;  %v9201_v53 = vcombine.low %v7464_v11, %v7472_v44  ;;  %v9222_v20 = vrot.slane %v9200_v42, %v11813_v31 }
 0x213   : > { %v9261_v25 = vcombine.low %v7457_v6, %v7471_v18  ;;  %v11494_v21 = vcombine.high %v7457_v6, %v7471_v18  ;;  %v7490_v7 = vrot.slane %v7476_v2, %v11813_v31  ;;  %v7491_v54 = vcombine.high %v7483_v50, %v7483_v50  ;;  %v6709_v45 = vpop.f32.mrf.mxu1  ;;  %v6880_v47 = vpop.f32.mrf.mxu0 }
 0x214   : > { %11008 = vst.msk [vmem:[%s13878_s20 + $0x24] sm:$0xf] %vm10989_vm0, %v11584_v26  ;;  %v9229_v59 = vrot.slane %v9201_v53, %v11813_v31  ;;  %v9253_v32 = vrot.slane %v7474_v60, %v11813_v31  ;;  %v7499_v12 = vrot.slane %v7483_v50, %v11813_v31  ;;  %v6852_v23 = vadd.f32 %v13965_v48, %v13992_v56  ;;  %v11010_v48 = vld [vmem:[%s13878_s20 + $0x2c] sm:$0x1] }
 0x215   : > { %v9271_v22 = vrot.slane %v9261_v25, %v11813_v31  ;;  %v9278_v6 = vrot.slane %v11494_v21, %v11813_v31  ;;  %v7492_v52 = vcombine.high %v7490_v7, %v7490_v7  ;;  %v7506_v51 = vrot.slane %v7490_v7, %v11813_v31  ;;  %v14101_v11 = vpop.f32.mrf.mxu1  ;;  %v14105_v2 = vpop.f32.mrf.mxu0 }
 0x216   : > { %v9231_v44 = vcombine.low %v9222_v20, %v9229_v59  ;;  %v9260_v42 = vrot.slane %v9253_v32, %v11813_v31  ;;  %v7513_v37 = vrot.slane %v7491_v54, %v11813_v31  ;;  %v6971_v18 = vmax.f32 %v6852_v23, 0.0 }
 0x217   : > { %v9293_v50 = vcombine.low %v9271_v22, %v9278_v6  ;;  %v7520_v56 = vrot.slane %v7492_v52, %v11813_v31  ;;  %v14111_v26 = vadd.f32 %v13961_v61, %v13805_v29  ;;  %v6855_v60 = vadd.f32 %v13994_v4, %v6671_v24  ;;  %v6712_v53 = vpop.f32.mrf.mxu1  ;;  %v6885_v54 = vpop.f32.mrf.mxu0 }
 0x218   : > { %v9245_v20 = vrot.slane %v9231_v44, %v11813_v31  ;;  %v11586_v25 = vpack.c.bf16 %v9260_v42, %v9260_v42  ;;  %v9263_v21 = vcombine.low %v7499_v12, %v7513_v37  ;;  %v11495_v7 = vcombine.high %v7499_v12, %v7513_v37 }
 0x219   : > { %v9301_v45 = vrot.slane %v9293_v50, %v11813_v31  ;;  %v9310_v59 = vcombine.low %v7506_v51, %v7520_v56  ;;  %v11496_v32 = vcombine.high %v7506_v51, %v7520_v56  ;;  %v7525_v23 = vcombine.high %v6971_v18, %v6971_v18  ;;  %v14116_v47 = vpop.f32.mrf.mxu1  ;;  %v14122_v24 = vpop.f32.mrf.mxu0 }
 0x21a   : > { %v9246_v22 = vcombine.low %v9238_v30, %v9245_v20  ;;  %v11011_v29 = vsel %vm13897_vm3, %v11586_v25, %v11010_v48  ;;  %v9285_v61 = vrot.slane %v9263_v21, %v11813_v31  ;;  %v9292_v4 = vrot.slane %v11495_v7, %v11813_v31 }
 0x21b   : > { %11012 = vst [vmem:[%s13878_s20 + $0x2c] sm:$0x1] %v11011_v29  ;;  %v9320_v12 = vrot.slane %v9310_v59, %v11813_v31  ;;  %v9327_v6 = vrot.slane %v11496_v32, %v11813_v31  ;;  %v7532_v52 = vrot.slane %v6971_v18, %v11813_v31  ;;  %v7539_v51 = vrot.slane %v7525_v23, %v11813_v31  ;;  %v6717_v30 = vpop.f32.mrf.mxu1  ;;  %v6888_v48 = vpop.f32.mrf.mxu0 }
 0x21c   : > { %v11585_v44 = vpack.c.bf16 %v9246_v22, %v9246_v22  ;;  %v9294_v42 = vcombine.low %v9285_v61, %v9292_v4  ;;  %v6972_v37 = vmax.f32 %v6855_v60, 0.0  ;;  %v14131_v50 = vadd.f32 %v13979_v55, %v13814_v0 }
 0x21d   : > { %v9342_v56 = vcombine.low %v9320_v12, %v9327_v6  ;;  %v7540_v53 = vcombine.high %v7532_v52, %v7532_v52  ;;  %v7541_v20 = vcombine.high %v7539_v51, %v7539_v51  ;;  %v7548_v25 = vrot.slane %v7532_v52, %v11813_v31  ;;  %v14134_v21 = vpop.f32.mrf.mxu1  ;;  %v14141_v59 = vpop.f32.mrf.mxu0 }
 0x21e   : > { %11009 = vst.msk [vmem:[%s13878_s20 + $0x28] sm:$0xf] %vm10989_vm0, %v11585_v44  ;;  %v9308_v18 = vrot.slane %v9294_v42, %v11813_v31  ;;  %v7555_v7 = vrot.slane %v7539_v51, %v11813_v31  ;;  %v7574_v54 = vcombine.high %v6972_v37, %v6972_v37  ;;  %v7581_v60 = vrot.slane %v6972_v37, %v11813_v31 }
 0x21f   : > { %v9350_v0 = vrot.slane %v9342_v56, %v11813_v31  ;;  %v7562_v55 = vrot.slane %v7540_v53, %v11813_v31  ;;  %v7569_v32 = vrot.slane %v7541_v20, %v11813_v31  ;;  %v6860_v23 = vadd.f32 %v14007_v17, %v14083_v38  ;;  %v6720_v22 = vpop.f32.mrf.mxu1  ;;  %v6893_v6 = vpop.f32.mrf.mxu0  ;;  %v11015_v20 = vld [vmem:[%s13878_s20 + $0x38] sm:$0x1] }
 0x220   : > { %v9309_v29 = vcombine.low %v9301_v45, %v9308_v18  ;;  %v7571_v61 = vcombine.high %v7555_v7, %v7555_v7  ;;  %v9365_v4 = vrot.slane %v7555_v7, %v11813_v31  ;;  %v7588_v12 = vrot.slane %v7574_v54, %v11813_v31 }
 0x221   : > { %v9312_v52 = vcombine.low %v7548_v25, %v7562_v55  ;;  %v11497_v51 = vcombine.high %v7548_v25, %v7562_v55  ;;  %v7573_v30 = vcombine.high %v7569_v32, %v7569_v32  ;;  %v7589_v44 = vcombine.high %v7581_v60, %v7581_v60  ;;  %v14150_v42 = vpop.f32.mrf.mxu1  ;;  %v14153_v45 = vpop.f32.mrf.mxu0 }
 0x222   : > { %v11587_v37 = vpack.c.bf16 %v9309_v29, %v9309_v29  ;;  %v9372_v48 = vrot.slane %v9365_v4, %v11813_v31  ;;  %v9373_v17 = vcombine.low %v7569_v32, %v7571_v61  ;;  %v7590_v38 = vcombine.high %v7588_v12, %v7588_v12 }
 0x223   : > { %v9334_v56 = vrot.slane %v9312_v52, %v11813_v31  ;;  %v9341_v53 = vrot.slane %v11497_v51, %v11813_v31  ;;  %v7597_v18 = vrot.slane %v7581_v60, %v11813_v31  ;;  %v7604_v25 = vrot.slane %v7588_v12, %v11813_v31  ;;  %v6725_v7 = vpop.f32.mrf.mxu1  ;;  %v6896_v29 = vpop.f32.mrf.mxu0 }
 0x224   : > { %11013 = vst.msk [vmem:[%s13878_s20 + $0x30] sm:$0xf] %vm10989_vm0, %v11587_v37  ;;  %v11589_v54 = vpack.c.bf16 %v9372_v48, %v9372_v48  ;;  %v7611_v55 = vrot.slane %v7589_v44, %v11813_v31  ;;  %v7618_v32 = vrot.slane %v7590_v38, %v11813_v31  ;;  %v9383_v22 = vrot.slane %v9373_v17, %v11813_v31 }
 0x225   : > { %v9343_v61 = vcombine.low %v9334_v56, %v9341_v53  ;;  %v7619_v4 = vcombine.high %v7597_v18, %v7597_v18  ;;  %v7620_v6 = vcombine.high %v7604_v25, %v7604_v25  ;;  %v9374_v52 = vcombine.low %v7573_v30, %v7597_v18  ;;  %v14165_v51 = vpop.f32.mrf.mxu1  ;;  %v14169_v7 = vpop.f32.mrf.mxu0 }
 0x226   : > { %v11016_v60 = vsel %vm13897_vm3, %v11589_v54, %v11015_v20  ;;  %v7621_v12 = vcombine.high %v7611_v55, %v7611_v55  ;;  %v6973_v37 = vmax.f32 %v6860_v23, 0.0  ;;  %v7622_v48 = vcombine.high %v7618_v32, %v7618_v32 }
 0x227   : > { %v9357_v44 = vrot.slane %v9343_v61, %v11813_v31  ;;  %11017 = vst [vmem:[%s13878_s20 + $0x38] sm:$0x1] %v11016_v60  ;;  %v9375_v38 = vcombine.low %v7611_v55, %v7619_v4  ;;  %v9390_v17 = vrot.slane %v9374_v52, %v11813_v31  ;;  %v9422_v56 = vcombine.low %v7618_v32, %v7620_v6  ;;  %v6728_v53 = vpop.f32.mrf.mxu1  ;;  %v6901_v23 = vpop.f32.mrf.mxu0 }
 0x228   : > { %v9376_v29 = vcombine.low %v7621_v12, %v7604_v25  ;;  %v7623_v30 = vcombine.high %v6973_v37, %v6973_v37  ;;  %v7630_v18 = vrot.slane %v6973_v37, %v11813_v31  ;;  %v14177_v20 = vadd.f32 %v14001_v3, %v13820_v14 }
 0x229   : > { %v9358_v54 = vcombine.low %v9350_v0, %v9357_v44  ;;  %v9397_v16 = vrot.slane %v9375_v38, %v11813_v31  ;;  %v9405_v43 = vcombine.low %v9383_v22, %v9390_v17  ;;  %v9432_v61 = vrot.slane %v9422_v56, %v11813_v31  ;;  %v14181_v55 = vpop.f32.mrf.mxu1  ;;  %v14186_v52 = vpop.f32.mrf.mxu0 }
 0x22a   : > { %v9404_v32 = vrot.slane %v9376_v29, %v11813_v31  ;;  %v7637_v25 = vrot.slane %v7623_v30, %v11813_v31  ;;  %v7638_v4 = vcombine.high %v7630_v18, %v7630_v18  ;;  %v7646_v6 = vrot.slane %v7630_v18, %v11813_v31 }
 0x22b   : > { %v11588_v14 = vpack.c.bf16 %v9358_v54, %v9358_v54  ;;  %v9413_v3 = vrot.slane %v9405_v43, %v11813_v31  ;;  %v6863_v0 = vadd.f32 %v14024_v49, %v14111_v26  ;;  %v6692_v22 = vadd.f32 %v14020_v13, %v13827_v34  ;;  %v6733_v60 = vpop.f32.mrf.mxu1  ;;  %v6904_v17 = vpop.f32.mrf.mxu0 }
 0x22c   : > { %v9406_v12 = vcombine.low %v9397_v16, %v9404_v32  ;;  %v7639_v37 = vcombine.high %v7637_v25, %v7637_v25  ;;  %v7653_v44 = vrot.slane %v7637_v25, %v11813_v31  ;;  %v7660_v38 = vrot.slane %v7638_v4, %v11813_v31 }
 0x22d   : > { %11014 = vst.msk [vmem:[%s13878_s20 + $0x34] sm:$0xf] %vm10989_vm0, %v11588_v14  ;;  %v7668_v56 = vcombine.high %v7646_v6, %v7646_v6  ;;  %v9423_v53 = vcombine.low %v7622_v48, %v7646_v6  ;;  %v6974_v29 = vmax.f32 %v6863_v0, 0.0  ;;  %v6868_v43 = vadd.f32 %v14034_v27, %v14131_v50  ;;  %v14199_v49 = vpop.f32.mrf.mxu1  ;;  %v14207_v30 = vpop.f32.mrf.mxu0 }
 0x22e   : > { %v9420_v34 = vrot.slane %v9406_v12, %v11813_v31  ;;  %v7667_v16 = vrot.slane %v7639_v37, %v11813_v31  ;;  %v7670_v13 = vcombine.high %v7660_v38, %v7660_v38  ;;  %v14205_v26 = vadd.f32 %v14031_v8, %v13832_v58 }
 0x22f   : > { %v9424_v18 = vcombine.low %v7660_v38, %v7668_v56  ;;  %v9439_v48 = vrot.slane %v9423_v53, %v11813_v31  ;;  %v7672_v23 = vcombine.high %v6974_v29, %v6974_v29  ;;  %v7679_v54 = vrot.slane %v6974_v29, %v11813_v31  ;;  %v6736_v27 = vpop.f32.mrf.mxu1  ;;  %v6909_v6 = vpop.f32.mrf.mxu0  ;;  %v11020_v56 = vld [vmem:[%s13878_s20 + $0x44] sm:$0x1] }
 0x230   : > { %v9421_v50 = vcombine.low %v9413_v3, %v9420_v34  ;;  %v9425_v32 = vcombine.low %v7670_v13, %v7653_v44  ;;  %v9477_v25 = vrot.slane %v7667_v16, %v11813_v31  ;;  %v11498_v4 = vcombine.high %v7653_v44, %v7667_v16 }
 0x231   : > { %v9446_v14 = vrot.slane %v9424_v18, %v11813_v31  ;;  %v9454_v58 = vcombine.low %v9432_v61, %v9439_v48  ;;  %v7686_v8 = vrot.slane %v7672_v23, %v11813_v31  ;;  %v7687_v0 = vcombine.high %v7679_v54, %v7679_v54  ;;  %v14214_v60 = vpop.f32.mrf.mxu1  ;;  %v14219_v17 = vpop.f32.mrf.mxu0 }
 0x232   : > { %v11590_v12 = vpack.c.bf16 %v9421_v50, %v9421_v50  ;;  %v9453_v37 = vrot.slane %v9425_v32, %v11813_v31  ;;  %v9484_v3 = vrot.slane %v9477_v25, %v11813_v31  ;;  %v9495_v38 = vrot.slane %v11498_v4, %v11813_v31 }
 0x233   : > { %v9462_v44 = vrot.slane %v9454_v58, %v11813_v31  ;;  %v7688_v53 = vcombine.high %v7686_v8, %v7686_v8  ;;  %v7695_v61 = vrot.slane %v7679_v54, %v11813_v31  ;;  %v7702_v29 = vrot.slane %v7686_v8, %v11813_v31  ;;  %v6741_v34 = vpop.f32.mrf.mxu1  ;;  %v6912_v23 = vpop.f32.mrf.mxu0 }
 0x234   : > { %11018 = vst.msk [vmem:[%s13878_s20 + $0x3c] sm:$0xf] %vm10989_vm0, %v11590_v12  ;;  %v9455_v16 = vcombine.low %v9446_v14, %v9453_v37  ;;  %v11592_v13 = vpack.c.bf16 %v9484_v3, %v9484_v3  ;;  %v7709_v18 = vrot.slane %v7687_v0, %v11813_v31  ;;  %v6975_v48 = vmax.f32 %v6868_v43, 0.0 }
 0x235   : > { %v7716_v27 = vrot.slane %v7688_v53, %v11813_v31  ;;  %v6871_v50 = vadd.f32 %v14048_v5, %v14177_v20  ;;  %v14233_v54 = vadd.f32 %v14044_v28, %v13834_v10  ;;  %v6876_v32 = vadd.f32 %v14071_v15, %v6692_v22  ;;  %v14236_v25 = vpop.f32.mrf.mxu1  ;;  %v14241_v58 = vpop.f32.mrf.mxu0 }
 0x236   : > { %v9469_v4 = vrot.slane %v9455_v16, %v11813_v31  ;;  %v11021_v6 = vsel %vm13897_vm3, %v11592_v13, %v11020_v56  ;;  %v9486_v43 = vcombine.low %v7695_v61, %v7709_v18  ;;  %v11499_v14 = vcombine.high %v7695_v61, %v7709_v18 }
 0x237   : > { %11022 = vst [vmem:[%s13878_s20 + $0x44] sm:$0x1] %v11021_v6  ;;  %v9488_v8 = vcombine.low %v7702_v29, %v7716_v27  ;;  %v11500_v5 = vcombine.high %v7702_v29, %v7716_v27  ;;  %v7721_v20 = vcombine.high %v6975_v48, %v6975_v48  ;;  %v7728_v10 = vrot.slane %v6975_v48, %v11813_v31  ;;  %v6744_v28 = vpop.f32.mrf.mxu1  ;;  %v6917_v37 = vpop.f32.mrf.mxu0 }
 0x238   : > { %v9470_v0 = vcombine.low %v9462_v44, %v9469_v4  ;;  %v9502_v15 = vrot.slane %v9486_v43, %v11813_v31  ;;  %v9509_v22 = vrot.slane %v11499_v14, %v11813_v31  ;;  %v6976_v12 = vmax.f32 %v6871_v50, 0.0 }
 0x239   : > { %v9516_v3 = vrot.slane %v9488_v8, %v11813_v31  ;;  %v9544_v56 = vrot.slane %v11500_v5, %v11813_v31  ;;  %v7735_v53 = vrot.slane %v7721_v20, %v11813_v31  ;;  %v7736_v61 = vcombine.high %v7728_v10, %v7728_v10  ;;  %v14250_v29 = vpop.f32.mrf.mxu1  ;;  %v14253_v18 = vpop.f32.mrf.mxu0 }
 0x23a   : > { %15179 = vst [vmem:[#allocation44_spill] sm:$0xff] %v14250_v29  ;;  %v11591_v34 = vpack.c.bf16 %v9470_v0, %v9470_v0  ;;  %v9517_v16 = vcombine.low %v9495_v38, %v9502_v15  ;;  %v7744_v44 = vrot.slane %v7728_v10, %v11813_v31  ;;  %v7770_v13 = vcombine.high %v6976_v12, %v6976_v12 }
 0x23b   : > { %v9518_v48 = vcombine.low %v9509_v22, %v9516_v3  ;;  %v7737_v23 = vcombine.high %v7735_v53, %v7735_v53  ;;  %v7751_v27 = vrot.slane %v7735_v53, %v11813_v31  ;;  %v7758_v50 = vrot.slane %v7736_v61, %v11813_v31  ;;  %v6749_v4 = vpop.f32.mrf.mxu1  ;;  %v6920_v8 = vpop.f32.mrf.mxu0 }
 0x23c   : > { %11019 = vst.msk [vmem:[%s13878_s20 + $0x40] sm:$0xf] %vm10989_vm0, %v11591_v34  ;;  %v9525_v6 = vrot.slane %v9517_v16, %v11813_v31  ;;  %v7777_v43 = vrot.slane %v6976_v12, %v11813_v31  ;;  %v7784_v38 = vrot.slane %v7770_v13, %v11813_v31  ;;  %v6977_v14 = vmax.f32 %v6876_v32, 0.0 }
 0x23d   : > { %v9532_v5 = vrot.slane %v9518_v48, %v11813_v31  ;;  %v7765_v20 = vrot.slane %v7737_v23, %v11813_v31  ;;  %v7767_v10 = vcombine.high %v7751_v27, %v7751_v27  ;;  %v9535_v28 = vcombine.low %v7744_v44, %v7758_v50  ;;  %v14264_v0 = vpop.f32.mrf.mxu1  ;;  %v14267_v53 = vpop.f32.mrf.mxu0 }
 0x23e   : > { %15180 = vst [vmem:[#allocation50_spill] sm:$0xff] %v14264_v0  ;;  %v11501_v15 = vcombine.high %v7744_v44, %v7758_v50  ;;  %v7785_v22 = vcombine.high %v7777_v43, %v7777_v43  ;;  %v7786_v37 = vcombine.high %v7784_v38, %v7784_v38  ;;  %v7793_v3 = vrot.slane %v7777_v43, %v11813_v31 }
 0x23f   : > { %15181 = vst [vmem:[#allocation48_spill] sm:$0xff] %v14267_v53  ;;  %v9533_v12 = vcombine.low %v9525_v6, %v9532_v5  ;;  %v9537_v61 = vcombine.low %v7751_v27, %v7765_v20  ;;  %v9551_v32 = vrot.slane %v9535_v28, %v11813_v31  ;;  %v9589_v34 = vrot.slane %v7767_v10, %v11813_v31  ;;  %v6752_v16 = vpop.f32.mrf.mxu1  ;;  %v6925_v50 = vpop.f32.mrf.mxu0  ;;  %v11025_v5 = vld [vmem:[%s13878_s20 + $0x50] sm:$0x1] }
 0x240   : > { %v9558_v13 = vrot.slane %v11501_v15, %v11813_v31  ;;  %v7769_v48 = vcombine.high %v7765_v20, %v7765_v20  ;;  %v7800_v44 = vrot.slane %v7784_v38, %v11813_v31  ;;  %v7807_v23 = vrot.slane %v7785_v22, %v11813_v31 }
 0x241   : > { %v11593_v4 = vpack.c.bf16 %v9533_v12, %v9533_v12  ;;  %v9565_v43 = vrot.slane %v9537_v61, %v11813_v31  ;;  %v9566_v8 = vcombine.low %v9544_v56, %v9551_v32  ;;  %v9596_v27 = vrot.slane %v9589_v34, %v11813_v31  ;;  %v14276_v6 = vpop.f32.mrf.mxu1  ;;  %v14280_v20 = vpop.f32.mrf.mxu0 }
 0x242   : > { %15182 = vst [vmem:[#allocation47_spill] sm:$0xff] %v14276_v6  ;;  %v7814_v10 = vrot.slane %v7786_v37, %v11813_v31  ;;  %v7815_v28 = vcombine.high %v7793_v3, %v7793_v3  ;;  %v7816_v15 = vcombine.high %v7800_v44, %v7800_v44  ;;  %v7817_v16 = vcombine.high %v7807_v23, %v7807_v23 }
 0x243   : > { %15183 = vst [vmem:[#allocation46_spill] sm:$0xff] %v14280_v20  ;;  %11023 = vst.msk [vmem:[%s13878_s20 + $0x48] sm:$0xf] %vm10989_vm0, %v11593_v4  ;;  %v9567_v38 = vcombine.low %v9558_v13, %v9565_v43  ;;  %v9574_v22 = vrot.slane %v9566_v8, %v11813_v31  ;;  %v11595_v12 = vpack.c.bf16 %v9596_v27, %v9596_v27  ;;  %v6757_v61 = vpop.f32.mrf.mxu1  ;;  %v6928_v0 = vpop.f32.mrf.mxu0 }
 0x244   : > { %v9597_v56 = vcombine.low %v7769_v48, %v7793_v3  ;;  %v9598_v32 = vcombine.low %v7807_v23, %v7815_v28  ;;  %v9599_v34 = vcombine.low %v7817_v16, %v7800_v44  ;;  %v9600_v50 = vcombine.low %v7814_v10, %v7816_v15 }
 0x245   : > { %v7818_v6 = vcombine.high %v7814_v10, %v7814_v10  ;;  %v9581_v37 = vrot.slane %v9567_v38, %v11813_v31  ;;  %v11026_v53 = vsel %vm13897_vm3, %v11595_v12, %v11025_v5  ;;  %v7819_v4 = vcombine.high %v6977_v14, %v6977_v14  ;;  %v14289_v29 = vpop.f32.mrf.mxu1  ;;  %v14296_v0 = vpop.f32.mrf.mxu0 }
 0x246   : > { %v9607_v20 = vrot.slane %v9597_v56, %v11813_v31  ;;  %11027 = vst [vmem:[%s13878_s20 + $0x50] sm:$0x1] %v11026_v53  ;;  %v9614_v13 = vrot.slane %v9598_v32, %v11813_v31  ;;  %v9621_v3 = vrot.slane %v9599_v34, %v11813_v31  ;;  %v9628_v48 = vrot.slane %v9600_v50, %v11813_v31 }
 0x247   : > { %v7826_v44 = vrot.slane %v6977_v14, %v11813_v31  ;;  %v9582_v23 = vcombine.low %v9574_v22, %v9581_v37  ;;  %v7833_v43 = vrot.slane %v7819_v4, %v11813_v31  ;;  %v14301_v8 = vadd.f32 %v14067_v39, %v13837_v35  ;;  %v6760_v27 = vpop.f32.mrf.mxu1  ;;  %v6933_v14 = vpop.f32.mrf.mxu0 }
 0x248   : > { %v6879_v53 = vadd.f32 %v14088_v33, %v14205_v26  ;;  %v9629_v5 = vcombine.low %v9607_v20, %v9614_v13  ;;  %v9630_v10 = vcombine.low %v9621_v3, %v9628_v48 }
 0x249   : > { %v7834_v28 = vcombine.high %v7826_v44, %v7826_v44  ;;  %v7842_v15 = vrot.slane %v7826_v44, %v11813_v31  ;;  %v11594_v16 = vpack.c.bf16 %v9582_v23, %v9582_v23  ;;  %v7835_v38 = vcombine.high %v7833_v43, %v7833_v43  ;;  %v14307_v56 = vpop.f32.mrf.mxu1  ;;  %v14312_v20 = vpop.f32.mrf.mxu0 }
 0x24a   : > { %v7849_v22 = vrot.slane %v7833_v43, %v11813_v31  ;;  %v6978_v12 = vmax.f32 %v6879_v53, 0.0  ;;  %v9637_v35 = vrot.slane %v9629_v5, %v11813_v31  ;;  %v9644_v39 = vrot.slane %v9630_v10, %v11813_v31 }
 0x24b   : > { %v7856_v33 = vrot.slane %v7834_v28, %v11813_v31  ;;  %v7864_v26 = vcombine.high %v7842_v15, %v7842_v15  ;;  %11024 = vst.msk [vmem:[%s13878_s20 + $0x4c] sm:$0xf] %vm10989_vm0, %v11594_v16  ;;  %v7863_v61 = vrot.slane %v7835_v38, %v11813_v31  ;;  %v9646_v34 = vcombine.low %v7818_v6, %v7842_v15  ;;  %v6765_v37 = vpop.f32.mrf.mxu1  ;;  %v6936_v44 = vpop.f32.mrf.mxu0 }
 0x24c   : > { %v7865_v32 = vcombine.high %v7849_v22, %v7849_v22  ;;  %v7868_v50 = vcombine.high %v6978_v12, %v6978_v12  ;;  %v9645_v4 = vcombine.low %v9637_v35, %v9644_v39  ;;  %v7875_v48 = vrot.slane %v6978_v12, %v11813_v31  ;;  %v11030_v44 = vld [vmem:[%s13878_s20 + $0x5c] sm:$0x1] }
 0x24d   : > { %v7866_v13 = vcombine.high %v7856_v33, %v7856_v33  ;;  %v9647_v3 = vcombine.low %v7856_v33, %v7864_v26  ;;  %v7867_v23 = vcombine.high %v7863_v61, %v7863_v61  ;;  %v9656_v53 = vrot.slane %v9646_v34, %v11813_v31  ;;  %v14320_v5 = vpop.f32.mrf.mxu1  ;;  %v14323_v14 = vpop.f32.mrf.mxu0 }
 0x24e   : > { %v9649_v43 = vcombine.low %v7863_v61, %v7865_v32  ;;  %v7882_v27 = vrot.slane %v7868_v50, %v11813_v31  ;;  %v11596_v10 = vpack.c.bf16 %v9645_v4, %v9645_v4  ;;  %v7883_v15 = vcombine.high %v7875_v48, %v7875_v48 }
 0x24f   : > { %v9648_v28 = vcombine.low %v7866_v13, %v7849_v22  ;;  %v9663_v6 = vrot.slane %v9647_v3, %v11813_v31  ;;  %v9701_v38 = vrot.slane %v7867_v23, %v11813_v31  ;;  %v7891_v35 = vrot.slane %v7875_v48, %v11813_v31  ;;  %v6768_v39 = vpop.f32.mrf.mxu1  ;;  %v6941_v32 = vpop.f32.mrf.mxu0 }
 0x250   : > { %v9677_v16 = vrot.slane %v9649_v43, %v11813_v31  ;;  %v7884_v12 = vcombine.high %v7882_v27, %v7882_v27  ;;  %11028 = vst.msk [vmem:[%s13878_s20 + $0x54] sm:$0xf] %vm10989_vm0, %v11596_v10  ;;  %v7898_v22 = vrot.slane %v7882_v27, %v11813_v31  ;;  %v7905_v61 = vrot.slane %v7883_v15, %v11813_v31 }
 0x251   : > { %v9670_v33 = vrot.slane %v9648_v28, %v11813_v31  ;;  %v9678_v26 = vcombine.low %v9656_v53, %v9663_v6  ;;  %v9708_v34 = vrot.slane %v9701_v38, %v11813_v31  ;;  %v6708_v37 = vadd.f32 %v14085_v19, %v13743_v40  ;;  %v14339_v13 = vpop.f32.mrf.mxu1  ;;  %v14343_v53 = vpop.f32.mrf.mxu0 }
 0x252   : > { %v7912_v50 = vrot.slane %v7884_v12, %v11813_v31  ;;  %v6884_v4 = vadd.f32 %v14105_v2, %v14233_v54  ;;  %v9709_v23 = vcombine.low %v7891_v35, %v7905_v61  ;;  %v11502_v43 = vcombine.high %v7891_v35, %v7905_v61 }
 0x253   : > { %v9679_v3 = vcombine.low %v9670_v33, %v9677_v16  ;;  %v9686_v48 = vrot.slane %v9678_v26, %v11813_v31  ;;  %v11598_v27 = vpack.c.bf16 %v9708_v34, %v9708_v34  ;;  %v6773_v15 = vpop.f32.mrf.mxu1  ;;  %v6711_v54 = vadd.f32 %v14101_v11, %v13747_v62  ;;  %v6944_v16 = vpop.f32.mrf.mxu0 }
 0x254   : > { %v9711_v10 = vcombine.low %v7898_v22, %v7912_v50  ;;  %v11503_v28 = vcombine.high %v7898_v22, %v7912_v50  ;;  %v6979_v6 = vmax.f32 %v6884_v4, 0.0  ;;  %v9719_v19 = vrot.slane %v9709_v23, %v11813_v31 }
 0x255   : > { %v9693_v40 = vrot.slane %v9679_v3, %v11813_v31  ;;  %v9726_v2 = vrot.slane %v11502_v43, %v11813_v31  ;;  %v11031_v38 = vsel %vm13897_vm3, %v11598_v27, %v11030_v44  ;;  %v6774_v33 = vpop.f32.mrf.mxu1  ;;  %v6887_v32 = vadd.f32 %v14122_v24, %v14301_v8  ;;  %v14358_v62 = vpop.f32.mrf.mxu0 }
 0x256   : > { %v9733_v12 = vrot.slane %v9711_v10, %v11813_v31  ;;  %v9740_v35 = vrot.slane %v11503_v28, %v11813_v31  ;;  %v7917_v39 = vcombine.high %v6979_v6, %v6979_v6  ;;  %11032 = vst [vmem:[%s13878_s20 + $0x5c] sm:$0x1] %v11031_v38  ;;  %v7924_v61 = vrot.slane %v6979_v6, %v11813_v31 }
 0x257   : > { %v9694_v26 = vcombine.low %v9686_v48, %v9693_v40  ;;  %v9741_v22 = vcombine.low %v9719_v19, %v9726_v2  ;;  %v14363_v50 = vadd.f32 %v14116_v47, %v13751_v9  ;;  %v6892_v4 = vadd.f32 %v14141_v59, %v6708_v37  ;;  %v6775_v3 = vpop.f32.mrf.mxu1  ;;  %v6949_v24 = vpop.f32.mrf.mxu0 }
 0x258   : > { %v9742_v11 = vcombine.low %v9733_v12, %v9740_v35  ;;  %v7931_v34 = vrot.slane %v7917_v39, %v11813_v31  ;;  %v7932_v23 = vcombine.high %v7924_v61, %v7924_v61  ;;  %v7940_v43 = vrot.slane %v7924_v61, %v11813_v31 }
 0x259   : > { %v11597_v48 = vpack.c.bf16 %v9694_v26, %v9694_v26  ;;  %v9749_v44 = vrot.slane %v9741_v22, %v11813_v31  ;;  %v6980_v28 = vmax.f32 %v6887_v32, 0.0  ;;  %v6981_v47 = vmax.f32 %v6892_v4, 0.0  ;;  %v14380_v6 = vpop.f32.mrf.mxu0 }
 0x25a   : > { %v9756_v8 = vrot.slane %v9742_v11, %v11813_v31  ;;  %v7933_v27 = vcombine.high %v7931_v34, %v7931_v34  ;;  %v7947_v10 = vrot.slane %v7931_v34, %v11813_v31  ;;  %v7954_v9 = vrot.slane %v7932_v23, %v11813_v31 }
 0x25b   : > { %11029 = vst.msk [vmem:[%s13878_s20 + $0x58] sm:$0xf] %vm10989_vm0, %v11597_v48  ;;  %v14375_v59 = vadd.f32 %v14134_v21, %v13755_v1  ;;  %v14378_v37 = vadd.f32 %v14153_v45, %v6711_v54  ;;  %v7966_v19 = vcombine.high %v6980_v28, %v6980_v28  ;;  %v7973_v2 = vrot.slane %v6980_v28, %v11813_v31  ;;  %v6952_v39 = vpop.f32.mrf.mxu0 }
 0x25c   : > { %v9757_v15 = vcombine.low %v9749_v44, %v9756_v8  ;;  %v7961_v40 = vrot.slane %v7933_v27, %v11813_v31  ;;  %v9758_v16 = vcombine.low %v7940_v43, %v7954_v9  ;;  %v11504_v38 = vcombine.high %v7940_v43, %v7954_v9 }
 0x25d   : > { %v8015_v12 = vcombine.high %v6981_v47, %v6981_v47  ;;  %v8022_v35 = vrot.slane %v6981_v47, %v11813_v31  ;;  %v7980_v45 = vrot.slane %v7966_v19, %v11813_v31  ;;  %v7981_v22 = vcombine.high %v7973_v2, %v7973_v2  ;;  %v14389_v32 = vpop.f32.mrf.mxu0 }
 0x25e   : > { %v11599_v1 = vpack.c.bf16 %v9757_v15, %v9757_v15  ;;  %v9760_v21 = vcombine.low %v7947_v10, %v7961_v40  ;;  %v11505_v33 = vcombine.high %v7947_v10, %v7961_v40  ;;  %v9768_v54 = vrot.slane %v9758_v16, %v11813_v31 }
 0x25f   : > { %v9775_v26 = vrot.slane %v11504_v38, %v11813_v31  ;;  %v7989_v61 = vrot.slane %v7973_v2, %v11813_v31  ;;  %v7982_v4 = vcombine.high %v7980_v45, %v7980_v45  ;;  %v7996_v3 = vrot.slane %v7980_v45, %v11813_v31  ;;  %v6957_v24 = vpop.f32.mrf.mxu0  ;;  %v11035_v38 = vld [vmem:[%s13878_s20 + $0x68] sm:$0x1] }
 0x260   : > { %11033 = vst.msk [vmem:[%s13878_s20 + $0x60] sm:$0xf] %vm10989_vm0, %v11599_v1  ;;  %v9782_v11 = vrot.slane %v9760_v21, %v11813_v31  ;;  %v9789_v34 = vrot.slane %v11505_v33, %v11813_v31  ;;  %v8003_v44 = vrot.slane %v7981_v22, %v11813_v31  ;;  %v8029_v28 = vrot.slane %v8015_v12, %v11813_v31 }
 0x261   : > { %v9790_v48 = vcombine.low %v9768_v54, %v9775_v26  ;;  %v8011_v23 = vcombine.high %v7989_v61, %v7989_v61  ;;  %v9813_v43 = vrot.slane %v7989_v61, %v11813_v31  ;;  %v8010_v27 = vrot.slane %v7982_v4, %v11813_v31  ;;  %v6958_v19 = vpop.f32.mrf.mxu0 }
 0x262   : > { %v9791_v8 = vcombine.low %v9782_v11, %v9789_v34  ;;  %v8012_v10 = vcombine.high %v7996_v3, %v7996_v3  ;;  %v8013_v47 = vcombine.high %v8003_v44, %v8003_v44  ;;  %v8030_v1 = vcombine.high %v8022_v35, %v8022_v35 }
 0x263   : > { %v9798_v9 = vrot.slane %v9790_v48, %v11813_v31  ;;  %v9820_v15 = vrot.slane %v9813_v43, %v11813_v31  ;;  %v9821_v40 = vcombine.low %v8003_v44, %v8011_v23  ;;  %v8014_v39 = vcombine.high %v8010_v27, %v8010_v27  ;;  %v6959_v12 = vpop.f32.mrf.mxu0 }
 0x264   : > { %v9805_v2 = vrot.slane %v9791_v8, %v11813_v31  ;;  %v9823_v16 = vcombine.low %v8010_v27, %v8012_v10  ;;  %v9822_v21 = vcombine.low %v8013_v47, %v7996_v3  ;;  %v8031_v54 = vcombine.high %v8029_v28, %v8029_v28 }
 0x265   : > { %v9831_v33 = vrot.slane %v9821_v40, %v11813_v31  ;;  %v11601_v45 = vpack.c.bf16 %v9820_v15, %v9820_v15  ;;  %v8038_v22 = vrot.slane %v8022_v35, %v11813_v31  ;;  %v8045_v61 = vrot.slane %v8029_v28, %v11813_v31 }
 0x266   : > { %v9806_v26 = vcombine.low %v9798_v9, %v9805_v2  ;;  %v8052_v11 = vrot.slane %v8030_v1, %v11813_v31  ;;  %v9838_v34 = vrot.slane %v9822_v21, %v11813_v31  ;;  %v8059_v3 = vrot.slane %v8031_v54, %v11813_v31 }
 0x267   : > { %v11036_v4 = vsel %vm13897_vm3, %v11601_v45, %v11035_v38  ;;  %v9845_v48 = vrot.slane %v9823_v16, %v11813_v31  ;;  %v8060_v23 = vcombine.high %v8038_v22, %v8038_v22  ;;  %v8061_v43 = vcombine.high %v8045_v61, %v8045_v61 }
 0x268   : > { %v11600_v44 = vpack.c.bf16 %v9806_v26, %v9806_v26  ;;  %11037 = vst [vmem:[%s13878_s20 + $0x68] sm:$0x1] %v11036_v4  ;;  %v8062_v24 = vcombine.high %v8052_v11, %v8052_v11  ;;  %v9853_v35 = vcombine.low %v9831_v33, %v9838_v34  ;;  %v9824_v8 = vcombine.low %v8014_v39, %v8038_v22 }
 0x269   : > { %v6982_v27 = vmax.f32 %v14378_v37, 0.0  ;;  %v8063_v10 = vcombine.high %v8059_v3, %v8059_v3  ;;  %v9870_v28 = vcombine.low %v8052_v11, %v8060_v23  ;;  %v9872_v47 = vcombine.low %v8059_v3, %v8061_v43 }
 0x26a   : > { %11034 = vst.msk [vmem:[%s13878_s20 + $0x64] sm:$0xf] %vm10989_vm0, %v11600_v44  ;;  %v9871_v9 = vcombine.low %v8062_v24, %v8045_v61  ;;  %v14419_v15 = vadd.f32 %v14150_v42, %v13759_v41  ;;  %v9861_v40 = vrot.slane %v9853_v35, %v11813_v31  ;;  %v9852_v19 = vrot.slane %v9824_v8, %v11813_v31 }
 0x26b   : > { %v8064_v2 = vcombine.high %v6982_v27, %v6982_v27  ;;  %v8071_v16 = vrot.slane %v6982_v27, %v11813_v31  ;;  %v9880_v38 = vrot.slane %v9870_v28, %v11813_v31  ;;  %v9894_v39 = vrot.slane %v9872_v47, %v11813_v31 }
 0x26c   : > { %v9887_v37 = vrot.slane %v9871_v9, %v11813_v31  ;;  %v6900_v1 = vadd.f32 %v14169_v7, %v14363_v50  ;;  %v9854_v21 = vcombine.low %v9845_v48, %v9852_v19  ;;  %v14433_v12 = vadd.f32 %v14165_v51, %v13763_v36  ;;  %v11040_v9 = vld [vmem:[%s13878_s20 + $0x74] sm:$0x1] }
 0x26d   : > { %v8078_v41 = vrot.slane %v8064_v2, %v11813_v31  ;;  %v8079_v42 = vcombine.high %v8071_v16, %v8071_v16  ;;  %v8087_v33 = vrot.slane %v8071_v16, %v11813_v31  ;;  %v6903_v26 = vadd.f32 %v14186_v52, %v14375_v59 }
 0x26e   : > { %v9902_v45 = vcombine.low %v9880_v38, %v9887_v37  ;;  %v6983_v54 = vmax.f32 %v6900_v1, 0.0  ;;  %v9868_v22 = vrot.slane %v9854_v21, %v11813_v31  ;;  %v14460_v21 = vadd.f32 %v14181_v55, %v13769_v57 }
 0x26f   : > { %v8080_v61 = vcombine.high %v8078_v41, %v8078_v41  ;;  %v8094_v7 = vrot.slane %v8078_v41, %v11813_v31  ;;  %v8101_v50 = vrot.slane %v8079_v42, %v11813_v31  ;;  %v9873_v34 = vcombine.low %v8063_v10, %v8087_v33 }
 0x270   : > { %v9910_v11 = vrot.slane %v9902_v45, %v11813_v31  ;;  %v8113_v4 = vcombine.high %v6983_v54, %v6983_v54  ;;  %v8120_v3 = vrot.slane %v6983_v54, %v11813_v31  ;;  %v9869_v48 = vcombine.low %v9861_v40, %v9868_v22 }
 0x271   : > { %v8108_v36 = vrot.slane %v8080_v61, %v11813_v31  ;;  %v9925_v51 = vrot.slane %v8101_v50, %v11813_v31  ;;  %v11506_v52 = vcombine.high %v8087_v33, %v8101_v50  ;;  %v9901_v59 = vrot.slane %v9873_v34, %v11813_v31 }
 0x272   : > { %v8127_v44 = vrot.slane %v8113_v4, %v11813_v31  ;;  %v8128_v23 = vcombine.high %v8120_v3, %v8120_v3  ;;  %v8136_v43 = vrot.slane %v8120_v3, %v11813_v31  ;;  %v11602_v24 = vpack.c.bf16 %v9869_v48, %v9869_v48 }
 0x273   : > { %v9932_v35 = vrot.slane %v9925_v51, %v11813_v31  ;;  %v9934_v8 = vcombine.low %v8094_v7, %v8108_v36  ;;  %v11507_v27 = vcombine.high %v8094_v7, %v8108_v36  ;;  %v9903_v10 = vcombine.low %v9894_v39, %v9901_v59 }
 0x274   : > { %v9943_v28 = vrot.slane %v11506_v52, %v11813_v31  ;;  %v8129_v47 = vcombine.high %v8127_v44, %v8127_v44  ;;  %v8143_v40 = vrot.slane %v8127_v44, %v11813_v31  ;;  %11038 = vst.msk [vmem:[%s13878_s20 + $0x6c] sm:$0xf] %vm10989_vm0, %v11602_v24  ;;  %v8150_v38 = vrot.slane %v8128_v23, %v11813_v31 }
 0x275   : > { %v9950_v19 = vrot.slane %v9934_v8, %v11813_v31  ;;  %v9957_v2 = vrot.slane %v11507_v27, %v11813_v31  ;;  %v11604_v16 = vpack.c.bf16 %v9932_v35, %v9932_v35  ;;  %v9917_v37 = vrot.slane %v9903_v10, %v11813_v31 }
 0x276   : > { %v8157_v39 = vrot.slane %v8129_v47, %v11813_v31  ;;  %v6984_v1 = vmax.f32 %v6903_v26, 0.0  ;;  %v9936_v33 = vcombine.low %v8136_v43, %v8150_v38  ;;  %v11508_v45 = vcombine.high %v8136_v43, %v8150_v38 }
 0x277   : > { %v9965_v41 = vcombine.low %v9943_v28, %v9950_v19  ;;  %v11041_v42 = vsel %vm13897_vm3, %v11604_v16, %v11040_v9  ;;  %v9918_v54 = vcombine.low %v9910_v11, %v9917_v37  ;;  %v6908_v52 = vadd.f32 %v14207_v30, %v14419_v15 }
 0x278   : > { %11042 = vst [vmem:[%s13878_s20 + $0x74] sm:$0x1] %v11041_v42  ;;  %v9983_v22 = vcombine.low %v8143_v40, %v8157_v39  ;;  %v11509_v61 = vcombine.high %v8143_v40, %v8157_v39  ;;  %v8162_v7 = vcombine.high %v6984_v1, %v6984_v1  ;;  %v9964_v26 = vrot.slane %v9936_v33, %v11813_v31 }
 0x279   : > { %v9973_v50 = vrot.slane %v9965_v41, %v11813_v31  ;;  %v9992_v34 = vrot.slane %v11508_v45, %v11813_v31  ;;  %v8169_v57 = vrot.slane %v6984_v1, %v11813_v31  ;;  %v11603_v55 = vpack.c.bf16 %v9918_v54, %v9918_v54 }
 0x27a   : > { %v9999_v4 = vrot.slane %v9983_v22, %v11813_v31  ;;  %v10006_v3 = vrot.slane %v11509_v61, %v11813_v31  ;;  %v8176_v11 = vrot.slane %v8162_v7, %v11813_v31  ;;  %v9966_v48 = vcombine.low %v9957_v2, %v9964_v26 }
 0x27b   : > { %v8177_v36 = vcombine.high %v8169_v57, %v8169_v57  ;;  %v8185_v51 = vrot.slane %v8169_v57, %v11813_v31  ;;  %11039 = vst.msk [vmem:[%s13878_s20 + $0x70] sm:$0xf] %vm10989_vm0, %v11603_v55  ;;  %v14480_v43 = vadd.f32 %v14199_v49, %v13775_v46  ;;  %v6985_v27 = vmax.f32 %v6908_v52, 0.0 }
 0x27c   : > { %v10014_v59 = vcombine.low %v9992_v34, %v9999_v4  ;;  %v8178_v44 = vcombine.high %v8176_v11, %v8176_v11  ;;  %v8192_v23 = vrot.slane %v8176_v11, %v11813_v31  ;;  %v9980_v24 = vrot.slane %v9966_v48, %v11813_v31 }
 0x27d   : > { %v8199_v35 = vrot.slane %v8177_v36, %v11813_v31  ;;  %v8207_v8 = vcombine.high %v8185_v51, %v8185_v51  ;;  %v6911_v28 = vadd.f32 %v14219_v17, %v14433_v12  ;;  %v8211_v2 = vcombine.high %v6985_v27, %v6985_v27  ;;  %v11045_v17 = vld [vmem:[%s13878_s20 + $0x80] sm:$0x1] }
 0x27e   : > { %v10022_v10 = vrot.slane %v10014_v59, %v11813_v31  ;;  %v8206_v30 = vrot.slane %v8178_v44, %v11813_v31  ;;  %v8208_v15 = vcombine.high %v8192_v23, %v8192_v23  ;;  %v9981_v9 = vcombine.low %v9973_v50, %v9980_v24 }
 0x27f   : > { %v8209_v47 = vcombine.high %v8199_v35, %v8199_v35  ;;  %v9985_v46 = vcombine.low %v8185_v51, %v8199_v35  ;;  %v10037_v49 = vrot.slane %v8207_v8, %v11813_v31  ;;  %v8218_v16 = vrot.slane %v6985_v27, %v11813_v31 }
 0x280   : > { %v10046_v40 = vcombine.low %v8206_v30, %v8208_v15  ;;  %v8210_v19 = vcombine.high %v8206_v30, %v8206_v30  ;;  %v11605_v38 = vpack.c.bf16 %v9981_v9, %v9981_v9  ;;  %v8225_v12 = vrot.slane %v8211_v2, %v11813_v31  ;;  %v15184_v9 = vld [vmem:[#allocation24_spill] sm:$0xff] }
 0x281   : > { %v10013_v37 = vrot.slane %v9985_v46, %v11813_v31  ;;  %v10044_v39 = vrot.slane %v10037_v49, %v11813_v31  ;;  %v10045_v1 = vcombine.low %v8209_v47, %v8192_v23  ;;  %v8226_v42 = vcombine.high %v8218_v16, %v8218_v16 }
 0x282   : > { %v10062_v41 = vrot.slane %v10046_v40, %v11813_v31  ;;  %v8234_v33 = vrot.slane %v8218_v16, %v11813_v31  ;;  %11043 = vst.msk [vmem:[%s13878_s20 + $0x78] sm:$0xf] %vm10989_vm0, %v11605_v38  ;;  %v6986_v61 = vmax.f32 %v6911_v28, 0.0  ;;  %v8227_v7 = vcombine.high %v8225_v12, %v8225_v12 }
 0x283   : > { %v10015_v45 = vcombine.low %v10006_v3, %v10013_v37  ;;  %v10055_v54 = vrot.slane %v10045_v1, %v11813_v31  ;;  %v11607_v22 = vpack.c.bf16 %v10044_v39, %v10044_v39  ;;  %v8241_v50 = vrot.slane %v8225_v12, %v11813_v31  ;;  %v15185_v1 = vld [vmem:[#allocation26_spill] sm:$0xff] }
 0x284   : > { %v8248_v26 = vrot.slane %v8226_v42, %v11813_v31  ;;  %v8256_v34 = vcombine.high %v8234_v33, %v8234_v33  ;;  %v10047_v11 = vcombine.low %v8210_v19, %v8234_v33  ;;  %v8255_v3 = vrot.slane %v8227_v7, %v11813_v31 }
 0x285   : > { %v10029_v57 = vrot.slane %v10015_v45, %v11813_v31  ;;  %v10077_v55 = vcombine.low %v10055_v54, %v10062_v41  ;;  %v11046_v4 = vsel %vm13897_vm3, %v11607_v22, %v11045_v17  ;;  %v8257_v48 = vcombine.high %v8241_v50, %v8241_v50 }
 0x286   : > { %11047 = vst [vmem:[%s13878_s20 + $0x80] sm:$0x1] %v11046_v4  ;;  %v8258_v36 = vcombine.high %v8248_v26, %v8248_v26  ;;  %v10048_v51 = vcombine.low %v8248_v26, %v8256_v34  ;;  %v10069_v44 = vrot.slane %v10047_v11, %v11813_v31  ;;  %v8260_v23 = vcombine.high %v6986_v61, %v6986_v61 }
 0x287   : > { %v10030_v52 = vcombine.low %v10022_v10, %v10029_v57  ;;  %v10085_v59 = vrot.slane %v10077_v55, %v11813_v31  ;;  %v10095_v8 = vcombine.low %v8255_v3, %v8257_v48  ;;  %v8259_v27 = vcombine.high %v8255_v3, %v8255_v3 }
 0x288   : > { %v10076_v24 = vrot.slane %v10048_v51, %v11813_v31  ;;  %v10094_v35 = vcombine.low %v8258_v36, %v8241_v50  ;;  %v8267_v15 = vrot.slane %v6986_v61, %v11813_v31  ;;  %v8274_v28 = vrot.slane %v8260_v23, %v11813_v31 }
 0x289   : > { %v11606_v30 = vpack.c.bf16 %v10030_v52, %v10030_v52  ;;  %v6740_v47 = vadd.f32 %v14214_v60, %v15184_v9  ;;  %v10111_v49 = vrot.slane %v10095_v8, %v11813_v31  ;;  %v6916_v40 = vadd.f32 %v14241_v58, %v14460_v21 }
 0x28a   : > { %v10078_v10 = vcombine.low %v10069_v44, %v10076_v24  ;;  %v10104_v46 = vrot.slane %v10094_v35, %v11813_v31  ;;  %v8275_v19 = vcombine.high %v8267_v15, %v8267_v15  ;;  %v8276_v2 = vcombine.high %v8274_v28, %v8274_v28  ;;  %v15186_v24 = vld [vmem:[#allocation36_spill] sm:$0xff] }
 0x28b   : > { %11044 = vst.msk [vmem:[%s13878_s20 + $0x7c] sm:$0xf] %vm10989_vm0, %v11606_v30  ;;  %v8283_v16 = vrot.slane %v8267_v15, %v11813_v31  ;;  %v8290_v38 = vrot.slane %v8274_v28, %v11813_v31  ;;  %v6987_v60 = vmax.f32 %v6916_v40, 0.0  ;;  %v14524_v41 = vadd.f32 %v14236_v25, %v15185_v1  ;;  %v15187_v35 = vld [vmem:[#allocation44_spill] sm:$0xff]  ;;  %v11050_v30 = vld [vmem:[%s13878_s20 + $0x8c] sm:$0x1] }
 0x28c   : > { %v10092_v37 = vrot.slane %v10078_v10, %v11813_v31  ;;  %v10126_v39 = vcombine.low %v10104_v46, %v10111_v49  ;;  %v8297_v17 = vrot.slane %v8275_v19, %v11813_v31  ;;  %v8304_v58 = vrot.slane %v8276_v2, %v11813_v31  ;;  %v15188_v40 = vld [vmem:[#allocation48_spill] sm:$0xff] }
 0x28d   : > { %v8305_v21 = vcombine.high %v8283_v16, %v8283_v16  ;;  %v10096_v12 = vcombine.low %v8259_v27, %v8283_v16  ;;  %v8309_v45 = vcombine.high %v6987_v60, %v6987_v60  ;;  %v8316_v54 = vrot.slane %v6987_v60, %v11813_v31 }
 0x28e   : > { %v10093_v42 = vcombine.low %v10085_v59, %v10092_v37  ;;  %v10134_v33 = vrot.slane %v10126_v39, %v11813_v31  ;;  %v8307_v22 = vcombine.high %v8297_v17, %v8297_v17  ;;  %v10157_v50 = vcombine.low %v8290_v38, %v8304_v58 }
 0x28f   : > { %v10097_v61 = vcombine.low %v8297_v17, %v8305_v21  ;;  %v10118_v7 = vrot.slane %v10096_v12, %v11813_v31  ;;  %v11510_v26 = vcombine.high %v8290_v38, %v8304_v58  ;;  %v8323_v34 = vrot.slane %v8309_v45, %v11813_v31  ;;  %v15189_v45 = vld [vmem:[#allocation27_spill] sm:$0xff] }
 0x290   : > { %v11608_v25 = vpack.c.bf16 %v10093_v42, %v10093_v42  ;;  %v8324_v57 = vcombine.high %v8316_v54, %v8316_v54  ;;  %v10149_v4 = vrot.slane %v8307_v22, %v11813_v31  ;;  %v10167_v11 = vrot.slane %v10157_v50, %v11813_v31 }
 0x291   : > { %v10125_v55 = vrot.slane %v10097_v61, %v11813_v31  ;;  %v8332_v3 = vrot.slane %v8316_v54, %v11813_v31  ;;  %v10174_v48 = vrot.slane %v11510_v26, %v11813_v31  ;;  %v8325_v36 = vcombine.high %v8323_v34, %v8323_v34 }
 0x292   : > { %11048 = vst.msk [vmem:[%s13878_s20 + $0x84] sm:$0xf] %vm10989_vm0, %v11608_v25  ;;  %v8339_v51 = vrot.slane %v8323_v34, %v11813_v31  ;;  %v8346_v52 = vrot.slane %v8324_v57, %v11813_v31  ;;  %v10156_v44 = vrot.slane %v10149_v4, %v11813_v31  ;;  %v6919_v23 = vadd.f32 %v14253_v18, %v14480_v43 }
 0x293   : > { %v10127_v59 = vcombine.low %v10118_v7, %v10125_v55  ;;  %v14546_v8 = vadd.f32 %v15187_v35, %v15186_v24  ;;  %v10189_v27 = vcombine.low %v10167_v11, %v10174_v48  ;;  %v8353_v15 = vrot.slane %v8325_v36, %v11813_v31 }
 0x294   : > { %v10159_v28 = vcombine.low %v8332_v3, %v8346_v52  ;;  %v11511_v9 = vcombine.high %v8332_v3, %v8346_v52  ;;  %v11610_v46 = vpack.c.bf16 %v10156_v44, %v10156_v44  ;;  %v6988_v49 = vmax.f32 %v6919_v23, 0.0  ;;  %v15191_v3 = vld [vmem:[#allocation46_spill] sm:$0xff] }
 0x295   : > { %v10141_v10 = vrot.slane %v10127_v59, %v11813_v31  ;;  %v6924_v19 = vadd.f32 %v15188_v40, %v6740_v47  ;;  %v10197_v2 = vrot.slane %v10189_v27, %v11813_v31  ;;  %v10206_v16 = vcombine.low %v8339_v51, %v8353_v15 }
 0x296   : > { %v10181_v18 = vrot.slane %v10159_v28, %v11813_v31  ;;  %v10188_v43 = vrot.slane %v11511_v9, %v11813_v31  ;;  %v11051_v37 = vsel %vm13897_vm3, %v11610_v46, %v11050_v30  ;;  %v11512_v39 = vcombine.high %v8339_v51, %v8353_v15 }
 0x297   : > { %v10142_v38 = vcombine.low %v10134_v33, %v10141_v10  ;;  %v8358_v60 = vcombine.high %v6988_v49, %v6988_v49  ;;  %11052 = vst [vmem:[%s13878_s20 + $0x8c] sm:$0x1] %v11051_v37  ;;  %v10216_v17 = vrot.slane %v10206_v16, %v11813_v31  ;;  %v8365_v47 = vrot.slane %v6988_v49, %v11813_v31  ;;  %v15190_v33 = vld [vmem:[#allocation50_spill] sm:$0xff]  ;;  %v11055_v10 = vld [vmem:[%s13878_s20 + $0x98] sm:$0x1] }
 0x298   : > { %v10190_v1 = vcombine.low %v10181_v18, %v10188_v43  ;;  %v6989_v58 = vmax.f32 %v6924_v19, 0.0  ;;  %v10223_v12 = vrot.slane %v11512_v39, %v11813_v31  ;;  %v14564_v54 = vadd.f32 %v15190_v33, %v15189_v45 }
 0x299   : > { %v11609_v21 = vpack.c.bf16 %v10142_v38, %v10142_v38  ;;  %v8372_v42 = vrot.slane %v8358_v60, %v11813_v31  ;;  %v8373_v61 = vcombine.high %v8365_v47, %v8365_v47  ;;  %v8381_v7 = vrot.slane %v8365_v47, %v11813_v31 }
 0x29a   : > { %v10204_v22 = vrot.slane %v10190_v1, %v11813_v31  ;;  %v8407_v50 = vcombine.high %v6989_v58, %v6989_v58  ;;  %v10238_v25 = vcombine.low %v10216_v17, %v10223_v12  ;;  %v8414_v57 = vrot.slane %v6989_v58, %v11813_v31 }
 0x29b   : > { %11049 = vst.msk [vmem:[%s13878_s20 + $0x88] sm:$0xf] %vm10989_vm0, %v11609_v21  ;;  %v8374_v26 = vcombine.high %v8372_v42, %v8372_v42  ;;  %v8388_v34 = vrot.slane %v8372_v42, %v11813_v31  ;;  %v8395_v4 = vrot.slane %v8373_v61, %v11813_v31  ;;  %v6927_v48 = vadd.f32 %v15191_v3, %v14524_v41  ;;  %v15193_v61 = vld [vmem:[#allocation47_spill] sm:$0xff] }
 0x29c   : > { %v10205_v55 = vcombine.low %v10197_v2, %v10204_v22  ;;  %v8421_v11 = vrot.slane %v8407_v50, %v11813_v31  ;;  %v10246_v36 = vrot.slane %v10238_v25, %v11813_v31  ;;  %v8422_v35 = vcombine.high %v8414_v57, %v8414_v57  ;;  %v15192_v22 = vld [vmem:[#allocation25_spill] sm:$0xff] }
 0x29d   : > { %v8402_v51 = vrot.slane %v8374_v26, %v11813_v31  ;;  %v8404_v52 = vcombine.high %v8388_v34, %v8388_v34  ;;  %v10261_v59 = vrot.slane %v8388_v34, %v11813_v31  ;;  %v10208_v23 = vcombine.low %v8381_v7, %v8395_v4 }
 0x29e   : > { %v11611_v44 = vpack.c.bf16 %v10205_v55, %v10205_v55  ;;  %v11513_v24 = vcombine.high %v8381_v7, %v8395_v4  ;;  %v8423_v28 = vcombine.high %v8421_v11, %v8421_v11  ;;  %v8430_v46 = vrot.slane %v8414_v57, %v11813_v31 }
 0x29f   : > { %v10268_v27 = vrot.slane %v10261_v59, %v11813_v31  ;;  %v10269_v30 = vcombine.low %v8402_v51, %v8404_v52  ;;  %v8406_v15 = vcombine.high %v8402_v51, %v8402_v51  ;;  %v10230_v41 = vrot.slane %v10208_v23, %v11813_v31 }
 0x2a0   : > { %11053 = vst.msk [vmem:[%s13878_s20 + $0x90] sm:$0xf] %vm10989_vm0, %v11611_v44  ;;  %v10237_v9 = vrot.slane %v11513_v24, %v11813_v31  ;;  %v8437_v49 = vrot.slane %v8421_v11, %v11813_v31  ;;  %v8444_v19 = vrot.slane %v8422_v35, %v11813_v31  ;;  %v8451_v2 = vrot.slane %v8423_v28, %v11813_v31 }
 0x2a1   : > { %v11613_v40 = vpack.c.bf16 %v10268_v27, %v10268_v27  ;;  %v10279_v18 = vrot.slane %v10269_v30, %v11813_v31  ;;  %v8452_v16 = vcombine.high %v8430_v46, %v8430_v46  ;;  %v10270_v37 = vcombine.low %v8406_v15, %v8430_v46 }
 0x2a2   : > { %v10239_v43 = vcombine.low %v10230_v41, %v10237_v9  ;;  %v8453_v38 = vcombine.high %v8437_v49, %v8437_v49  ;;  %v8454_v60 = vcombine.high %v8444_v19, %v8444_v19  ;;  %v6990_v1 = vmax.f32 %v6927_v48, 0.0 }
 0x2a3   : > { %v11056_v39 = vsel %vm13897_vm3, %v11613_v40, %v11055_v10  ;;  %v8455_v17 = vcombine.high %v8451_v2, %v8451_v2  ;;  %v10271_v58 = vcombine.low %v8444_v19, %v8452_v16  ;;  %v10286_v21 = vrot.slane %v10270_v37, %v11813_v31 }
 0x2a4   : > { %v10253_v47 = vrot.slane %v10239_v43, %v11813_v31  ;;  %11057 = vst [vmem:[%s13878_s20 + $0x98] sm:$0x1] %v11056_v39  ;;  %v10318_v12 = vcombine.low %v8451_v2, %v8453_v38  ;;  %v10272_v42 = vcombine.low %v8454_v60, %v8437_v49  ;;  %v8456_v45 = vcombine.high %v6990_v1, %v6990_v1 }
 0x2a5   : > { %v8463_v33 = vrot.slane %v6990_v1, %v11813_v31  ;;  %v6756_v7 = vadd.f32 %v15193_v61, %v15192_v22  ;;  %v10293_v25 = vrot.slane %v10271_v58, %v11813_v31  ;;  %v10301_v26 = vcombine.low %v10279_v18, %v10286_v21  ;;  %v11060_v1 = vld [vmem:[%s13878_s20 + $0xa4] sm:$0x1] }
 0x2a6   : > { %v10254_v50 = vcombine.low %v10246_v36, %v10253_v47  ;;  %v10328_v34 = vrot.slane %v10318_v12, %v11813_v31  ;;  %v10300_v57 = vrot.slane %v10272_v42, %v11813_v31  ;;  %v8470_v55 = vrot.slane %v8456_v45, %v11813_v31  ;;  %v15194_v36 = vld [vmem:[#allocation41_spill] sm:$0xff]  ;;  %v15196_v61 = vld [vmem:[#allocation42_spill] sm:$0xff] }
 0x2a7   : > { %v8471_v4 = vcombine.high %v8463_v33, %v8463_v33  ;;  %v8479_v11 = vrot.slane %v8463_v33, %v11813_v31  ;;  %v10309_v48 = vrot.slane %v10301_v26, %v11813_v31  ;;  %v6932_v51 = vadd.f32 %v14296_v0, %v14546_v8 }
 0x2a8   : > { %v11612_v3 = vpack.c.bf16 %v10254_v50, %v10254_v50  ;;  %v6759_v52 = vadd.f32 %v14289_v29, %v15194_v36  ;;  %v10302_v59 = vcombine.low %v10293_v25, %v10300_v57  ;;  %v8472_v44 = vcombine.high %v8470_v55, %v8470_v55  ;;  %v15195_v29 = vld [vmem:[#allocation43_spill] sm:$0xff] }
 0x2a9   : > { %v8486_v23 = vrot.slane %v8470_v55, %v11813_v31  ;;  %v8493_v24 = vrot.slane %v8471_v4, %v11813_v31  ;;  %v8501_v35 = vcombine.high %v8479_v11, %v8479_v11  ;;  %v10319_v27 = vcombine.low %v8455_v17, %v8479_v11 }
 0x2aa   : > { %11054 = vst.msk [vmem:[%s13878_s20 + $0x94] sm:$0xf] %vm10989_vm0, %v11612_v3  ;;  %v6991_v30 = vmax.f32 %v6932_v51, 0.0  ;;  %v6935_v15 = vadd.f32 %v14312_v20, %v14564_v54  ;;  %v10316_v28 = vrot.slane %v10302_v59, %v11813_v31  ;;  %v8500_v0 = vrot.slane %v8472_v44, %v11813_v31 }
 0x2ab   : > { %v8503_v8 = vcombine.high %v8493_v24, %v8493_v24  ;;  %v14618_v41 = vadd.f32 %v14307_v56, %v15195_v29  ;;  %v10320_v9 = vcombine.low %v8493_v24, %v8501_v35  ;;  %v10335_v10 = vrot.slane %v10319_v27, %v11813_v31 }
 0x2ac   : > { %v8505_v46 = vcombine.high %v6991_v30, %v6991_v30  ;;  %v8512_v49 = vrot.slane %v6991_v30, %v11813_v31  ;;  %v10317_v40 = vcombine.low %v10309_v48, %v10316_v28  ;;  %v10373_v20 = vrot.slane %v8500_v0, %v11813_v31 }
 0x2ad   : > { %v10321_v19 = vcombine.low %v8503_v8, %v8486_v23  ;;  %v11514_v54 = vcombine.high %v8486_v23, %v8500_v0  ;;  %v10342_v2 = vrot.slane %v10320_v9, %v11813_v31  ;;  %v10350_v18 = vcombine.low %v10328_v34, %v10335_v10 }
 0x2ae   : > { %v8519_v43 = vrot.slane %v8505_v46, %v11813_v31  ;;  %v8520_v56 = vcombine.high %v8512_v49, %v8512_v49  ;;  %v11614_v16 = vpack.c.bf16 %v10317_v40, %v10317_v40  ;;  %v10380_v37 = vrot.slane %v10373_v20, %v11813_v31 }
 0x2af   : > { %v10349_v38 = vrot.slane %v10321_v19, %v11813_v31  ;;  %v10391_v39 = vrot.slane %v11514_v54, %v11813_v31  ;;  %v10358_v60 = vrot.slane %v10350_v18, %v11813_v31  ;;  %v8528_v47 = vrot.slane %v8512_v49, %v11813_v31 }
 0x2b0   : > { %v8521_v17 = vcombine.high %v8519_v43, %v8519_v43  ;;  %v8535_v58 = vrot.slane %v8519_v43, %v11813_v31  ;;  %11058 = vst.msk [vmem:[%s13878_s20 + $0x9c] sm:$0xf] %vm10989_vm0, %v11614_v16  ;;  %v11616_v12 = vpack.c.bf16 %v10380_v37, %v10380_v37  ;;  %v8542_v42 = vrot.slane %v8520_v56, %v11813_v31 }
 0x2b1   : > { %v10351_v21 = vcombine.low %v10342_v2, %v10349_v38  ;;  %v6992_v45 = vmax.f32 %v6935_v15, 0.0  ;;  %v6940_v22 = vadd.f32 %v14323_v14, %v6756_v7  ;;  %v14639_v50 = vadd.f32 %v14320_v5, %v15196_v61 }
 0x2b2   : > { %v8549_v33 = vrot.slane %v8521_v17, %v11813_v31  ;;  %v6943_v25 = vadd.f32 %v14343_v53, %v6759_v52  ;;  %v11061_v34 = vsel %vm13897_vm3, %v11616_v12, %v11060_v1  ;;  %v10382_v57 = vcombine.low %v8528_v47, %v8542_v42 }
 0x2b3   : > { %v10365_v26 = vrot.slane %v10351_v21, %v11813_v31  ;;  %v11515_v55 = vcombine.high %v8528_v47, %v8542_v42  ;;  %11062 = vst [vmem:[%s13878_s20 + $0xa4] sm:$0x1] %v11061_v34  ;;  %v8554_v3 = vcombine.high %v6992_v45, %v6992_v45  ;;  %v8561_v48 = vrot.slane %v6992_v45, %v11813_v31  ;;  %v11065_v21 = vld [vmem:[%s13878_s20 + $0xb0] sm:$0x1] }
 0x2b4   : > { %v10384_v4 = vcombine.low %v8535_v58, %v8549_v33  ;;  %v11516_v11 = vcombine.high %v8535_v58, %v8549_v33  ;;  %v10398_v5 = vrot.slane %v10382_v57, %v11813_v31  ;;  %v6993_v53 = vmax.f32 %v6940_v22, 0.0 }
 0x2b5   : > { %v10366_v14 = vcombine.low %v10358_v60, %v10365_v26  ;;  %v10405_v7 = vrot.slane %v11515_v55, %v11813_v31  ;;  %v8568_v52 = vrot.slane %v8554_v3, %v11813_v31  ;;  %v8569_v59 = vcombine.high %v8561_v48, %v8561_v48 }
 0x2b6   : > { %v10412_v51 = vrot.slane %v10384_v4, %v11813_v31  ;;  %v10440_v36 = vrot.slane %v11516_v11, %v11813_v31  ;;  %v10413_v23 = vcombine.low %v10391_v39, %v10398_v5  ;;  %v8577_v24 = vrot.slane %v8561_v48, %v11813_v31 }
 0x2b7   : > { %v11615_v44 = vpack.c.bf16 %v10366_v14, %v10366_v14  ;;  %v8603_v35 = vcombine.high %v6993_v53, %v6993_v53  ;;  %v8570_v30 = vcombine.high %v8568_v52, %v8568_v52  ;;  %v8584_v15 = vrot.slane %v8568_v52, %v11813_v31 }
 0x2b8   : > { %v10414_v27 = vcombine.low %v10405_v7, %v10412_v51  ;;  %v8591_v28 = vrot.slane %v8569_v59, %v11813_v31  ;;  %v10421_v0 = vrot.slane %v10413_v23, %v11813_v31  ;;  %v8610_v8 = vrot.slane %v6993_v53, %v11813_v31  ;;  %v15197_v59 = vld [vmem:[#allocation45_spill] sm:$0xff] }
 0x2b9   : > { %11059 = vst.msk [vmem:[%s13878_s20 + $0xa0] sm:$0xf] %vm10989_vm0, %v11615_v44  ;;  %v8617_v29 = vrot.slane %v8603_v35, %v11813_v31  ;;  %v6994_v9 = vmax.f32 %v6943_v25, 0.0  ;;  %v8598_v46 = vrot.slane %v8570_v30, %v11813_v31  ;;  %v8600_v49 = vcombine.high %v8584_v15, %v8584_v15 }
 0x2ba   : > { %v10428_v10 = vrot.slane %v10414_v27, %v11813_v31  ;;  %v10431_v40 = vcombine.low %v8577_v24, %v8591_v28  ;;  %v11517_v19 = vcombine.high %v8577_v24, %v8591_v28  ;;  %v8618_v20 = vcombine.high %v8610_v8, %v8610_v8 }
 0x2bb   : > { %v8619_v54 = vcombine.high %v8617_v29, %v8617_v29  ;;  %v8626_v2 = vrot.slane %v8610_v8, %v11813_v31  ;;  %v10433_v43 = vcombine.low %v8584_v15, %v8598_v46  ;;  %v10485_v16 = vrot.slane %v8600_v49, %v11813_v31 }
 0x2bc   : > { %v10429_v18 = vcombine.low %v10421_v0, %v10428_v10  ;;  %v10447_v56 = vrot.slane %v10431_v40, %v11813_v31  ;;  %v10454_v38 = vrot.slane %v11517_v19, %v11813_v31  ;;  %v8602_v37 = vcombine.high %v8598_v46, %v8598_v46 }
 0x2bd   : > { %v8633_v39 = vrot.slane %v8617_v29, %v11813_v31  ;;  %v8640_v60 = vrot.slane %v8618_v20, %v11813_v31  ;;  %v10461_v17 = vrot.slane %v10433_v43, %v11813_v31  ;;  %v10492_v58 = vrot.slane %v10485_v16, %v11813_v31 }
 0x2be   : > { %v11617_v1 = vpack.c.bf16 %v10429_v18, %v10429_v18  ;;  %v10462_v47 = vcombine.low %v10440_v36, %v10447_v56  ;;  %v8647_v12 = vrot.slane %v8619_v54, %v11813_v31  ;;  %v8648_v42 = vcombine.high %v8626_v2, %v8626_v2 }
 0x2bf   : > { %v8649_v45 = vcombine.high %v8633_v39, %v8633_v39  ;;  %v8650_v33 = vcombine.high %v8640_v60, %v8640_v60  ;;  %v10463_v22 = vcombine.low %v10454_v38, %v10461_v17  ;;  %v11619_v25 = vpack.c.bf16 %v10492_v58, %v10492_v58 }
 0x2c0   : > { %11063 = vst.msk [vmem:[%s13878_s20 + $0xa8] sm:$0xf] %vm10989_vm0, %v11617_v1  ;;  %v10470_v61 = vrot.slane %v10462_v47, %v11813_v31  ;;  %v10493_v26 = vcombine.low %v8602_v37, %v8626_v2  ;;  %v10494_v34 = vcombine.low %v8640_v60, %v8648_v42  ;;  %v8651_v4 = vcombine.high %v8647_v12, %v8647_v12 }
 0x2c1   : > { %v10495_v57 = vcombine.low %v8650_v33, %v8633_v39  ;;  %v10496_v55 = vcombine.low %v8647_v12, %v8649_v45  ;;  %v10477_v11 = vrot.slane %v10463_v22, %v11813_v31  ;;  %v11066_v3 = vsel %vm13897_vm3, %v11619_v25, %v11065_v21 }
 0x2c2   : > { %v10503_v48 = vrot.slane %v10493_v26, %v11813_v31  ;;  %v8652_v14 = vcombine.high %v6994_v9, %v6994_v9  ;;  %11067 = vst [vmem:[%s13878_s20 + $0xb0] sm:$0x1] %v11066_v3  ;;  %v10510_v5 = vrot.slane %v10494_v34, %v11813_v31  ;;  %v8659_v51 = vrot.slane %v6994_v9, %v11813_v31  ;;  %v11070_v34 = vld [vmem:[%s13878_s20 + $0xbc] sm:$0x1] }
 0x2c3   : > { %v10517_v7 = vrot.slane %v10495_v57, %v11813_v31  ;;  %v10524_v53 = vrot.slane %v10496_v55, %v11813_v31  ;;  %v10478_v36 = vcombine.low %v10470_v61, %v10477_v11  ;;  %v6772_v44 = vadd.f32 %v14339_v13, %v15197_v59 }
 0x2c4   : > { %v8666_v52 = vrot.slane %v8652_v14, %v11813_v31  ;;  %v6948_v23 = vadd.f32 %v14358_v62, %v14618_v41  ;;  %v10525_v24 = vcombine.low %v10503_v48, %v10510_v5  ;;  %v8667_v27 = vcombine.high %v8659_v51, %v8659_v51 }
 0x2c5   : > { %v10526_v35 = vcombine.low %v10517_v7, %v10524_v53  ;;  %v8675_v30 = vrot.slane %v8659_v51, %v11813_v31  ;;  %v11618_v15 = vpack.c.bf16 %v10478_v36, %v10478_v36  ;;  %v6951_v22 = vadd.f32 %v14380_v6, %v14639_v50 }
 0x2c6   : > { %v8668_v28 = vcombine.high %v8666_v52, %v8666_v52  ;;  %v8682_v0 = vrot.slane %v8666_v52, %v11813_v31  ;;  %v6995_v8 = vmax.f32 %v6948_v23, 0.0  ;;  %v10533_v29 = vrot.slane %v10525_v24, %v11813_v31 }
 0x2c7   : > { %v10540_v9 = vrot.slane %v10526_v35, %v11813_v31  ;;  %v8689_v10 = vrot.slane %v8667_v27, %v11813_v31  ;;  %v8697_v13 = vcombine.high %v8675_v30, %v8675_v30  ;;  %11064 = vst.msk [vmem:[%s13878_s20 + $0xac] sm:$0xf] %vm10989_vm0, %v11618_v15  ;;  %v10542_v46 = vcombine.low %v8651_v4, %v8675_v30 }
 0x2c8   : > { %v8696_v62 = vrot.slane %v8668_v28, %v11813_v31  ;;  %v8698_v41 = vcombine.high %v8682_v0, %v8682_v0  ;;  %v8701_v49 = vcombine.high %v6995_v8, %v6995_v8  ;;  %v8708_v54 = vrot.slane %v6995_v8, %v11813_v31 }
 0x2c9   : > { %v10541_v40 = vcombine.low %v10533_v29, %v10540_v9  ;;  %v8699_v19 = vcombine.high %v8689_v10, %v8689_v10  ;;  %v10543_v20 = vcombine.low %v8689_v10, %v8697_v13  ;;  %v10552_v43 = vrot.slane %v10542_v46, %v11813_v31 }
 0x2ca   : > { %v8700_v2 = vcombine.high %v8696_v62, %v8696_v62  ;;  %v10545_v18 = vcombine.low %v8696_v62, %v8698_v41  ;;  %v8715_v56 = vrot.slane %v8701_v49, %v11813_v31  ;;  %v8716_v39 = vcombine.high %v8708_v54, %v8708_v54 }
 0x2cb   : > { %v11620_v16 = vpack.c.bf16 %v10541_v40, %v10541_v40  ;;  %v10544_v38 = vcombine.low %v8699_v19, %v8682_v0  ;;  %v10559_v37 = vrot.slane %v10543_v20, %v11813_v31  ;;  %v8724_v47 = vrot.slane %v8708_v54, %v11813_v31 }
 0x2cc   : > { %v10573_v60 = vrot.slane %v10545_v18, %v11813_v31  ;;  %v10597_v1 = vrot.slane %v8700_v2, %v11813_v31  ;;  %v8717_v17 = vcombine.high %v8715_v56, %v8715_v56  ;;  %v8731_v12 = vrot.slane %v8715_v56, %v11813_v31  ;;  %v11075_v18 = vld [vmem:[%s13878_s20 + $0xc8] sm:$0x1] }
 0x2cd   : > { %11068 = vst.msk [vmem:[%s13878_s20 + $0xb4] sm:$0xf] %vm10989_vm0, %v11620_v16  ;;  %v10566_v58 = vrot.slane %v10544_v38, %v11813_v31  ;;  %v10574_v21 = vcombine.low %v10552_v43, %v10559_v37  ;;  %v8738_v42 = vrot.slane %v8716_v39, %v11813_v31  ;;  %v6956_v61 = vadd.f32 %v14389_v32, %v6772_v44 }
 0x2ce   : > { %v10604_v45 = vrot.slane %v10597_v1, %v11813_v31  ;;  %v8745_v33 = vrot.slane %v8717_v17, %v11813_v31  ;;  %v6996_v48 = vmax.f32 %v6951_v22, 0.0 }
 0x2cf   : > { %v10575_v25 = vcombine.low %v10566_v58, %v10573_v60  ;;  %v10582_v26 = vrot.slane %v10574_v21, %v11813_v31  ;;  %v10605_v57 = vcombine.low %v8724_v47, %v8738_v42  ;;  %v11518_v55 = vcombine.high %v8724_v47, %v8738_v42 }
 0x2d0   : > { %v11622_v4 = vpack.c.bf16 %v10604_v45, %v10604_v45  ;;  %v10607_v11 = vcombine.low %v8731_v12, %v8745_v33  ;;  %v11519_v3 = vcombine.high %v8731_v12, %v8745_v33  ;;  %v6997_v6 = vmax.f32 %v6956_v61, 0.0 }
 0x2d1   : > { %v10589_v14 = vrot.slane %v10575_v25, %v11813_v31  ;;  %v10615_v5 = vrot.slane %v10605_v57, %v11813_v31  ;;  %v10622_v7 = vrot.slane %v11518_v55, %v11813_v31  ;;  %v8750_v51 = vcombine.high %v6996_v48, %v6996_v48 }
 0x2d2   : > { %v11071_v32 = vsel %vm13897_vm3, %v11622_v4, %v11070_v34  ;;  %v10629_v50 = vrot.slane %v10607_v11, %v11813_v31  ;;  %v10636_v53 = vrot.slane %v11519_v3, %v11813_v31  ;;  %v8757_v59 = vrot.slane %v6996_v48, %v11813_v31 }
 0x2d3   : > { %v10590_v36 = vcombine.low %v10582_v26, %v10589_v14  ;;  %11072 = vst [vmem:[%s13878_s20 + $0xbc] sm:$0x1] %v11071_v32  ;;  %v10637_v52 = vcombine.low %v10615_v5, %v10622_v7  ;;  %v8805_v44 = vrot.slane %v6997_v6, %v11813_v31  ;;  %v8764_v24 = vrot.slane %v8750_v51, %v11813_v31 }
 0x2d4   : > { %v10638_v23 = vcombine.low %v10629_v50, %v10636_v53  ;;  %v8765_v27 = vcombine.high %v8757_v59, %v8757_v59  ;;  %v8773_v8 = vrot.slane %v8757_v59, %v11813_v31 }
 0x2d5   : > { %v11621_v35 = vpack.c.bf16 %v10590_v36, %v10590_v36  ;;  %v10645_v30 = vrot.slane %v10637_v52, %v11813_v31  ;;  %v8766_v28 = vcombine.high %v8764_v24, %v8764_v24  ;;  %v8812_v0 = vrot.slane %v8805_v44, %v11813_v31 }
 0x2d6   : > { %v10652_v15 = vrot.slane %v10638_v23, %v11813_v31  ;;  %v8787_v29 = vrot.slane %v8765_v27, %v11813_v31  ;;  %v8780_v10 = vrot.slane %v8764_v24, %v11813_v31 }
 0x2d7   : > { %11069 = vst.msk [vmem:[%s13878_s20 + $0xb8] sm:$0xf] %vm10989_vm0, %v11621_v35  ;;  %v8794_v13 = vrot.slane %v8766_v28, %v11813_v31  ;;  %v10709_v62 = vrot.slane %v8812_v0, %v11813_v31 }
 0x2d8   : > { %v10653_v9 = vcombine.low %v10645_v30, %v10652_v15  ;;  %v10654_v41 = vcombine.low %v8773_v8, %v8787_v29  ;;  %v11520_v46 = vcombine.high %v8773_v8, %v8787_v29 }
 0x2d9   : > { %v10656_v40 = vcombine.low %v8780_v10, %v8794_v13  ;;  %v11521_v19 = vcombine.high %v8780_v10, %v8794_v13  ;;  %v10716_v20 = vrot.slane %v10709_v62, %v11813_v31 }
 0x2da   : > { %v11623_v49 = vpack.c.bf16 %v10653_v9, %v10653_v9  ;;  %v10664_v54 = vrot.slane %v10654_v41, %v11813_v31  ;;  %v10671_v2 = vrot.slane %v11520_v46, %v11813_v31 }
 0x2db   : > { %v10678_v43 = vrot.slane %v10656_v40, %v11813_v31  ;;  %v10685_v56 = vrot.slane %v11521_v19, %v11813_v31  ;;  %v11625_v16 = vpack.c.bf16 %v10716_v20, %v10716_v20 }
 0x2dc   : > { %11073 = vst.msk [vmem:[%s13878_s20 + $0xc0] sm:$0xf] %vm10989_vm0, %v11623_v49  ;;  %v10686_v38 = vcombine.low %v10664_v54, %v10671_v2 }
 0x2dd   : > { %v10687_v37 = vcombine.low %v10678_v43, %v10685_v56  ;;  %v11076_v39 = vsel %vm13897_vm3, %v11625_v16, %v11075_v18 }
 0x2de   : > { %11077 = vst [vmem:[%s13878_s20 + $0xc8] sm:$0x1] %v11076_v39  ;;  %v10694_v60 = vrot.slane %v10686_v38, %v11813_v31 }
 0x2df   : > { %v10701_v1 = vrot.slane %v10687_v37, %v11813_v31 }
 0x2e1   : > { %v10702_v17 = vcombine.low %v10694_v60, %v10701_v1 }
 0x2e3   : > { %v11624_v47 = vpack.c.bf16 %v10702_v17, %v10702_v17 }
 0x2e5   : > { %11074 = vst.msk [vmem:[%s13878_s20 + $0xc4] sm:$0xf] %vm10989_vm0, %v11624_v47 }
 0x2e6 PF: > { %s13_s12 = sadd.s32 1, %s11727_s12  }
 0x2e7   : > { %p10_p4 = scmp.ge.s32.totalorder %s13_s12, 4  }
 0x2e9   :  { %12 = sbr.rel (!%p10_p4) target bundleno = 1 (0x1), region = 62 }

</bundles_post_ra>
